<compile_context>
chip_gen: v6e
topology: v6e:2x2x1
jax: 0.10.0
libtpu: 0.0.40
codegen_flags: <defaults>
</compile_context>

<pallas_src>
import math
import functools

import jax
import jax.numpy as jnp
from jax.experimental import pallas as pl
from jax.experimental.pallas import tpu as pltpu

F32 = jnp.float32
BF16 = jnp.bfloat16
LN_EPS = 1e-5


# ------------------------------ config helpers ------------------------------ #

def _vmem_limit_bytes():
    """Raise the scoped VMEM limit, staying below physical capacity."""
    try:
        return int(pltpu.get_tpu_info().vmem_capacity_bytes * 3 // 4)
    except Exception:
        return None


_VMEM_LIMIT = _vmem_limit_bytes()


def _cparams(dims):
    kwargs = dict(dimension_semantics=dims)
    if _VMEM_LIMIT is not None:
        kwargs["vmem_limit_bytes"] = _VMEM_LIMIT
    return pltpu.CompilerParams(**kwargs)


def _pick_block(dim, base, target):
    """Largest multiple of `base` dividing `dim` and <= `target`; else full dim."""
    if dim <= target:
        return dim
    if dim % base == 0:
        t = (target // base) * base
        while t >= base:
            if dim % t == 0:
                return t
            t -= base
    return dim


def _bcast_spec(shape):
    """Constant-index BlockSpec (same block every grid step: weights / masks)."""
    zeros = (0,) * len(shape)
    return pl.BlockSpec(shape, lambda b: zeros)


# ------------------------------ in-kernel math ------------------------------ #

def _layernorm(h, g, b):
    mu = jnp.mean(h, axis=-1, keepdims=True)
    var = jnp.mean(jnp.square(h - mu), axis=-1, keepdims=True)
    return (h - mu) * jax.lax.rsqrt(var + LN_EPS) * g + b


def _heads_attend(q_all, kv, d, nhead, mask):
    """Multi-head attention on one batch element (pre out-projection).

    q_all: (Tq, d) f32, kv: (Tk, 2d) f32 laid out [K | V], mask: (Tq, Tk) or None.
    bf16 MXU inputs, f32 accumulation; softmax in f32.
    """
    hd = d // nhead
    scale = 1.0 / math.sqrt(hd)
    heads = []
    for h in range(nhead):          # nhead is small & static -> unrolled
        q = q_all[:, h * hd:(h + 1) * hd].astype(BF16)
        k = kv[:, h * hd:(h + 1) * hd].astype(BF16)
        v = kv[:, d + h * hd:d + (h + 1) * hd].astype(BF16)
        s = jnp.einsum('qd,kd->qk', q, k, preferred_element_type=F32) * scale
        if mask is not None:
            s = s + mask            # additive mask (0 / -inf)
        s = s - jnp.max(s, axis=-1, keepdims=True)
        p = jnp.exp(s)
        p = p * pl.reciprocal(jnp.sum(p, axis=-1, keepdims=True), approx=True)
        heads.append(jnp.dot(p.astype(BF16), v, preferred_element_type=F32))
    return jnp.concatenate(heads, axis=-1)      # (Tq, d)


# --------------------------- fused encoder layer ---------------------------- #

def _encoder_layer_kernel(x_ref, mask_ref,
                          w_qkv_ref, b_qkv_ref, wo_ref, bo_ref, g1_ref, be1_ref,
                          w1_ref, b1_ref, w2_ref, b2_ref, g2_ref, be2_ref,
                          o_ref, *, nhead):
    x = x_ref[0]                                  # (S, d) f32
    d = x.shape[-1]
    # fused QKV projection
    qkv = jnp.dot(x.astype(BF16), w_qkv_ref[...],
                  preferred_element_type=F32) + b_qkv_ref[...]          # (S, 3d)
    att = _heads_attend(qkv[:, :d], qkv[:, d:], d, nhead, mask_ref[...])
    # out-projection + residual + LayerNorm1
    h1 = jnp.dot(att.astype(BF16), wo_ref[...], preferred_element_type=F32)
    h1 = _layernorm(h1 + bo_ref[...] + x, g1_ref[...], be1_ref[...])
    # FFN + residual + LayerNorm2 (intermediate stays in VMEM)
    ff = jnp.dot(h1.astype(BF16), w1_ref[...],
                 preferred_element_type=F32) + b1_ref[...]
    ff = jnp.maximum(ff, 0.0)
    y = jnp.dot(ff.astype(BF16), w2_ref[...],
                preferred_element_type=F32) + b2_ref[...] + h1
    o_ref[0] = _layernorm(y, g2_ref[...], be2_ref[...])


def encoder_layer(x, mask, p, nhead):
    """x: (B, S, d) f32 -> (B, S, d) f32.  Whole layer in one pallas_call."""
    B, S, d = x.shape
    H = p["w1"].shape[1]
    act_spec = pl.BlockSpec((1, S, d), lambda b: (b, 0, 0))
    return pl.pallas_call(
        functools.partial(_encoder_layer_kernel, nhead=nhead),
        grid=(B,),
        out_shape=jax.ShapeDtypeStruct((B, S, d), F32),
        in_specs=[
            act_spec,
            _bcast_spec((S, S)),
            _bcast_spec((d, 3 * d)), _bcast_spec((1, 3 * d)),
            _bcast_spec((d, d)), _bcast_spec((1, d)),
            _bcast_spec((1, d)), _bcast_spec((1, d)),
            _bcast_spec((d, H)), _bcast_spec((1, H)),
            _bcast_spec((H, d)), _bcast_spec((1, d)),
            _bcast_spec((1, d)), _bcast_spec((1, d)),
        ],
        out_specs=act_spec,
        compiler_params=_cparams(("parallel",)),
    )(x, mask,
      p["w_qkv"].astype(BF16), p["b_qkv"].reshape(1, -1),
      p["wo"].astype(BF16), p["bo"].reshape(1, -1),
      p["g1"].reshape(1, -1), p["be1"].reshape(1, -1),
      p["w1"].astype(BF16), p["b1"].reshape(1, -1),
      p["w2"].astype(BF16), p["b2"].reshape(1, -1),
      p["g2"].reshape(1, -1), p["be2"].reshape(1, -1))


# --------------------------- fused decoder layer ---------------------------- #

def _decoder_layer_kernel(y_ref, mem_ref, mask_ref,
                          w_qkv_ref, b_qkv_ref, wo_ref, bo_ref, g1_ref, be1_ref,
                          wcq_ref, bcq_ref, wckv_ref, bckv_ref, wco_ref, bco_ref,
                          g2_ref, be2_ref,
                          w1_ref, b1_ref, w2_ref, b2_ref, g3_ref, be3_ref,
                          o_ref, *, nhead):
    y = y_ref[0]                                  # (T, d)
    mem = mem_ref[0]                              # (S, d)
    d = y.shape[-1]
    # --- masked self-attention + out-proj + residual + LN1 ---
    qkv = jnp.dot(y.astype(BF16), w_qkv_ref[...],
                  preferred_element_type=F32) + b_qkv_ref[...]
    att = _heads_attend(qkv[:, :d], qkv[:, d:], d, nhead, mask_ref[...])
    h1 = jnp.dot(att.astype(BF16), wo_ref[...], preferred_element_type=F32)
    h1 = _layernorm(h1 + bo_ref[...] + y, g1_ref[...], be1_ref[...])
    # --- cross-attention (no memory mask) + out-proj + residual + LN2 ---
    q_all = jnp.dot(h1.astype(BF16), wcq_ref[...],
                    preferred_element_type=F32) + bcq_ref[...]          # (T, d)
    kv = jnp.dot(mem.astype(BF16), wckv_ref[...],
                 preferred_element_type=F32) + bckv_ref[...]            # (S, 2d)
    catt = _heads_attend(q_all, kv, d, nhead, None)
    h2 = jnp.dot(catt.astype(BF16), wco_ref[...], preferred_element_type=F32)
    h2 = _layernorm(h2 + bco_ref[...] + h1, g2_ref[...], be2_ref[...])
    # --- FFN + residual + LN3 ---
    ff = jnp.dot(h2.astype(BF16), w1_ref[...],
                 preferred_element_type=F32) + b1_ref[...]
    ff = jnp.maximum(ff, 0.0)
    h3 = jnp.dot(ff.astype(BF16), w2_ref[...],
                 preferred_element_type=F32) + b2_ref[...] + h2
    o_ref[0] = _layernorm(h3, g3_ref[...], be3_ref[...])


def decoder_layer(y, memory, mask, p, nhead):
    """y: (B, T, d), memory: (B, S, d) -> (B, T, d).  Whole layer fused."""
    B, T, d = y.shape
    S = memory.shape[1]
    H = p["w1"].shape[1]
    y_spec = pl.BlockSpec((1, T, d), lambda b: (b, 0, 0))
    m_spec = pl.BlockSpec((1, S, d), lambda b: (b, 0, 0))
    return pl.pallas_call(
        functools.partial(_decoder_layer_kernel, nhead=nhead),
        grid=(B,),
        out_shape=jax.ShapeDtypeStruct((B, T, d), F32),
        in_specs=[
            y_spec, m_spec,
            _bcast_spec((T, T)),
            _bcast_spec((d, 3 * d)), _bcast_spec((1, 3 * d)),
            _bcast_spec((d, d)), _bcast_spec((1, d)),
            _bcast_spec((1, d)), _bcast_spec((1, d)),
            _bcast_spec((d, d)), _bcast_spec((1, d)),
            _bcast_spec((d, 2 * d)), _bcast_spec((1, 2 * d)),
            _bcast_spec((d, d)), _bcast_spec((1, d)),
            _bcast_spec((1, d)), _bcast_spec((1, d)),
            _bcast_spec((d, H)), _bcast_spec((1, H)),
            _bcast_spec((H, d)), _bcast_spec((1, d)),
            _bcast_spec((1, d)), _bcast_spec((1, d)),
        ],
        out_specs=y_spec,
        compiler_params=_cparams(("parallel",)),
    )(y, memory, mask,
      p["w_qkv"].astype(BF16), p["b_qkv"].reshape(1, -1),
      p["wo"].astype(BF16), p["bo"].reshape(1, -1),
      p["g1"].reshape(1, -1), p["be1"].reshape(1, -1),
      p["wcq"].astype(BF16), p["bcq"].reshape(1, -1),
      p["wckv"].astype(BF16), p["bckv"].reshape(1, -1),
      p["wco"].astype(BF16), p["bco"].reshape(1, -1),
      p["g2"].reshape(1, -1), p["be2"].reshape(1, -1),
      p["w1"].astype(BF16), p["b1"].reshape(1, -1),
      p["w2"].astype(BF16), p["b2"].reshape(1, -1),
      p["g3"].reshape(1, -1), p["be3"].reshape(1, -1))


# --------------------- final linear decoder + dim-0 softmax ----------------- #

def _decode_softmax_kernel(y_ref, w_ref, b_ref, o_ref):
    # one batch element, one vocab tile -> (T, nv) probabilities over T (dim 0)
    logits = jnp.dot(y_ref[0].astype(BF16), w_ref[...],
                     preferred_element_type=F32) + b_ref[...]
    logits = logits - jnp.max(logits, axis=0, keepdims=True)
    p = jnp.exp(logits)
    o_ref[0] = p / jnp.sum(p, axis=0, keepdims=True)   # exact division


def decode_softmax_dim0(y, w, b):
    """y: (B, T, D) -> softmax over T of (y @ w + b), shape (B, T, ntoken)."""
    B, T, D = y.shape
    ntoken = w.shape[1]
    nv = _pick_block(ntoken, 128, 512)          # lane-dense vocab tile when possible
    return pl.pallas_call(
        _decode_softmax_kernel,
        grid=(B, ntoken // nv),
        out_shape=jax.ShapeDtypeStruct((B, T, ntoken), F32),
        in_specs=[
            pl.BlockSpec((1, T, D), lambda b, j: (b, 0, 0)),
            pl.BlockSpec((D, nv), lambda b, j: (0, j)),
            pl.BlockSpec((1, nv), lambda b, j: (0, j)),
        ],
        out_specs=pl.BlockSpec((1, T, nv), lambda b, j: (b, 0, j)),
        compiler_params=_cparams(("parallel", "parallel")),
    )(y, w.astype(BF16), b.reshape(1, ntoken))


# ----------------------------- model (glue) --------------------------------- #

def positional_encoding(d, max_len=512):
    pos = jnp.arange(max_len, dtype=F32)[:, None]
    div = jnp.exp(jnp.arange(0, d, 2, dtype=F32) * (-math.log(10000.0) / d))
    pe = jnp.zeros((max_len, d), F32)
    pe = pe.at[:, 0::2].set(jnp.sin(pos * div))
    pe = pe.at[:, 1::2].set(jnp.cos(pos * div))
    return pe                                       # (max_len, d)


def transformer_forward(params, context, response, src_mask, response_mask,
                        ninp, noutp, nhead):
    # TODO(synk): dropout (p=0.5) is train-time only; implemented as eval-mode identity.
    # Embedding gather + scale + positional encoding stay in XLA (tiny gather op).
    # Internally batch-major (B, seq, d) so Pallas blocks need no transposes.
    S, B = context.shape
    T = response.shape[0]

    x = jnp.take(params["input_emb"], context.T, axis=0) * math.sqrt(ninp)    # (B, S, d)
    x = x + params["pe_in"][:S][None, :, :]
    for lp in params["enc_layers"]:
        x = encoder_layer(x, src_mask, lp, nhead)
    memory = x

    y = jnp.take(params["output_emb"], response.T, axis=0) * math.sqrt(noutp)  # (B, T, d)
    y = y + params["pe_out"][:T][None, :, :]
    for lp in params["dec_layers"]:
        y = decoder_layer(y, memory, response_mask, lp, nhead)

    probs = decode_softmax_dim0(y, params["dec_w"], params["dec_b"])           # (B, T, ntoken)
    return jnp.transpose(probs, (1, 0, 2))                                     # (T, B, ntoken)


# ----------------------------- parameter init -------------------------------- #

def _uniform(key, shape, scale=0.1):
    return jax.random.uniform(key, shape, F32, -scale, scale)


def init_params(key, ntoken, ninp, noutp, nhead, nhid, nlayers):
    keys = iter(jax.random.split(key, 1024))
    nk = lambda: next(keys)
    zeros = lambda n: jnp.zeros((n,), F32)
    ones = lambda n: jnp.ones((n,), F32)

    params = {
        "input_emb": _uniform(nk(), (ntoken, ninp)),
        "output_emb": _uniform(nk(), (ntoken, noutp)),
        "pe_in": positional_encoding(ninp),
        "pe_out": positional_encoding(noutp),
        "dec_w": _uniform(nk(), (noutp, ntoken)),
        "dec_b": zeros(ntoken),
        "enc_layers": [],
        "dec_layers": [],
    }
    d_e, d_d = ninp, noutp
    for _ in range(nlayers):
        params["enc_layers"].append({
            "w_qkv": _uniform(nk(), (d_e, 3 * d_e)), "b_qkv": zeros(3 * d_e),
            "wo": _uniform(nk(), (d_e, d_e)), "bo": zeros(d_e),
            "g1": ones(d_e), "be1": zeros(d_e),
            "w1": _uniform(nk(), (d_e, nhid)), "b1": zeros(nhid),
            "w2": _uniform(nk(), (nhid, d_e)), "b2": zeros(d_e),
            "g2": ones(d_e), "be2": zeros(d_e),
        })
    for _ in range(nlayers):
        params["dec_layers"].append({
            "w_qkv": _uniform(nk(), (d_d, 3 * d_d)), "b_qkv": zeros(3 * d_d),
            "wo": _uniform(nk(), (d_d, d_d)), "bo": zeros(d_d),
            "g1": ones(d_d), "be1": zeros(d_d),
            "wcq": _uniform(nk(), (d_d, d_d)), "bcq": zeros(d_d),
            "wckv": _uniform(nk(), (d_d, 2 * d_d)), "bckv": zeros(2 * d_d),
            "wco": _uniform(nk(), (d_d, d_d)), "bco": zeros(d_d),
            "g2": ones(d_d), "be2": zeros(d_d),
            "w1": _uniform(nk(), (d_d, nhid)), "b1": zeros(nhid),
            "w2": _uniform(nk(), (nhid, d_d)), "b2": zeros(d_d),
            "g3": ones(d_d), "be3": zeros(d_d),
        })
    return params


def generate_square_subsequent_mask(sz):
    i = jnp.arange(sz)[:, None]
    j = jnp.arange(sz)[None, :]
    return jnp.where(j <= i, 0.0, -jnp.inf).astype(F32)


# --------------------------------- main -------------------------------------- #

if __name__ == "__main__":
    ntoken, ninp, noutp, nhead, nhid, nlayers = 50, 32, 32, 4, 64, 2
    S, T, B = 8, 8, 2

    key = jax.random.PRNGKey(0)
    kp, kc, kr = jax.random.split(key, 3)
    params = init_params(kp, ntoken, ninp, noutp, nhead, nhid, nlayers)

    context = jax.random.randint(kc, (S, B), 0, ntoken, dtype=jnp.int32)
    response = jax.random.randint(kr, (T, B), 0, ntoken, dtype=jnp.int32)
    src_mask = generate_square_subsequent_mask(S)
    response_mask = generate_square_subsequent_mask(T)

    fwd = jax.jit(functools.partial(transformer_forward,
                                    ninp=ninp, noutp=noutp, nhead=nhead))
    out = fwd(params, context, response, src_mask, response_mask)
    out = jax.block_until_ready(out)

    assert out.shape == (T, B, ntoken), out.shape
    assert bool(jnp.all(jnp.isfinite(out)))
    # softmax over dim 0 -> columns sum to 1 along the sequence axis
    assert bool(jnp.allclose(jnp.sum(out, axis=0), 1.0, atol=1e-4))
    print("KERNEL_OK")
</pallas_src>

<mosaic_0001>
module attributes {stable_mosaic.version = 11 : i64} {
  func.func @_encoder_layer_kernel(%arg0: i32, %arg1: memref<1x8x32xf32, #tpu.memory_space<vmem>>, %arg2: memref<8x8xf32, #tpu.memory_space<vmem>>, %arg3: memref<32x96xbf16, #tpu.memory_space<vmem>>, %arg4: memref<1x96xf32, #tpu.memory_space<vmem>>, %arg5: memref<32x32xbf16, #tpu.memory_space<vmem>>, %arg6: memref<1x32xf32, #tpu.memory_space<vmem>>, %arg7: memref<1x32xf32, #tpu.memory_space<vmem>>, %arg8: memref<1x32xf32, #tpu.memory_space<vmem>>, %arg9: memref<32x64xbf16, #tpu.memory_space<vmem>>, %arg10: memref<1x64xf32, #tpu.memory_space<vmem>>, %arg11: memref<64x32xbf16, #tpu.memory_space<vmem>>, %arg12: memref<1x32xf32, #tpu.memory_space<vmem>>, %arg13: memref<1x32xf32, #tpu.memory_space<vmem>>, %arg14: memref<1x32xf32, #tpu.memory_space<vmem>>, %arg15: memref<1x8x32xf32, #tpu.memory_space<vmem>>) attributes {dimension_semantics = [#tpu.dimension_semantics<parallel>], iteration_bounds = array<i64: 2>, scalar_prefetch = 0 : i64, scratch_operands = 0 : i64, tpu.core_type = #tpu.core_type<tc>, window_params = [{transform_indices = @transform_0, window_bounds = array<i64: 1, 8, 32>}, {pipeline_mode = #tpu.pipeline_mode<synchronous>, transform_indices = @transform_1, window_bounds = array<i64: 8, 8>}, {pipeline_mode = #tpu.pipeline_mode<synchronous>, transform_indices = @transform_2, window_bounds = array<i64: 32, 96>}, {pipeline_mode = #tpu.pipeline_mode<synchronous>, transform_indices = @transform_3, window_bounds = array<i64: 1, 96>}, {pipeline_mode = #tpu.pipeline_mode<synchronous>, transform_indices = @transform_4, window_bounds = array<i64: 32, 32>}, {pipeline_mode = #tpu.pipeline_mode<synchronous>, transform_indices = @transform_5, window_bounds = array<i64: 1, 32>}, {pipeline_mode = #tpu.pipeline_mode<synchronous>, transform_indices = @transform_6, window_bounds = array<i64: 1, 32>}, {pipeline_mode = #tpu.pipeline_mode<synchronous>, transform_indices = @transform_7, window_bounds = array<i64: 1, 32>}, {pipeline_mode = #tpu.pipeline_mode<synchronous>, transform_indices = @transform_8, window_bounds = array<i64: 32, 64>}, {pipeline_mode = #tpu.pipeline_mode<synchronous>, transform_indices = @transform_9, window_bounds = array<i64: 1, 64>}, {pipeline_mode = #tpu.pipeline_mode<synchronous>, transform_indices = @transform_10, window_bounds = array<i64: 64, 32>}, {pipeline_mode = #tpu.pipeline_mode<synchronous>, transform_indices = @transform_11, window_bounds = array<i64: 1, 32>}, {pipeline_mode = #tpu.pipeline_mode<synchronous>, transform_indices = @transform_12, window_bounds = array<i64: 1, 32>}, {pipeline_mode = #tpu.pipeline_mode<synchronous>, transform_indices = @transform_13, window_bounds = array<i64: 1, 32>}, {transform_indices = @transform_14, window_bounds = array<i64: 1, 8, 32>}]} {
    %c0 = arith.constant 0 : index
    %c0_0 = arith.constant 0 : index
    %c0_1 = arith.constant 0 : index
    %0 = vector.load %arg1[%c0, %c0_0, %c0_1] : memref<1x8x32xf32, #tpu.memory_space<vmem>>, vector<1x8x32xf32>
    %1 = vector.shape_cast %0 : vector<1x8x32xf32> to vector<8x32xf32>
    %2 = arith.truncf %1 : vector<8x32xf32> to vector<8x32xbf16>
    %c0_2 = arith.constant 0 : index
    %c0_3 = arith.constant 0 : index
    %3 = vector.load %arg3[%c0_2, %c0_3] : memref<32x96xbf16, #tpu.memory_space<vmem>>, vector<32x96xbf16>
    %cst = arith.constant dense<0.000000e+00> : vector<8x96xf32>
    %4 = tpu.matmul %2, %3, %cst {dimension_numbers = #tpu.dot_dimension_numbers<[1], [0], [0], [1], [0, 0, 1, 1], [], []>} : vector<8x32xbf16>, vector<32x96xbf16>, vector<8x96xf32> -> vector<8x96xf32>
    %c0_4 = arith.constant 0 : index
    %c0_5 = arith.constant 0 : index
    %5 = vector.load %arg4[%c0_4, %c0_5] : memref<1x96xf32, #tpu.memory_space<vmem>>, vector<1x96xf32>
    %6 = vector.broadcast %5 : vector<1x96xf32> to vector<8x96xf32>
    %7 = arith.addf %4, %6 : vector<8x96xf32>
    %8 = vector.extract_strided_slice %7 {offsets = [0, 0], sizes = [8, 32], strides = [1, 1]} : vector<8x96xf32> to vector<8x32xf32>
    %9 = vector.extract_strided_slice %7 {offsets = [0, 32], sizes = [8, 64], strides = [1, 1]} : vector<8x96xf32> to vector<8x64xf32>
    %c0_6 = arith.constant 0 : index
    %c0_7 = arith.constant 0 : index
    %10 = vector.load %arg2[%c0_6, %c0_7] : memref<8x8xf32, #tpu.memory_space<vmem>>, vector<8x8xf32>
    %11 = vector.extract_strided_slice %8 {offsets = [0, 0], sizes = [8, 8], strides = [1, 1]} : vector<8x32xf32> to vector<8x8xf32>
    %12 = arith.truncf %11 : vector<8x8xf32> to vector<8x8xbf16>
    %13 = vector.extract_strided_slice %9 {offsets = [0, 0], sizes = [8, 8], strides = [1, 1]} : vector<8x64xf32> to vector<8x8xf32>
    %14 = arith.truncf %13 : vector<8x8xf32> to vector<8x8xbf16>
    %15 = vector.extract_strided_slice %9 {offsets = [0, 32], sizes = [8, 8], strides = [1, 1]} : vector<8x64xf32> to vector<8x8xf32>
    %16 = arith.truncf %15 : vector<8x8xf32> to vector<8x8xbf16>
    "tpu.trace_start"() <{level = 10 : i32, message = "qd,kd->qk"}> : () -> ()
    %cst_8 = arith.constant dense<0.000000e+00> : vector<8x8xf32>
    %17 = tpu.matmul %12, %14, %cst_8 {dimension_numbers = #tpu.dot_dimension_numbers<[1], [1], [0], [0], [0, 0, 1, 0], [], []>} : vector<8x8xbf16>, vector<8x8xbf16>, vector<8x8xf32> -> vector<8x8xf32>
    "tpu.trace_stop"() : () -> ()
    %cst_9 = arith.constant 0.353553385 : f32
    %18 = vector.broadcast %cst_9 : f32 to vector<8x8xf32>
    %19 = arith.mulf %17, %18 : vector<8x8xf32>
    %20 = arith.addf %19, %10 : vector<8x8xf32>
    %cst_10 = arith.constant dense<0xFF800000> : vector<8xf32>
    %21 = vector.multi_reduction <maximumf>, %20, %cst_10 [1] : vector<8x8xf32> to vector<8xf32>
    %22 = vector.shape_cast %21 : vector<8xf32> to vector<8x1xf32>
    %23 = vector.broadcast %22 : vector<8x1xf32> to vector<8x8xf32>
    %24 = arith.subf %20, %23 : vector<8x8xf32>
    %25 = math.exp %24 : vector<8x8xf32>
    %cst_11 = arith.constant dense<0.000000e+00> : vector<8xf32>
    %26 = vector.multi_reduction <add>, %25, %cst_11 [1] : vector<8x8xf32> to vector<8xf32>
    %27 = vector.shape_cast %26 : vector<8xf32> to vector<8x1xf32>
    %28 = tpu.reciprocal %27 {approx = true} : vector<8x1xf32> -> vector<8x1xf32>
    %29 = vector.broadcast %28 : vector<8x1xf32> to vector<8x8xf32>
    %30 = arith.mulf %25, %29 : vector<8x8xf32>
    %31 = arith.truncf %30 : vector<8x8xf32> to vector<8x8xbf16>
    %cst_12 = arith.constant dense<0.000000e+00> : vector<8x8xf32>
    %32 = tpu.matmul %31, %16, %cst_12 {dimension_numbers = #tpu.dot_dimension_numbers<[1], [0], [0], [1], [0, 0, 1, 1], [], []>} : vector<8x8xbf16>, vector<8x8xbf16>, vector<8x8xf32> -> vector<8x8xf32>
    %33 = vector.extract_strided_slice %8 {offsets = [0, 8], sizes = [8, 8], strides = [1, 1]} : vector<8x32xf32> to vector<8x8xf32>
    %34 = arith.truncf %33 : vector<8x8xf32> to vector<8x8xbf16>
    %35 = vector.extract_strided_slice %9 {offsets = [0, 8], sizes = [8, 8], strides = [1, 1]} : vector<8x64xf32> to vector<8x8xf32>
    %36 = arith.truncf %35 : vector<8x8xf32> to vector<8x8xbf16>
    %37 = vector.extract_strided_slice %9 {offsets = [0, 40], sizes = [8, 8], strides = [1, 1]} : vector<8x64xf32> to vector<8x8xf32>
    %38 = arith.truncf %37 : vector<8x8xf32> to vector<8x8xbf16>
    "tpu.trace_start"() <{level = 10 : i32, message = "qd,kd->qk"}> : () -> ()
    %cst_13 = arith.constant dense<0.000000e+00> : vector<8x8xf32>
    %39 = tpu.matmul %34, %36, %cst_13 {dimension_numbers = #tpu.dot_dimension_numbers<[1], [1], [0], [0], [0, 0, 1, 0], [], []>} : vector<8x8xbf16>, vector<8x8xbf16>, vector<8x8xf32> -> vector<8x8xf32>
    "tpu.trace_stop"() : () -> ()
    %cst_14 = arith.constant 0.353553385 : f32
    %40 = vector.broadcast %cst_14 : f32 to vector<8x8xf32>
    %41 = arith.mulf %39, %40 : vector<8x8xf32>
    %42 = arith.addf %41, %10 : vector<8x8xf32>
    %cst_15 = arith.constant dense<0xFF800000> : vector<8xf32>
    %43 = vector.multi_reduction <maximumf>, %42, %cst_15 [1] : vector<8x8xf32> to vector<8xf32>
    %44 = vector.shape_cast %43 : vector<8xf32> to vector<8x1xf32>
    %45 = vector.broadcast %44 : vector<8x1xf32> to vector<8x8xf32>
    %46 = arith.subf %42, %45 : vector<8x8xf32>
    %47 = math.exp %46 : vector<8x8xf32>
    %cst_16 = arith.constant dense<0.000000e+00> : vector<8xf32>
    %48 = vector.multi_reduction <add>, %47, %cst_16 [1] : vector<8x8xf32> to vector<8xf32>
    %49 = vector.shape_cast %48 : vector<8xf32> to vector<8x1xf32>
    %50 = tpu.reciprocal %49 {approx = true} : vector<8x1xf32> -> vector<8x1xf32>
    %51 = vector.broadcast %50 : vector<8x1xf32> to vector<8x8xf32>
    %52 = arith.mulf %47, %51 : vector<8x8xf32>
    %53 = arith.truncf %52 : vector<8x8xf32> to vector<8x8xbf16>
    %cst_17 = arith.constant dense<0.000000e+00> : vector<8x8xf32>
    %54 = tpu.matmul %53, %38, %cst_17 {dimension_numbers = #tpu.dot_dimension_numbers<[1], [0], [0], [1], [0, 0, 1, 1], [], []>} : vector<8x8xbf16>, vector<8x8xbf16>, vector<8x8xf32> -> vector<8x8xf32>
    %55 = vector.extract_strided_slice %8 {offsets = [0, 16], sizes = [8, 8], strides = [1, 1]} : vector<8x32xf32> to vector<8x8xf32>
    %56 = arith.truncf %55 : vector<8x8xf32> to vector<8x8xbf16>
    %57 = vector.extract_strided_slice %9 {offsets = [0, 16], sizes = [8, 8], strides = [1, 1]} : vector<8x64xf32> to vector<8x8xf32>
    %58 = arith.truncf %57 : vector<8x8xf32> to vector<8x8xbf16>
    %59 = vector.extract_strided_slice %9 {offsets = [0, 48], sizes = [8, 8], strides = [1, 1]} : vector<8x64xf32> to vector<8x8xf32>
    %60 = arith.truncf %59 : vector<8x8xf32> to vector<8x8xbf16>
    "tpu.trace_start"() <{level = 10 : i32, message = "qd,kd->qk"}> : () -> ()
    %cst_18 = arith.constant dense<0.000000e+00> : vector<8x8xf32>
    %61 = tpu.matmul %56, %58, %cst_18 {dimension_numbers = #tpu.dot_dimension_numbers<[1], [1], [0], [0], [0, 0, 1, 0], [], []>} : vector<8x8xbf16>, vector<8x8xbf16>, vector<8x8xf32> -> vector<8x8xf32>
    "tpu.trace_stop"() : () -> ()
    %cst_19 = arith.constant 0.353553385 : f32
    %62 = vector.broadcast %cst_19 : f32 to vector<8x8xf32>
    %63 = arith.mulf %61, %62 : vector<8x8xf32>
    %64 = arith.addf %63, %10 : vector<8x8xf32>
    %cst_20 = arith.constant dense<0xFF800000> : vector<8xf32>
    %65 = vector.multi_reduction <maximumf>, %64, %cst_20 [1] : vector<8x8xf32> to vector<8xf32>
    %66 = vector.shape_cast %65 : vector<8xf32> to vector<8x1xf32>
    %67 = vector.broadcast %66 : vector<8x1xf32> to vector<8x8xf32>
    %68 = arith.subf %64, %67 : vector<8x8xf32>
    %69 = math.exp %68 : vector<8x8xf32>
    %cst_21 = arith.constant dense<0.000000e+00> : vector<8xf32>
    %70 = vector.multi_reduction <add>, %69, %cst_21 [1] : vector<8x8xf32> to vector<8xf32>
    %71 = vector.shape_cast %70 : vector<8xf32> to vector<8x1xf32>
    %72 = tpu.reciprocal %71 {approx = true} : vector<8x1xf32> -> vector<8x1xf32>
    %73 = vector.broadcast %72 : vector<8x1xf32> to vector<8x8xf32>
    %74 = arith.mulf %69, %73 : vector<8x8xf32>
    %75 = arith.truncf %74 : vector<8x8xf32> to vector<8x8xbf16>
    %cst_22 = arith.constant dense<0.000000e+00> : vector<8x8xf32>
    %76 = tpu.matmul %75, %60, %cst_22 {dimension_numbers = #tpu.dot_dimension_numbers<[1], [0], [0], [1], [0, 0, 1, 1], [], []>} : vector<8x8xbf16>, vector<8x8xbf16>, vector<8x8xf32> -> vector<8x8xf32>
    %77 = vector.extract_strided_slice %8 {offsets = [0, 24], sizes = [8, 8], strides = [1, 1]} : vector<8x32xf32> to vector<8x8xf32>
    %78 = arith.truncf %77 : vector<8x8xf32> to vector<8x8xbf16>
    %79 = vector.extract_strided_slice %9 {offsets = [0, 24], sizes = [8, 8], strides = [1, 1]} : vector<8x64xf32> to vector<8x8xf32>
    %80 = arith.truncf %79 : vector<8x8xf32> to vector<8x8xbf16>
    %81 = vector.extract_strided_slice %9 {offsets = [0, 56], sizes = [8, 8], strides = [1, 1]} : vector<8x64xf32> to vector<8x8xf32>
    %82 = arith.truncf %81 : vector<8x8xf32> to vector<8x8xbf16>
    "tpu.trace_start"() <{level = 10 : i32, message = "qd,kd->qk"}> : () -> ()
    %cst_23 = arith.constant dense<0.000000e+00> : vector<8x8xf32>
    %83 = tpu.matmul %78, %80, %cst_23 {dimension_numbers = #tpu.dot_dimension_numbers<[1], [1], [0], [0], [0, 0, 1, 0], [], []>} : vector<8x8xbf16>, vector<8x8xbf16>, vector<8x8xf32> -> vector<8x8xf32>
    "tpu.trace_stop"() : () -> ()
    %cst_24 = arith.constant 0.353553385 : f32
    %84 = vector.broadcast %cst_24 : f32 to vector<8x8xf32>
    %85 = arith.mulf %83, %84 : vector<8x8xf32>
    %86 = arith.addf %85, %10 : vector<8x8xf32>
    %cst_25 = arith.constant dense<0xFF800000> : vector<8xf32>
    %87 = vector.multi_reduction <maximumf>, %86, %cst_25 [1] : vector<8x8xf32> to vector<8xf32>
    %88 = vector.shape_cast %87 : vector<8xf32> to vector<8x1xf32>
    %89 = vector.broadcast %88 : vector<8x1xf32> to vector<8x8xf32>
    %90 = arith.subf %86, %89 : vector<8x8xf32>
    %91 = math.exp %90 : vector<8x8xf32>
    %cst_26 = arith.constant dense<0.000000e+00> : vector<8xf32>
    %92 = vector.multi_reduction <add>, %91, %cst_26 [1] : vector<8x8xf32> to vector<8xf32>
    %93 = vector.shape_cast %92 : vector<8xf32> to vector<8x1xf32>
    %94 = tpu.reciprocal %93 {approx = true} : vector<8x1xf32> -> vector<8x1xf32>
    %95 = vector.broadcast %94 : vector<8x1xf32> to vector<8x8xf32>
    %96 = arith.mulf %91, %95 : vector<8x8xf32>
    %97 = arith.truncf %96 : vector<8x8xf32> to vector<8x8xbf16>
    %cst_27 = arith.constant dense<0.000000e+00> : vector<8x8xf32>
    %98 = tpu.matmul %97, %82, %cst_27 {dimension_numbers = #tpu.dot_dimension_numbers<[1], [0], [0], [1], [0, 0, 1, 1], [], []>} : vector<8x8xbf16>, vector<8x8xbf16>, vector<8x8xf32> -> vector<8x8xf32>
    %99 = tpu.concatenate %32, %54, %76, %98 in 1 : vector<8x8xf32>, vector<8x8xf32>, vector<8x8xf32>, vector<8x8xf32> -> vector<8x32xf32>
    %100 = arith.truncf %99 : vector<8x32xf32> to vector<8x32xbf16>
    %c0_28 = arith.constant 0 : index
    %c0_29 = arith.constant 0 : index
    %101 = vector.load %arg5[%c0_28, %c0_29] : memref<32x32xbf16, #tpu.memory_space<vmem>>, vector<32x32xbf16>
    %cst_30 = arith.constant dense<0.000000e+00> : vector<8x32xf32>
    %102 = tpu.matmul %100, %101, %cst_30 {dimension_numbers = #tpu.dot_dimension_numbers<[1], [0], [0], [1], [0, 0, 1, 1], [], []>} : vector<8x32xbf16>, vector<32x32xbf16>, vector<8x32xf32> -> vector<8x32xf32>
    %c0_31 = arith.constant 0 : index
    %c0_32 = arith.constant 0 : index
    %103 = vector.load %arg6[%c0_31, %c0_32] : memref<1x32xf32, #tpu.memory_space<vmem>>, vector<1x32xf32>
    %104 = vector.broadcast %103 : vector<1x32xf32> to vector<8x32xf32>
    %105 = arith.addf %102, %104 : vector<8x32xf32>
    %106 = arith.addf %105, %1 : vector<8x32xf32>
    %c0_33 = arith.constant 0 : index
    %c0_34 = arith.constant 0 : index
    %107 = vector.load %arg7[%c0_33, %c0_34] : memref<1x32xf32, #tpu.memory_space<vmem>>, vector<1x32xf32>
    %c0_35 = arith.constant 0 : index
    %c0_36 = arith.constant 0 : index
    %108 = vector.load %arg8[%c0_35, %c0_36] : memref<1x32xf32, #tpu.memory_space<vmem>>, vector<1x32xf32>
    %cst_37 = arith.constant dense<0.000000e+00> : vector<8xf32>
    %109 = vector.multi_reduction <add>, %106, %cst_37 [1] : vector<8x32xf32> to vector<8xf32>
    %110 = vector.shape_cast %109 : vector<8xf32> to vector<8x1xf32>
    %cst_38 = arith.constant 3.200000e+01 : f32
    %111 = vector.broadcast %cst_38 : f32 to vector<8x1xf32>
    %112 = arith.divf %110, %111 : vector<8x1xf32>
    %113 = vector.broadcast %112 : vector<8x1xf32> to vector<8x32xf32>
    %114 = arith.subf %106, %113 : vector<8x32xf32>
    %115 = arith.mulf %114, %114 : vector<8x32xf32>
    %cst_39 = arith.constant dense<0.000000e+00> : vector<8xf32>
    %116 = vector.multi_reduction <add>, %115, %cst_39 [1] : vector<8x32xf32> to vector<8xf32>
    %117 = vector.shape_cast %116 : vector<8xf32> to vector<8x1xf32>
    %cst_40 = arith.constant 3.200000e+01 : f32
    %118 = vector.broadcast %cst_40 : f32 to vector<8x1xf32>
    %119 = arith.divf %117, %118 : vector<8x1xf32>
    %120 = vector.broadcast %112 : vector<8x1xf32> to vector<8x32xf32>
    %121 = arith.subf %106, %120 : vector<8x32xf32>
    %cst_41 = arith.constant 9.99999974E-6 : f32
    %122 = vector.broadcast %cst_41 : f32 to vector<8x1xf32>
    %123 = arith.addf %119, %122 : vector<8x1xf32>
    %124 = math.rsqrt %123 : vector<8x1xf32>
    %125 = vector.broadcast %124 : vector<8x1xf32> to vector<8x32xf32>
    %126 = arith.mulf %121, %125 : vector<8x32xf32>
    %127 = vector.broadcast %107 : vector<1x32xf32> to vector<8x32xf32>
    %128 = arith.mulf %126, %127 : vector<8x32xf32>
    %129 = vector.broadcast %108 : vector<1x32xf32> to vector<8x32xf32>
    %130 = arith.addf %128, %129 : vector<8x32xf32>
    %131 = arith.truncf %130 : vector<8x32xf32> to vector<8x32xbf16>
    %c0_42 = arith.constant 0 : index
    %c0_43 = arith.constant 0 : index
    %132 = vector.load %arg9[%c0_42, %c0_43] : memref<32x64xbf16, #tpu.memory_space<vmem>>, vector<32x64xbf16>
    %cst_44 = arith.constant dense<0.000000e+00> : vector<8x64xf32>
    %133 = tpu.matmul %131, %132, %cst_44 {dimension_numbers = #tpu.dot_dimension_numbers<[1], [0], [0], [1], [0, 0, 1, 1], [], []>} : vector<8x32xbf16>, vector<32x64xbf16>, vector<8x64xf32> -> vector<8x64xf32>
    %c0_45 = arith.constant 0 : index
    %c0_46 = arith.constant 0 : index
    %134 = vector.load %arg10[%c0_45, %c0_46] : memref<1x64xf32, #tpu.memory_space<vmem>>, vector<1x64xf32>
    %135 = vector.broadcast %134 : vector<1x64xf32> to vector<8x64xf32>
    %136 = arith.addf %133, %135 : vector<8x64xf32>
    %cst_47 = arith.constant 0.000000e+00 : f32
    %137 = vector.broadcast %cst_47 : f32 to vector<8x64xf32>
    %138 = arith.maximumf %136, %137 : vector<8x64xf32>
    %139 = arith.truncf %138 : vector<8x64xf32> to vector<8x64xbf16>
    %c0_48 = arith.constant 0 : index
    %c0_49 = arith.constant 0 : index
    %140 = vector.load %arg11[%c0_48, %c0_49] : memref<64x32xbf16, #tpu.memory_space<vmem>>, vector<64x32xbf16>
    %cst_50 = arith.constant dense<0.000000e+00> : vector<8x32xf32>
    %141 = tpu.matmul %139, %140, %cst_50 {dimension_numbers = #tpu.dot_dimension_numbers<[1], [0], [0], [1], [0, 0, 1, 1], [], []>} : vector<8x64xbf16>, vector<64x32xbf16>, vector<8x32xf32> -> vector<8x32xf32>
    %c0_51 = arith.constant 0 : index
    %c0_52 = arith.constant 0 : index
    %142 = vector.load %arg12[%c0_51, %c0_52] : memref<1x32xf32, #tpu.memory_space<vmem>>, vector<1x32xf32>
    %143 = vector.broadcast %142 : vector<1x32xf32> to vector<8x32xf32>
    %144 = arith.addf %141, %143 : vector<8x32xf32>
    %145 = arith.addf %144, %130 : vector<8x32xf32>
    %c0_53 = arith.constant 0 : index
    %c0_54 = arith.constant 0 : index
    %146 = vector.load %arg13[%c0_53, %c0_54] : memref<1x32xf32, #tpu.memory_space<vmem>>, vector<1x32xf32>
    %c0_55 = arith.constant 0 : index
    %c0_56 = arith.constant 0 : index
    %147 = vector.load %arg14[%c0_55, %c0_56] : memref<1x32xf32, #tpu.memory_space<vmem>>, vector<1x32xf32>
    %cst_57 = arith.constant dense<0.000000e+00> : vector<8xf32>
    %148 = vector.multi_reduction <add>, %145, %cst_57 [1] : vector<8x32xf32> to vector<8xf32>
    %149 = vector.shape_cast %148 : vector<8xf32> to vector<8x1xf32>
    %cst_58 = arith.constant 3.200000e+01 : f32
    %150 = vector.broadcast %cst_58 : f32 to vector<8x1xf32>
    %151 = arith.divf %149, %150 : vector<8x1xf32>
    %152 = vector.broadcast %151 : vector<8x1xf32> to vector<8x32xf32>
    %153 = arith.subf %145, %152 : vector<8x32xf32>
    %154 = arith.mulf %153, %153 : vector<8x32xf32>
    %cst_59 = arith.constant dense<0.000000e+00> : vector<8xf32>
    %155 = vector.multi_reduction <add>, %154, %cst_59 [1] : vector<8x32xf32> to vector<8xf32>
    %156 = vector.shape_cast %155 : vector<8xf32> to vector<8x1xf32>
    %cst_60 = arith.constant 3.200000e+01 : f32
    %157 = vector.broadcast %cst_60 : f32 to vector<8x1xf32>
    %158 = arith.divf %156, %157 : vector<8x1xf32>
    %159 = vector.broadcast %151 : vector<8x1xf32> to vector<8x32xf32>
    %160 = arith.subf %145, %159 : vector<8x32xf32>
    %cst_61 = arith.constant 9.99999974E-6 : f32
    %161 = vector.broadcast %cst_61 : f32 to vector<8x1xf32>
    %162 = arith.addf %158, %161 : vector<8x1xf32>
    %163 = math.rsqrt %162 : vector<8x1xf32>
    %164 = vector.broadcast %163 : vector<8x1xf32> to vector<8x32xf32>
    %165 = arith.mulf %160, %164 : vector<8x32xf32>
    %166 = vector.broadcast %146 : vector<1x32xf32> to vector<8x32xf32>
    %167 = arith.mulf %165, %166 : vector<8x32xf32>
    %168 = vector.broadcast %147 : vector<1x32xf32> to vector<8x32xf32>
    %169 = arith.addf %167, %168 : vector<8x32xf32>
    %c0_62 = arith.constant 0 : index
    %c0_63 = arith.constant 0 : index
    %c0_64 = arith.constant 0 : index
    %170 = vector.load %arg15[%c0_62, %c0_63, %c0_64] : memref<1x8x32xf32, #tpu.memory_space<vmem>>, vector<1x8x32xf32>
    %171 = vector.shape_cast %170 : vector<1x8x32xf32> to vector<8x32xf32>
    %172 = vector.shape_cast %169 : vector<8x32xf32> to vector<1x8x32xf32>
    tpu.vector_store %arg15[%c0_62, %c0_63, %c0_64], %172 {strides = array<i32>} : memref<1x8x32xf32, #tpu.memory_space<vmem>>, vector<1x8x32xf32>,
    return
  }
  func.func @transform_0(%arg0: i32) -> (i32, i32, i32) {
    %c0_i32 = arith.constant 0 : i32
    %c0_i32_0 = arith.constant 0 : i32
    %c0_i32_1 = arith.constant 0 : i32
    return %arg0, %c0_i32, %c0_i32_0 : i32, i32, i32
  }
  func.func @transform_1(%arg0: i32) -> (i32, i32) {
    %c0_i32 = arith.constant 0 : i32
    %c0_i32_0 = arith.constant 0 : i32
    %c0_i32_1 = arith.constant 0 : i32
    return %c0_i32, %c0_i32_0 : i32, i32
  }
  func.func @transform_2(%arg0: i32) -> (i32, i32) {
    %c0_i32 = arith.constant 0 : i32
    %c0_i32_0 = arith.constant 0 : i32
    %c0_i32_1 = arith.constant 0 : i32
    return %c0_i32, %c0_i32_0 : i32, i32
  }
  func.func @transform_3(%arg0: i32) -> (i32, i32) {
    %c0_i32 = arith.constant 0 : i32
    %c0_i32_0 = arith.constant 0 : i32
    %c0_i32_1 = arith.constant 0 : i32
    return %c0_i32, %c0_i32_0 : i32, i32
  }
  func.func @transform_4(%arg0: i32) -> (i32, i32) {
    %c0_i32 = arith.constant 0 : i32
    %c0_i32_0 = arith.constant 0 : i32
    %c0_i32_1 = arith.constant 0 : i32
    return %c0_i32, %c0_i32_0 : i32, i32
  }
  func.func @transform_5(%arg0: i32) -> (i32, i32) {
    %c0_i32 = arith.constant 0 : i32
    %c0_i32_0 = arith.constant 0 : i32
    %c0_i32_1 = arith.constant 0 : i32
    return %c0_i32, %c0_i32_0 : i32, i32
  }
  func.func @transform_6(%arg0: i32) -> (i32, i32) {
    %c0_i32 = arith.constant 0 : i32
    %c0_i32_0 = arith.constant 0 : i32
    %c0_i32_1 = arith.constant 0 : i32
    return %c0_i32, %c0_i32_0 : i32, i32
  }
  func.func @transform_7(%arg0: i32) -> (i32, i32) {
    %c0_i32 = arith.constant 0 : i32
    %c0_i32_0 = arith.constant 0 : i32
    %c0_i32_1 = arith.constant 0 : i32
    return %c0_i32, %c0_i32_0 : i32, i32
  }
  func.func @transform_8(%arg0: i32) -> (i32, i32) {
    %c0_i32 = arith.constant 0 : i32
    %c0_i32_0 = arith.constant 0 : i32
    %c0_i32_1 = arith.constant 0 : i32
    return %c0_i32, %c0_i32_0 : i32, i32
  }
  func.func @transform_9(%arg0: i32) -> (i32, i32) {
    %c0_i32 = arith.constant 0 : i32
    %c0_i32_0 = arith.constant 0 : i32
    %c0_i32_1 = arith.constant 0 : i32
    return %c0_i32, %c0_i32_0 : i32, i32
  }
  func.func @transform_10(%arg0: i32) -> (i32, i32) {
    %c0_i32 = arith.constant 0 : i32
    %c0_i32_0 = arith.constant 0 : i32
    %c0_i32_1 = arith.constant 0 : i32
    return %c0_i32, %c0_i32_0 : i32, i32
  }
  func.func @transform_11(%arg0: i32) -> (i32, i32) {
    %c0_i32 = arith.constant 0 : i32
    %c0_i32_0 = arith.constant 0 : i32
    %c0_i32_1 = arith.constant 0 : i32
    return %c0_i32, %c0_i32_0 : i32, i32
  }
  func.func @transform_12(%arg0: i32) -> (i32, i32) {
    %c0_i32 = arith.constant 0 : i32
    %c0_i32_0 = arith.constant 0 : i32
    %c0_i32_1 = arith.constant 0 : i32
    return %c0_i32, %c0_i32_0 : i32, i32
  }
  func.func @transform_13(%arg0: i32) -> (i32, i32) {
    %c0_i32 = arith.constant 0 : i32
    %c0_i32_0 = arith.constant 0 : i32
    %c0_i32_1 = arith.constant 0 : i32
    return %c0_i32, %c0_i32_0 : i32, i32
  }
  func.func @transform_14(%arg0: i32) -> (i32, i32, i32) {
    %c0_i32 = arith.constant 0 : i32
    %c0_i32_0 = arith.constant 0 : i32
    %c0_i32_1 = arith.constant 0 : i32
    return %arg0, %c0_i32, %c0_i32_0 : i32, i32, i32
  }
}

module attributes {stable_mosaic.version = 11 : i64} {
  func.func @_decode_softmax_kernel(%arg0: i32, %arg1: i32, %arg2: memref<1x8x32xf32, #tpu.memory_space<vmem>>, %arg3: memref<32x50xbf16, #tpu.memory_space<vmem>>, %arg4: memref<1x50xf32, #tpu.memory_space<vmem>>, %arg5: memref<1x8x50xf32, #tpu.memory_space<vmem>>) attributes {dimension_semantics = [#tpu.dimension_semantics<parallel>, #tpu.dimension_semantics<parallel>], iteration_bounds = array<i64: 2, 1>, scalar_prefetch = 0 : i64, scratch_operands = 0 : i64, tpu.core_type = #tpu.core_type<tc>, window_params = [{transform_indices = @transform_0, window_bounds = array<i64: 1, 8, 32>}, {transform_indices = @transform_1, window_bounds = array<i64: 32, 50>}, {transform_indices = @transform_2, window_bounds = array<i64: 1, 50>}, {transform_indices = @transform_3, window_bounds = array<i64: 1, 8, 50>}]} {
    %c0 = arith.constant 0 : index
    %c0_0 = arith.constant 0 : index
    %c0_1 = arith.constant 0 : index
    %0 = vector.load %arg2[%c0, %c0_0, %c0_1] : memref<1x8x32xf32, #tpu.memory_space<vmem>>, vector<1x8x32xf32>
    %1 = vector.shape_cast %0 : vector<1x8x32xf32> to vector<8x32xf32>
    %2 = arith.truncf %1 : vector<8x32xf32> to vector<8x32xbf16>
    %c0_2 = arith.constant 0 : index
    %c0_3 = arith.constant 0 : index
    %3 = vector.load %arg3[%c0_2, %c0_3] : memref<32x50xbf16, #tpu.memory_space<vmem>>, vector<32x50xbf16>
    %cst = arith.constant dense<0.000000e+00> : vector<8x50xf32>
    %4 = tpu.matmul %2, %3, %cst {dimension_numbers = #tpu.dot_dimension_numbers<[1], [0], [0], [1], [0, 0, 1, 1], [], []>} : vector<8x32xbf16>, vector<32x50xbf16>, vector<8x50xf32> -> vector<8x50xf32>
    %c0_4 = arith.constant 0 : index
    %c0_5 = arith.constant 0 : index
    %5 = vector.load %arg4[%c0_4, %c0_5] : memref<1x50xf32, #tpu.memory_space<vmem>>, vector<1x50xf32>
    %6 = vector.broadcast %5 : vector<1x50xf32> to vector<8x50xf32>
    %7 = arith.addf %4, %6 : vector<8x50xf32>
    %cst_6 = arith.constant dense<0xFF800000> : vector<50xf32>
    %8 = vector.multi_reduction <maximumf>, %7, %cst_6 [0] : vector<8x50xf32> to vector<50xf32>
    %9 = vector.shape_cast %8 : vector<50xf32> to vector<1x50xf32>
    %10 = vector.broadcast %9 : vector<1x50xf32> to vector<8x50xf32>
    %11 = arith.subf %7, %10 : vector<8x50xf32>
    %12 = math.exp %11 : vector<8x50xf32>
    %cst_7 = arith.constant dense<0.000000e+00> : vector<50xf32>
    %13 = vector.multi_reduction <add>, %12, %cst_7 [0] : vector<8x50xf32> to vector<50xf32>
    %14 = vector.shape_cast %13 : vector<50xf32> to vector<1x50xf32>
    %15 = vector.broadcast %14 : vector<1x50xf32> to vector<8x50xf32>
    %16 = arith.divf %12, %15 : vector<8x50xf32>
    %c0_8 = arith.constant 0 : index
    %c0_9 = arith.constant 0 : index
    %c0_10 = arith.constant 0 : index
    %17 = vector.load %arg5[%c0_8, %c0_9, %c0_10] : memref<1x8x50xf32, #tpu.memory_space<vmem>>, vector<1x8x50xf32>
    %18 = vector.shape_cast %17 : vector<1x8x50xf32> to vector<8x50xf32>
    %19 = vector.shape_cast %16 : vector<8x50xf32> to vector<1x8x50xf32>
    tpu.vector_store %arg5[%c0_8, %c0_9, %c0_10], %19 {strides = array<i32>} : memref<1x8x50xf32, #tpu.memory_space<vmem>>, vector<1x8x50xf32>,
    return
  }
  func.func @transform_0(%arg0: i32, %arg1: i32) -> (i32, i32, i32) {
    %c0_i32 = arith.constant 0 : i32
    %c0_i32_0 = arith.constant 0 : i32
    %c0_i32_1 = arith.constant 0 : i32
    return %arg0, %c0_i32, %c0_i32_0 : i32, i32, i32
  }
  func.func @transform_1(%arg0: i32, %arg1: i32) -> (i32, i32) {
    %c0_i32 = arith.constant 0 : i32
    %c0_i32_0 = arith.constant 0 : i32
    return %c0_i32, %arg1 : i32, i32
  }
  func.func @transform_2(%arg0: i32, %arg1: i32) -> (i32, i32) {
    %c0_i32 = arith.constant 0 : i32
    %c0_i32_0 = arith.constant 0 : i32
    return %c0_i32, %arg1 : i32, i32
  }
  func.func @transform_3(%arg0: i32, %arg1: i32) -> (i32, i32, i32) {
    %c0_i32 = arith.constant 0 : i32
    %c0_i32_0 = arith.constant 0 : i32
    return %arg0, %c0_i32, %arg1 : i32, i32, i32
  }
}

module attributes {stable_mosaic.version = 11 : i64} {
  func.func @_decoder_layer_kernel(%arg0: i32, %arg1: memref<1x8x32xf32, #tpu.memory_space<vmem>>, %arg2: memref<1x8x32xf32, #tpu.memory_space<vmem>>, %arg3: memref<8x8xf32, #tpu.memory_space<vmem>>, %arg4: memref<32x96xbf16, #tpu.memory_space<vmem>>, %arg5: memref<1x96xf32, #tpu.memory_space<vmem>>, %arg6: memref<32x32xbf16, #tpu.memory_space<vmem>>, %arg7: memref<1x32xf32, #tpu.memory_space<vmem>>, %arg8: memref<1x32xf32, #tpu.memory_space<vmem>>, %arg9: memref<1x32xf32, #tpu.memory_space<vmem>>, %arg10: memref<32x32xbf16, #tpu.memory_space<vmem>>, %arg11: memref<1x32xf32, #tpu.memory_space<vmem>>, %arg12: memref<32x64xbf16, #tpu.memory_space<vmem>>, %arg13: memref<1x64xf32, #tpu.memory_space<vmem>>, %arg14: memref<32x32xbf16, #tpu.memory_space<vmem>>, %arg15: memref<1x32xf32, #tpu.memory_space<vmem>>, %arg16: memref<1x32xf32, #tpu.memory_space<vmem>>, %arg17: memref<1x32xf32, #tpu.memory_space<vmem>>, %arg18: memref<32x64xbf16, #tpu.memory_space<vmem>>, %arg19: memref<1x64xf32, #tpu.memory_space<vmem>>, %arg20: memref<64x32xbf16, #tpu.memory_space<vmem>>, %arg21: memref<1x32xf32, #tpu.memory_space<vmem>>, %arg22: memref<1x32xf32, #tpu.memory_space<vmem>>, %arg23: memref<1x32xf32, #tpu.memory_space<vmem>>, %arg24: memref<1x8x32xf32, #tpu.memory_space<vmem>>) attributes {dimension_semantics = [#tpu.dimension_semantics<parallel>], iteration_bounds = array<i64: 2>, scalar_prefetch = 0 : i64, scratch_operands = 0 : i64, tpu.core_type = #tpu.core_type<tc>, window_params = [{transform_indices = @transform_0, window_bounds = array<i64: 1, 8, 32>}, {transform_indices = @transform_1, window_bounds = array<i64: 1, 8, 32>}, {pipeline_mode = #tpu.pipeline_mode<synchronous>, transform_indices = @transform_2, window_bounds = array<i64: 8, 8>}, {pipeline_mode = #tpu.pipeline_mode<synchronous>, transform_indices = @transform_3, window_bounds = array<i64: 32, 96>}, {pipeline_mode = #tpu.pipeline_mode<synchronous>, transform_indices = @transform_4, window_bounds = array<i64: 1, 96>}, {pipeline_mode = #tpu.pipeline_mode<synchronous>, transform_indices = @transform_5, window_bounds = array<i64: 32, 32>}, {pipeline_mode = #tpu.pipeline_mode<synchronous>, transform_indices = @transform_6, window_bounds = array<i64: 1, 32>}, {pipeline_mode = #tpu.pipeline_mode<synchronous>, transform_indices = @transform_7, window_bounds = array<i64: 1, 32>}, {pipeline_mode = #tpu.pipeline_mode<synchronous>, transform_indices = @transform_8, window_bounds = array<i64: 1, 32>}, {pipeline_mode = #tpu.pipeline_mode<synchronous>, transform_indices = @transform_9, window_bounds = array<i64: 32, 32>}, {pipeline_mode = #tpu.pipeline_mode<synchronous>, transform_indices = @transform_10, window_bounds = array<i64: 1, 32>}, {pipeline_mode = #tpu.pipeline_mode<synchronous>, transform_indices = @transform_11, window_bounds = array<i64: 32, 64>}, {pipeline_mode = #tpu.pipeline_mode<synchronous>, transform_indices = @transform_12, window_bounds = array<i64: 1, 64>}, {pipeline_mode = #tpu.pipeline_mode<synchronous>, transform_indices = @transform_13, window_bounds = array<i64: 32, 32>}, {pipeline_mode = #tpu.pipeline_mode<synchronous>, transform_indices = @transform_14, window_bounds = array<i64: 1, 32>}, {pipeline_mode = #tpu.pipeline_mode<synchronous>, transform_indices = @transform_15, window_bounds = array<i64: 1, 32>}, {pipeline_mode = #tpu.pipeline_mode<synchronous>, transform_indices = @transform_16, window_bounds = array<i64: 1, 32>}, {pipeline_mode = #tpu.pipeline_mode<synchronous>, transform_indices = @transform_17, window_bounds = array<i64: 32, 64>}, {pipeline_mode = #tpu.pipeline_mode<synchronous>, transform_indices = @transform_18, window_bounds = array<i64: 1, 64>}, {pipeline_mode = #tpu.pipeline_mode<synchronous>, transform_indices = @transform_19, window_bounds = array<i64: 64, 32>}, {pipeline_mode = #tpu.pipeline_mode<synchronous>, transform_indices = @transform_20, window_bounds = array<i64: 1, 32>}, {pipeline_mode = #tpu.pipeline_mode<synchronous>, transform_indices = @transform_21, window_bounds = array<i64: 1, 32>}, {pipeline_mode = #tpu.pipeline_mode<synchronous>, transform_indices = @transform_22, window_bounds = array<i64: 1, 32>}, {transform_indices = @transform_23, window_bounds = array<i64: 1, 8, 32>}]} {
    %c0 = arith.constant 0 : index
    %c0_0 = arith.constant 0 : index
    %c0_1 = arith.constant 0 : index
    %0 = vector.load %arg1[%c0, %c0_0, %c0_1] : memref<1x8x32xf32, #tpu.memory_space<vmem>>, vector<1x8x32xf32>
    %1 = vector.shape_cast %0 : vector<1x8x32xf32> to vector<8x32xf32>
    %c0_2 = arith.constant 0 : index
    %c0_3 = arith.constant 0 : index
    %c0_4 = arith.constant 0 : index
    %2 = vector.load %arg2[%c0_2, %c0_3, %c0_4] : memref<1x8x32xf32, #tpu.memory_space<vmem>>, vector<1x8x32xf32>
    %3 = vector.shape_cast %2 : vector<1x8x32xf32> to vector<8x32xf32>
    %4 = arith.truncf %1 : vector<8x32xf32> to vector<8x32xbf16>
    %c0_5 = arith.constant 0 : index
    %c0_6 = arith.constant 0 : index
    %5 = vector.load %arg4[%c0_5, %c0_6] : memref<32x96xbf16, #tpu.memory_space<vmem>>, vector<32x96xbf16>
    %cst = arith.constant dense<0.000000e+00> : vector<8x96xf32>
    %6 = tpu.matmul %4, %5, %cst {dimension_numbers = #tpu.dot_dimension_numbers<[1], [0], [0], [1], [0, 0, 1, 1], [], []>} : vector<8x32xbf16>, vector<32x96xbf16>, vector<8x96xf32> -> vector<8x96xf32>
    %c0_7 = arith.constant 0 : index
    %c0_8 = arith.constant 0 : index
    %7 = vector.load %arg5[%c0_7, %c0_8] : memref<1x96xf32, #tpu.memory_space<vmem>>, vector<1x96xf32>
    %8 = vector.broadcast %7 : vector<1x96xf32> to vector<8x96xf32>
    %9 = arith.addf %6, %8 : vector<8x96xf32>
    %10 = vector.extract_strided_slice %9 {offsets = [0, 0], sizes = [8, 32], strides = [1, 1]} : vector<8x96xf32> to vector<8x32xf32>
    %11 = vector.extract_strided_slice %9 {offsets = [0, 32], sizes = [8, 64], strides = [1, 1]} : vector<8x96xf32> to vector<8x64xf32>
    %c0_9 = arith.constant 0 : index
    %c0_10 = arith.constant 0 : index
    %12 = vector.load %arg3[%c0_9, %c0_10] : memref<8x8xf32, #tpu.memory_space<vmem>>, vector<8x8xf32>
    %13 = vector.extract_strided_slice %10 {offsets = [0, 0], sizes = [8, 8], strides = [1, 1]} : vector<8x32xf32> to vector<8x8xf32>
    %14 = arith.truncf %13 : vector<8x8xf32> to vector<8x8xbf16>
    %15 = vector.extract_strided_slice %11 {offsets = [0, 0], sizes = [8, 8], strides = [1, 1]} : vector<8x64xf32> to vector<8x8xf32>
    %16 = arith.truncf %15 : vector<8x8xf32> to vector<8x8xbf16>
    %17 = vector.extract_strided_slice %11 {offsets = [0, 32], sizes = [8, 8], strides = [1, 1]} : vector<8x64xf32> to vector<8x8xf32>
    %18 = arith.truncf %17 : vector<8x8xf32> to vector<8x8xbf16>
    "tpu.trace_start"() <{level = 10 : i32, message = "qd,kd->qk"}> : () -> ()
    %cst_11 = arith.constant dense<0.000000e+00> : vector<8x8xf32>
    %19 = tpu.matmul %14, %16, %cst_11 {dimension_numbers = #tpu.dot_dimension_numbers<[1], [1], [0], [0], [0, 0, 1, 0], [], []>} : vector<8x8xbf16>, vector<8x8xbf16>, vector<8x8xf32> -> vector<8x8xf32>
    "tpu.trace_stop"() : () -> ()
    %cst_12 = arith.constant 0.353553385 : f32
    %20 = vector.broadcast %cst_12 : f32 to vector<8x8xf32>
    %21 = arith.mulf %19, %20 : vector<8x8xf32>
    %22 = arith.addf %21, %12 : vector<8x8xf32>
    %cst_13 = arith.constant dense<0xFF800000> : vector<8xf32>
    %23 = vector.multi_reduction <maximumf>, %22, %cst_13 [1] : vector<8x8xf32> to vector<8xf32>
    %24 = vector.shape_cast %23 : vector<8xf32> to vector<8x1xf32>
    %25 = vector.broadcast %24 : vector<8x1xf32> to vector<8x8xf32>
    %26 = arith.subf %22, %25 : vector<8x8xf32>
    %27 = math.exp %26 : vector<8x8xf32>
    %cst_14 = arith.constant dense<0.000000e+00> : vector<8xf32>
    %28 = vector.multi_reduction <add>, %27, %cst_14 [1] : vector<8x8xf32> to vector<8xf32>
    %29 = vector.shape_cast %28 : vector<8xf32> to vector<8x1xf32>
    %30 = tpu.reciprocal %29 {approx = true} : vector<8x1xf32> -> vector<8x1xf32>
    %31 = vector.broadcast %30 : vector<8x1xf32> to vector<8x8xf32>
    %32 = arith.mulf %27, %31 : vector<8x8xf32>
    %33 = arith.truncf %32 : vector<8x8xf32> to vector<8x8xbf16>
    %cst_15 = arith.constant dense<0.000000e+00> : vector<8x8xf32>
    %34 = tpu.matmul %33, %18, %cst_15 {dimension_numbers = #tpu.dot_dimension_numbers<[1], [0], [0], [1], [0, 0, 1, 1], [], []>} : vector<8x8xbf16>, vector<8x8xbf16>, vector<8x8xf32> -> vector<8x8xf32>
    %35 = vector.extract_strided_slice %10 {offsets = [0, 8], sizes = [8, 8], strides = [1, 1]} : vector<8x32xf32> to vector<8x8xf32>
    %36 = arith.truncf %35 : vector<8x8xf32> to vector<8x8xbf16>
    %37 = vector.extract_strided_slice %11 {offsets = [0, 8], sizes = [8, 8], strides = [1, 1]} : vector<8x64xf32> to vector<8x8xf32>
    %38 = arith.truncf %37 : vector<8x8xf32> to vector<8x8xbf16>
    %39 = vector.extract_strided_slice %11 {offsets = [0, 40], sizes = [8, 8], strides = [1, 1]} : vector<8x64xf32> to vector<8x8xf32>
    %40 = arith.truncf %39 : vector<8x8xf32> to vector<8x8xbf16>
    "tpu.trace_start"() <{level = 10 : i32, message = "qd,kd->qk"}> : () -> ()
    %cst_16 = arith.constant dense<0.000000e+00> : vector<8x8xf32>
    %41 = tpu.matmul %36, %38, %cst_16 {dimension_numbers = #tpu.dot_dimension_numbers<[1], [1], [0], [0], [0, 0, 1, 0], [], []>} : vector<8x8xbf16>, vector<8x8xbf16>, vector<8x8xf32> -> vector<8x8xf32>
    "tpu.trace_stop"() : () -> ()
    %cst_17 = arith.constant 0.353553385 : f32
    %42 = vector.broadcast %cst_17 : f32 to vector<8x8xf32>
    %43 = arith.mulf %41, %42 : vector<8x8xf32>
    %44 = arith.addf %43, %12 : vector<8x8xf32>
    %cst_18 = arith.constant dense<0xFF800000> : vector<8xf32>
    %45 = vector.multi_reduction <maximumf>, %44, %cst_18 [1] : vector<8x8xf32> to vector<8xf32>
    %46 = vector.shape_cast %45 : vector<8xf32> to vector<8x1xf32>
    %47 = vector.broadcast %46 : vector<8x1xf32> to vector<8x8xf32>
    %48 = arith.subf %44, %47 : vector<8x8xf32>
    %49 = math.exp %48 : vector<8x8xf32>
    %cst_19 = arith.constant dense<0.000000e+00> : vector<8xf32>
    %50 = vector.multi_reduction <add>, %49, %cst_19 [1] : vector<8x8xf32> to vector<8xf32>
    %51 = vector.shape_cast %50 : vector<8xf32> to vector<8x1xf32>
    %52 = tpu.reciprocal %51 {approx = true} : vector<8x1xf32> -> vector<8x1xf32>
    %53 = vector.broadcast %52 : vector<8x1xf32> to vector<8x8xf32>
    %54 = arith.mulf %49, %53 : vector<8x8xf32>
    %55 = arith.truncf %54 : vector<8x8xf32> to vector<8x8xbf16>
    %cst_20 = arith.constant dense<0.000000e+00> : vector<8x8xf32>
    %56 = tpu.matmul %55, %40, %cst_20 {dimension_numbers = #tpu.dot_dimension_numbers<[1], [0], [0], [1], [0, 0, 1, 1], [], []>} : vector<8x8xbf16>, vector<8x8xbf16>, vector<8x8xf32> -> vector<8x8xf32>
    %57 = vector.extract_strided_slice %10 {offsets = [0, 16], sizes = [8, 8], strides = [1, 1]} : vector<8x32xf32> to vector<8x8xf32>
    %58 = arith.truncf %57 : vector<8x8xf32> to vector<8x8xbf16>
    %59 = vector.extract_strided_slice %11 {offsets = [0, 16], sizes = [8, 8], strides = [1, 1]} : vector<8x64xf32> to vector<8x8xf32>
    %60 = arith.truncf %59 : vector<8x8xf32> to vector<8x8xbf16>
    %61 = vector.extract_strided_slice %11 {offsets = [0, 48], sizes = [8, 8], strides = [1, 1]} : vector<8x64xf32> to vector<8x8xf32>
    %62 = arith.truncf %61 : vector<8x8xf32> to vector<8x8xbf16>
    "tpu.trace_start"() <{level = 10 : i32, message = "qd,kd->qk"}> : () -> ()
    %cst_21 = arith.constant dense<0.000000e+00> : vector<8x8xf32>
    %63 = tpu.matmul %58, %60, %cst_21 {dimension_numbers = #tpu.dot_dimension_numbers<[1], [1], [0], [0], [0, 0, 1, 0], [], []>} : vector<8x8xbf16>, vector<8x8xbf16>, vector<8x8xf32> -> vector<8x8xf32>
    "tpu.trace_stop"() : () -> ()
    %cst_22 = arith.constant 0.353553385 : f32
    %64 = vector.broadcast %cst_22 : f32 to vector<8x8xf32>
    %65 = arith.mulf %63, %64 : vector<8x8xf32>
    %66 = arith.addf %65, %12 : vector<8x8xf32>
    %cst_23 = arith.constant dense<0xFF800000> : vector<8xf32>
    %67 = vector.multi_reduction <maximumf>, %66, %cst_23 [1] : vector<8x8xf32> to vector<8xf32>
    %68 = vector.shape_cast %67 : vector<8xf32> to vector<8x1xf32>
    %69 = vector.broadcast %68 : vector<8x1xf32> to vector<8x8xf32>
    %70 = arith.subf %66, %69 : vector<8x8xf32>
    %71 = math.exp %70 : vector<8x8xf32>
    %cst_24 = arith.constant dense<0.000000e+00> : vector<8xf32>
    %72 = vector.multi_reduction <add>, %71, %cst_24 [1] : vector<8x8xf32> to vector<8xf32>
    %73 = vector.shape_cast %72 : vector<8xf32> to vector<8x1xf32>
    %74 = tpu.reciprocal %73 {approx = true} : vector<8x1xf32> -> vector<8x1xf32>
    %75 = vector.broadcast %74 : vector<8x1xf32> to vector<8x8xf32>
    %76 = arith.mulf %71, %75 : vector<8x8xf32>
    %77 = arith.truncf %76 : vector<8x8xf32> to vector<8x8xbf16>
    %cst_25 = arith.constant dense<0.000000e+00> : vector<8x8xf32>
    %78 = tpu.matmul %77, %62, %cst_25 {dimension_numbers = #tpu.dot_dimension_numbers<[1], [0], [0], [1], [0, 0, 1, 1], [], []>} : vector<8x8xbf16>, vector<8x8xbf16>, vector<8x8xf32> -> vector<8x8xf32>
    %79 = vector.extract_strided_slice %10 {offsets = [0, 24], sizes = [8, 8], strides = [1, 1]} : vector<8x32xf32> to vector<8x8xf32>
    %80 = arith.truncf %79 : vector<8x8xf32> to vector<8x8xbf16>
    %81 = vector.extract_strided_slice %11 {offsets = [0, 24], sizes = [8, 8], strides = [1, 1]} : vector<8x64xf32> to vector<8x8xf32>
    %82 = arith.truncf %81 : vector<8x8xf32> to vector<8x8xbf16>
    %83 = vector.extract_strided_slice %11 {offsets = [0, 56], sizes = [8, 8], strides = [1, 1]} : vector<8x64xf32> to vector<8x8xf32>
    %84 = arith.truncf %83 : vector<8x8xf32> to vector<8x8xbf16>
    "tpu.trace_start"() <{level = 10 : i32, message = "qd,kd->qk"}> : () -> ()
    %cst_26 = arith.constant dense<0.000000e+00> : vector<8x8xf32>
    %85 = tpu.matmul %80, %82, %cst_26 {dimension_numbers = #tpu.dot_dimension_numbers<[1], [1], [0], [0], [0, 0, 1, 0], [], []>} : vector<8x8xbf16>, vector<8x8xbf16>, vector<8x8xf32> -> vector<8x8xf32>
    "tpu.trace_stop"() : () -> ()
    %cst_27 = arith.constant 0.353553385 : f32
    %86 = vector.broadcast %cst_27 : f32 to vector<8x8xf32>
    %87 = arith.mulf %85, %86 : vector<8x8xf32>
    %88 = arith.addf %87, %12 : vector<8x8xf32>
    %cst_28 = arith.constant dense<0xFF800000> : vector<8xf32>
    %89 = vector.multi_reduction <maximumf>, %88, %cst_28 [1] : vector<8x8xf32> to vector<8xf32>
    %90 = vector.shape_cast %89 : vector<8xf32> to vector<8x1xf32>
    %91 = vector.broadcast %90 : vector<8x1xf32> to vector<8x8xf32>
    %92 = arith.subf %88, %91 : vector<8x8xf32>
    %93 = math.exp %92 : vector<8x8xf32>
    %cst_29 = arith.constant dense<0.000000e+00> : vector<8xf32>
    %94 = vector.multi_reduction <add>, %93, %cst_29 [1] : vector<8x8xf32> to vector<8xf32>
    %95 = vector.shape_cast %94 : vector<8xf32> to vector<8x1xf32>
    %96 = tpu.reciprocal %95 {approx = true} : vector<8x1xf32> -> vector<8x1xf32>
    %97 = vector.broadcast %96 : vector<8x1xf32> to vector<8x8xf32>
    %98 = arith.mulf %93, %97 : vector<8x8xf32>
    %99 = arith.truncf %98 : vector<8x8xf32> to vector<8x8xbf16>
    %cst_30 = arith.constant dense<0.000000e+00> : vector<8x8xf32>
    %100 = tpu.matmul %99, %84, %cst_30 {dimension_numbers = #tpu.dot_dimension_numbers<[1], [0], [0], [1], [0, 0, 1, 1], [], []>} : vector<8x8xbf16>, vector<8x8xbf16>, vector<8x8xf32> -> vector<8x8xf32>
    %101 = tpu.concatenate %34, %56, %78, %100 in 1 : vector<8x8xf32>, vector<8x8xf32>, vector<8x8xf32>, vector<8x8xf32> -> vector<8x32xf32>
    %102 = arith.truncf %101 : vector<8x32xf32> to vector<8x32xbf16>
    %c0_31 = arith.constant 0 : index
    %c0_32 = arith.constant 0 : index
    %103 = vector.load %arg6[%c0_31, %c0_32] : memref<32x32xbf16, #tpu.memory_space<vmem>>, vector<32x32xbf16>
    %cst_33 = arith.constant dense<0.000000e+00> : vector<8x32xf32>
    %104 = tpu.matmul %102, %103, %cst_33 {dimension_numbers = #tpu.dot_dimension_numbers<[1], [0], [0], [1], [0, 0, 1, 1], [], []>} : vector<8x32xbf16>, vector<32x32xbf16>, vector<8x32xf32> -> vector<8x32xf32>
    %c0_34 = arith.constant 0 : index
    %c0_35 = arith.constant 0 : index
    %105 = vector.load %arg7[%c0_34, %c0_35] : memref<1x32xf32, #tpu.memory_space<vmem>>, vector<1x32xf32>
    %106 = vector.broadcast %105 : vector<1x32xf32> to vector<8x32xf32>
    %107 = arith.addf %104, %106 : vector<8x32xf32>
    %108 = arith.addf %107, %1 : vector<8x32xf32>
    %c0_36 = arith.constant 0 : index
    %c0_37 = arith.constant 0 : index
    %109 = vector.load %arg8[%c0_36, %c0_37] : memref<1x32xf32, #tpu.memory_space<vmem>>, vector<1x32xf32>
    %c0_38 = arith.constant 0 : index
    %c0_39 = arith.constant 0 : index
    %110 = vector.load %arg9[%c0_38, %c0_39] : memref<1x32xf32, #tpu.memory_space<vmem>>, vector<1x32xf32>
    %cst_40 = arith.constant dense<0.000000e+00> : vector<8xf32>
    %111 = vector.multi_reduction <add>, %108, %cst_40 [1] : vector<8x32xf32> to vector<8xf32>
    %112 = vector.shape_cast %111 : vector<8xf32> to vector<8x1xf32>
    %cst_41 = arith.constant 3.200000e+01 : f32
    %113 = vector.broadcast %cst_41 : f32 to vector<8x1xf32>
    %114 = arith.divf %112, %113 : vector<8x1xf32>
    %115 = vector.broadcast %114 : vector<8x1xf32> to vector<8x32xf32>
    %116 = arith.subf %108, %115 : vector<8x32xf32>
    %117 = arith.mulf %116, %116 : vector<8x32xf32>
    %cst_42 = arith.constant dense<0.000000e+00> : vector<8xf32>
    %118 = vector.multi_reduction <add>, %117, %cst_42 [1] : vector<8x32xf32> to vector<8xf32>
    %119 = vector.shape_cast %118 : vector<8xf32> to vector<8x1xf32>
    %cst_43 = arith.constant 3.200000e+01 : f32
    %120 = vector.broadcast %cst_43 : f32 to vector<8x1xf32>
    %121 = arith.divf %119, %120 : vector<8x1xf32>
    %122 = vector.broadcast %114 : vector<8x1xf32> to vector<8x32xf32>
    %123 = arith.subf %108, %122 : vector<8x32xf32>
    %cst_44 = arith.constant 9.99999974E-6 : f32
    %124 = vector.broadcast %cst_44 : f32 to vector<8x1xf32>
    %125 = arith.addf %121, %124 : vector<8x1xf32>
    %126 = math.rsqrt %125 : vector<8x1xf32>
    %127 = vector.broadcast %126 : vector<8x1xf32> to vector<8x32xf32>
    %128 = arith.mulf %123, %127 : vector<8x32xf32>
    %129 = vector.broadcast %109 : vector<1x32xf32> to vector<8x32xf32>
    %130 = arith.mulf %128, %129 : vector<8x32xf32>
    %131 = vector.broadcast %110 : vector<1x32xf32> to vector<8x32xf32>
    %132 = arith.addf %130, %131 : vector<8x32xf32>
    %133 = arith.truncf %132 : vector<8x32xf32> to vector<8x32xbf16>
    %c0_45 = arith.constant 0 : index
    %c0_46 = arith.constant 0 : index
    %134 = vector.load %arg10[%c0_45, %c0_46] : memref<32x32xbf16, #tpu.memory_space<vmem>>, vector<32x32xbf16>
    %cst_47 = arith.constant dense<0.000000e+00> : vector<8x32xf32>
    %135 = tpu.matmul %133, %134, %cst_47 {dimension_numbers = #tpu.dot_dimension_numbers<[1], [0], [0], [1], [0, 0, 1, 1], [], []>} : vector<8x32xbf16>, vector<32x32xbf16>, vector<8x32xf32> -> vector<8x32xf32>
    %c0_48 = arith.constant 0 : index
    %c0_49 = arith.constant 0 : index
    %136 = vector.load %arg11[%c0_48, %c0_49] : memref<1x32xf32, #tpu.memory_space<vmem>>, vector<1x32xf32>
    %137 = vector.broadcast %136 : vector<1x32xf32> to vector<8x32xf32>
    %138 = arith.addf %135, %137 : vector<8x32xf32>
    %139 = arith.truncf %3 : vector<8x32xf32> to vector<8x32xbf16>
    %c0_50 = arith.constant 0 : index
    %c0_51 = arith.constant 0 : index
    %140 = vector.load %arg12[%c0_50, %c0_51] : memref<32x64xbf16, #tpu.memory_space<vmem>>, vector<32x64xbf16>
    %cst_52 = arith.constant dense<0.000000e+00> : vector<8x64xf32>
    %141 = tpu.matmul %139, %140, %cst_52 {dimension_numbers = #tpu.dot_dimension_numbers<[1], [0], [0], [1], [0, 0, 1, 1], [], []>} : vector<8x32xbf16>, vector<32x64xbf16>, vector<8x64xf32> -> vector<8x64xf32>
    %c0_53 = arith.constant 0 : index
    %c0_54 = arith.constant 0 : index
    %142 = vector.load %arg13[%c0_53, %c0_54] : memref<1x64xf32, #tpu.memory_space<vmem>>, vector<1x64xf32>
    %143 = vector.broadcast %142 : vector<1x64xf32> to vector<8x64xf32>
    %144 = arith.addf %141, %143 : vector<8x64xf32>
    %145 = vector.extract_strided_slice %138 {offsets = [0, 0], sizes = [8, 8], strides = [1, 1]} : vector<8x32xf32> to vector<8x8xf32>
    %146 = arith.truncf %145 : vector<8x8xf32> to vector<8x8xbf16>
    %147 = vector.extract_strided_slice %144 {offsets = [0, 0], sizes = [8, 8], strides = [1, 1]} : vector<8x64xf32> to vector<8x8xf32>
    %148 = arith.truncf %147 : vector<8x8xf32> to vector<8x8xbf16>
    %149 = vector.extract_strided_slice %144 {offsets = [0, 32], sizes = [8, 8], strides = [1, 1]} : vector<8x64xf32> to vector<8x8xf32>
    %150 = arith.truncf %149 : vector<8x8xf32> to vector<8x8xbf16>
    "tpu.trace_start"() <{level = 10 : i32, message = "qd,kd->qk"}> : () -> ()
    %cst_55 = arith.constant dense<0.000000e+00> : vector<8x8xf32>
    %151 = tpu.matmul %146, %148, %cst_55 {dimension_numbers = #tpu.dot_dimension_numbers<[1], [1], [0], [0], [0, 0, 1, 0], [], []>} : vector<8x8xbf16>, vector<8x8xbf16>, vector<8x8xf32> -> vector<8x8xf32>
    "tpu.trace_stop"() : () -> ()
    %cst_56 = arith.constant 0.353553385 : f32
    %152 = vector.broadcast %cst_56 : f32 to vector<8x8xf32>
    %153 = arith.mulf %151, %152 : vector<8x8xf32>
    %cst_57 = arith.constant dense<0xFF800000> : vector<8xf32>
    %154 = vector.multi_reduction <maximumf>, %153, %cst_57 [1] : vector<8x8xf32> to vector<8xf32>
    %155 = vector.shape_cast %154 : vector<8xf32> to vector<8x1xf32>
    %156 = vector.broadcast %155 : vector<8x1xf32> to vector<8x8xf32>
    %157 = arith.subf %153, %156 : vector<8x8xf32>
    %158 = math.exp %157 : vector<8x8xf32>
    %cst_58 = arith.constant dense<0.000000e+00> : vector<8xf32>
    %159 = vector.multi_reduction <add>, %158, %cst_58 [1] : vector<8x8xf32> to vector<8xf32>
    %160 = vector.shape_cast %159 : vector<8xf32> to vector<8x1xf32>
    %161 = tpu.reciprocal %160 {approx = true} : vector<8x1xf32> -> vector<8x1xf32>
    %162 = vector.broadcast %161 : vector<8x1xf32> to vector<8x8xf32>
    %163 = arith.mulf %158, %162 : vector<8x8xf32>
    %164 = arith.truncf %163 : vector<8x8xf32> to vector<8x8xbf16>
    %cst_59 = arith.constant dense<0.000000e+00> : vector<8x8xf32>
    %165 = tpu.matmul %164, %150, %cst_59 {dimension_numbers = #tpu.dot_dimension_numbers<[1], [0], [0], [1], [0, 0, 1, 1], [], []>} : vector<8x8xbf16>, vector<8x8xbf16>, vector<8x8xf32> -> vector<8x8xf32>
    %166 = vector.extract_strided_slice %138 {offsets = [0, 8], sizes = [8, 8], strides = [1, 1]} : vector<8x32xf32> to vector<8x8xf32>
    %167 = arith.truncf %166 : vector<8x8xf32> to vector<8x8xbf16>
    %168 = vector.extract_strided_slice %144 {offsets = [0, 8], sizes = [8, 8], strides = [1, 1]} : vector<8x64xf32> to vector<8x8xf32>
    %169 = arith.truncf %168 : vector<8x8xf32> to vector<8x8xbf16>
    %170 = vector.extract_strided_slice %144 {offsets = [0, 40], sizes = [8, 8], strides = [1, 1]} : vector<8x64xf32> to vector<8x8xf32>
    %171 = arith.truncf %170 : vector<8x8xf32> to vector<8x8xbf16>
    "tpu.trace_start"() <{level = 10 : i32, message = "qd,kd->qk"}> : () -> ()
    %cst_60 = arith.constant dense<0.000000e+00> : vector<8x8xf32>
    %172 = tpu.matmul %167, %169, %cst_60 {dimension_numbers = #tpu.dot_dimension_numbers<[1], [1], [0], [0], [0, 0, 1, 0], [], []>} : vector<8x8xbf16>, vector<8x8xbf16>, vector<8x8xf32> -> vector<8x8xf32>
    "tpu.trace_stop"() : () -> ()
    %cst_61 = arith.constant 0.353553385 : f32
    %173 = vector.broadcast %cst_61 : f32 to vector<8x8xf32>
    %174 = arith.mulf %172, %173 : vector<8x8xf32>
    %cst_62 = arith.constant dense<0xFF800000> : vector<8xf32>
    %175 = vector.multi_reduction <maximumf>, %174, %cst_62 [1] : vector<8x8xf32> to vector<8xf32>
    %176 = vector.shape_cast %175 : vector<8xf32> to vector<8x1xf32>
    %177 = vector.broadcast %176 : vector<8x1xf32> to vector<8x8xf32>
    %178 = arith.subf %174, %177 : vector<8x8xf32>
    %179 = math.exp %178 : vector<8x8xf32>
    %cst_63 = arith.constant dense<0.000000e+00> : vector<8xf32>
    %180 = vector.multi_reduction <add>, %179, %cst_63 [1] : vector<8x8xf32> to vector<8xf32>
    %181 = vector.shape_cast %180 : vector<8xf32> to vector<8x1xf32>
    %182 = tpu.reciprocal %181 {approx = true} : vector<8x1xf32> -> vector<8x1xf32>
    %183 = vector.broadcast %182 : vector<8x1xf32> to vector<8x8xf32>
    %184 = arith.mulf %179, %183 : vector<8x8xf32>
    %185 = arith.truncf %184 : vector<8x8xf32> to vector<8x8xbf16>
    %cst_64 = arith.constant dense<0.000000e+00> : vector<8x8xf32>
    %186 = tpu.matmul %185, %171, %cst_64 {dimension_numbers = #tpu.dot_dimension_numbers<[1], [0], [0], [1], [0, 0, 1, 1], [], []>} : vector<8x8xbf16>, vector<8x8xbf16>, vector<8x8xf32> -> vector<8x8xf32>
    %187 = vector.extract_strided_slice %138 {offsets = [0, 16], sizes = [8, 8], strides = [1, 1]} : vector<8x32xf32> to vector<8x8xf32>
    %188 = arith.truncf %187 : vector<8x8xf32> to vector<8x8xbf16>
    %189 = vector.extract_strided_slice %144 {offsets = [0, 16], sizes = [8, 8], strides = [1, 1]} : vector<8x64xf32> to vector<8x8xf32>
    %190 = arith.truncf %189 : vector<8x8xf32> to vector<8x8xbf16>
    %191 = vector.extract_strided_slice %144 {offsets = [0, 48], sizes = [8, 8], strides = [1, 1]} : vector<8x64xf32> to vector<8x8xf32>
    %192 = arith.truncf %191 : vector<8x8xf32> to vector<8x8xbf16>
    "tpu.trace_start"() <{level = 10 : i32, message = "qd,kd->qk"}> : () -> ()
    %cst_65 = arith.constant dense<0.000000e+00> : vector<8x8xf32>
    %193 = tpu.matmul %188, %190, %cst_65 {dimension_numbers = #tpu.dot_dimension_numbers<[1], [1], [0], [0], [0, 0, 1, 0], [], []>} : vector<8x8xbf16>, vector<8x8xbf16>, vector<8x8xf32> -> vector<8x8xf32>
    "tpu.trace_stop"() : () -> ()
    %cst_66 = arith.constant 0.353553385 : f32
    %194 = vector.broadcast %cst_66 : f32 to vector<8x8xf32>
    %195 = arith.mulf %193, %194 : vector<8x8xf32>
    %cst_67 = arith.constant dense<0xFF800000> : vector<8xf32>
    %196 = vector.multi_reduction <maximumf>, %195, %cst_67 [1] : vector<8x8xf32> to vector<8xf32>
    %197 = vector.shape_cast %196 : vector<8xf32> to vector<8x1xf32>
    %198 = vector.broadcast %197 : vector<8x1xf32> to vector<8x8xf32>
    %199 = arith.subf %195, %198 : vector<8x8xf32>
    %200 = math.exp %199 : vector<8x8xf32>
    %cst_68 = arith.constant dense<0.000000e+00> : vector<8xf32>
    %201 = vector.multi_reduction <add>, %200, %cst_68 [1] : vector<8x8xf32> to vector<8xf32>
    %202 = vector.shape_cast %201 : vector<8xf32> to vector<8x1xf32>
    %203 = tpu.reciprocal %202 {approx = true} : vector<8x1xf32> -> vector<8x1xf32>
    %204 = vector.broadcast %203 : vector<8x1xf32> to vector<8x8xf32>
    %205 = arith.mulf %200, %204 : vector<8x8xf32>
    %206 = arith.truncf %205 : vector<8x8xf32> to vector<8x8xbf16>
    %cst_69 = arith.constant dense<0.000000e+00> : vector<8x8xf32>
    %207 = tpu.matmul %206, %192, %cst_69 {dimension_numbers = #tpu.dot_dimension_numbers<[1], [0], [0], [1], [0, 0, 1, 1], [], []>} : vector<8x8xbf16>, vector<8x8xbf16>, vector<8x8xf32> -> vector<8x8xf32>
    %208 = vector.extract_strided_slice %138 {offsets = [0, 24], sizes = [8, 8], strides = [1, 1]} : vector<8x32xf32> to vector<8x8xf32>
    %209 = arith.truncf %208 : vector<8x8xf32> to vector<8x8xbf16>
    %210 = vector.extract_strided_slice %144 {offsets = [0, 24], sizes = [8, 8], strides = [1, 1]} : vector<8x64xf32> to vector<8x8xf32>
    %211 = arith.truncf %210 : vector<8x8xf32> to vector<8x8xbf16>
    %212 = vector.extract_strided_slice %144 {offsets = [0, 56], sizes = [8, 8], strides = [1, 1]} : vector<8x64xf32> to vector<8x8xf32>
    %213 = arith.truncf %212 : vector<8x8xf32> to vector<8x8xbf16>
    "tpu.trace_start"() <{level = 10 : i32, message = "qd,kd->qk"}> : () -> ()
    %cst_70 = arith.constant dense<0.000000e+00> : vector<8x8xf32>
    %214 = tpu.matmul %209, %211, %cst_70 {dimension_numbers = #tpu.dot_dimension_numbers<[1], [1], [0], [0], [0, 0, 1, 0], [], []>} : vector<8x8xbf16>, vector<8x8xbf16>, vector<8x8xf32> -> vector<8x8xf32>
    "tpu.trace_stop"() : () -> ()
    %cst_71 = arith.constant 0.353553385 : f32
    %215 = vector.broadcast %cst_71 : f32 to vector<8x8xf32>
    %216 = arith.mulf %214, %215 : vector<8x8xf32>
    %cst_72 = arith.constant dense<0xFF800000> : vector<8xf32>
    %217 = vector.multi_reduction <maximumf>, %216, %cst_72 [1] : vector<8x8xf32> to vector<8xf32>
    %218 = vector.shape_cast %217 : vector<8xf32> to vector<8x1xf32>
    %219 = vector.broadcast %218 : vector<8x1xf32> to vector<8x8xf32>
    %220 = arith.subf %216, %219 : vector<8x8xf32>
    %221 = math.exp %220 : vector<8x8xf32>
    %cst_73 = arith.constant dense<0.000000e+00> : vector<8xf32>
    %222 = vector.multi_reduction <add>, %221, %cst_73 [1] : vector<8x8xf32> to vector<8xf32>
    %223 = vector.shape_cast %222 : vector<8xf32> to vector<8x1xf32>
    %224 = tpu.reciprocal %223 {approx = true} : vector<8x1xf32> -> vector<8x1xf32>
    %225 = vector.broadcast %224 : vector<8x1xf32> to vector<8x8xf32>
    %226 = arith.mulf %221, %225 : vector<8x8xf32>
    %227 = arith.truncf %226 : vector<8x8xf32> to vector<8x8xbf16>
    %cst_74 = arith.constant dense<0.000000e+00> : vector<8x8xf32>
    %228 = tpu.matmul %227, %213, %cst_74 {dimension_numbers = #tpu.dot_dimension_numbers<[1], [0], [0], [1], [0, 0, 1, 1], [], []>} : vector<8x8xbf16>, vector<8x8xbf16>, vector<8x8xf32> -> vector<8x8xf32>
    %229 = tpu.concatenate %165, %186, %207, %228 in 1 : vector<8x8xf32>, vector<8x8xf32>, vector<8x8xf32>, vector<8x8xf32> -> vector<8x32xf32>
    %230 = arith.truncf %229 : vector<8x32xf32> to vector<8x32xbf16>
    %c0_75 = arith.constant 0 : index
    %c0_76 = arith.constant 0 : index
    %231 = vector.load %arg14[%c0_75, %c0_76] : memref<32x32xbf16, #tpu.memory_space<vmem>>, vector<32x32xbf16>
    %cst_77 = arith.constant dense<0.000000e+00> : vector<8x32xf32>
    %232 = tpu.matmul %230, %231, %cst_77 {dimension_numbers = #tpu.dot_dimension_numbers<[1], [0], [0], [1], [0, 0, 1, 1], [], []>} : vector<8x32xbf16>, vector<32x32xbf16>, vector<8x32xf32> -> vector<8x32xf32>
    %c0_78 = arith.constant 0 : index
    %c0_79 = arith.constant 0 : index
    %233 = vector.load %arg15[%c0_78, %c0_79] : memref<1x32xf32, #tpu.memory_space<vmem>>, vector<1x32xf32>
    %234 = vector.broadcast %233 : vector<1x32xf32> to vector<8x32xf32>
    %235 = arith.addf %232, %234 : vector<8x32xf32>
    %236 = arith.addf %235, %132 : vector<8x32xf32>
    %c0_80 = arith.constant 0 : index
    %c0_81 = arith.constant 0 : index
    %237 = vector.load %arg16[%c0_80, %c0_81] : memref<1x32xf32, #tpu.memory_space<vmem>>, vector<1x32xf32>
    %c0_82 = arith.constant 0 : index
    %c0_83 = arith.constant 0 : index
    %238 = vector.load %arg17[%c0_82, %c0_83] : memref<1x32xf32, #tpu.memory_space<vmem>>, vector<1x32xf32>
    %cst_84 = arith.constant dense<0.000000e+00> : vector<8xf32>
    %239 = vector.multi_reduction <add>, %236, %cst_84 [1] : vector<8x32xf32> to vector<8xf32>
    %240 = vector.shape_cast %239 : vector<8xf32> to vector<8x1xf32>
    %cst_85 = arith.constant 3.200000e+01 : f32
    %241 = vector.broadcast %cst_85 : f32 to vector<8x1xf32>
    %242 = arith.divf %240, %241 : vector<8x1xf32>
    %243 = vector.broadcast %242 : vector<8x1xf32> to vector<8x32xf32>
    %244 = arith.subf %236, %243 : vector<8x32xf32>
    %245 = arith.mulf %244, %244 : vector<8x32xf32>
    %cst_86 = arith.constant dense<0.000000e+00> : vector<8xf32>
    %246 = vector.multi_reduction <add>, %245, %cst_86 [1] : vector<8x32xf32> to vector<8xf32>
    %247 = vector.shape_cast %246 : vector<8xf32> to vector<8x1xf32>
    %cst_87 = arith.constant 3.200000e+01 : f32
    %248 = vector.broadcast %cst_87 : f32 to vector<8x1xf32>
    %249 = arith.divf %247, %248 : vector<8x1xf32>
    %250 = vector.broadcast %242 : vector<8x1xf32> to vector<8x32xf32>
    %251 = arith.subf %236, %250 : vector<8x32xf32>
    %cst_88 = arith.constant 9.99999974E-6 : f32
    %252 = vector.broadcast %cst_88 : f32 to vector<8x1xf32>
    %253 = arith.addf %249, %252 : vector<8x1xf32>
    %254 = math.rsqrt %253 : vector<8x1xf32>
    %255 = vector.broadcast %254 : vector<8x1xf32> to vector<8x32xf32>
    %256 = arith.mulf %251, %255 : vector<8x32xf32>
    %257 = vector.broadcast %237 : vector<1x32xf32> to vector<8x32xf32>
    %258 = arith.mulf %256, %257 : vector<8x32xf32>
    %259 = vector.broadcast %238 : vector<1x32xf32> to vector<8x32xf32>
    %260 = arith.addf %258, %259 : vector<8x32xf32>
    %261 = arith.truncf %260 : vector<8x32xf32> to vector<8x32xbf16>
    %c0_89 = arith.constant 0 : index
    %c0_90 = arith.constant 0 : index
    %262 = vector.load %arg18[%c0_89, %c0_90] : memref<32x64xbf16, #tpu.memory_space<vmem>>, vector<32x64xbf16>
    %cst_91 = arith.constant dense<0.000000e+00> : vector<8x64xf32>
    %263 = tpu.matmul %261, %262, %cst_91 {dimension_numbers = #tpu.dot_dimension_numbers<[1], [0], [0], [1], [0, 0, 1, 1], [], []>} : vector<8x32xbf16>, vector<32x64xbf16>, vector<8x64xf32> -> vector<8x64xf32>
    %c0_92 = arith.constant 0 : index
    %c0_93 = arith.constant 0 : index
    %264 = vector.load %arg19[%c0_92, %c0_93] : memref<1x64xf32, #tpu.memory_space<vmem>>, vector<1x64xf32>
    %265 = vector.broadcast %264 : vector<1x64xf32> to vector<8x64xf32>
    %266 = arith.addf %263, %265 : vector<8x64xf32>
    %cst_94 = arith.constant 0.000000e+00 : f32
    %267 = vector.broadcast %cst_94 : f32 to vector<8x64xf32>
    %268 = arith.maximumf %266, %267 : vector<8x64xf32>
    %269 = arith.truncf %268 : vector<8x64xf32> to vector<8x64xbf16>
    %c0_95 = arith.constant 0 : index
    %c0_96 = arith.constant 0 : index
    %270 = vector.load %arg20[%c0_95, %c0_96] : memref<64x32xbf16, #tpu.memory_space<vmem>>, vector<64x32xbf16>
    %cst_97 = arith.constant dense<0.000000e+00> : vector<8x32xf32>
    %271 = tpu.matmul %269, %270, %cst_97 {dimension_numbers = #tpu.dot_dimension_numbers<[1], [0], [0], [1], [0, 0, 1, 1], [], []>} : vector<8x64xbf16>, vector<64x32xbf16>, vector<8x32xf32> -> vector<8x32xf32>
    %c0_98 = arith.constant 0 : index
    %c0_99 = arith.constant 0 : index
    %272 = vector.load %arg21[%c0_98, %c0_99] : memref<1x32xf32, #tpu.memory_space<vmem>>, vector<1x32xf32>
    %273 = vector.broadcast %272 : vector<1x32xf32> to vector<8x32xf32>
    %274 = arith.addf %271, %273 : vector<8x32xf32>
    %275 = arith.addf %274, %260 : vector<8x32xf32>
    %c0_100 = arith.constant 0 : index
    %c0_101 = arith.constant 0 : index
    %276 = vector.load %arg22[%c0_100, %c0_101] : memref<1x32xf32, #tpu.memory_space<vmem>>, vector<1x32xf32>
    %c0_102 = arith.constant 0 : index
    %c0_103 = arith.constant 0 : index
    %277 = vector.load %arg23[%c0_102, %c0_103] : memref<1x32xf32, #tpu.memory_space<vmem>>, vector<1x32xf32>
    %cst_104 = arith.constant dense<0.000000e+00> : vector<8xf32>
    %278 = vector.multi_reduction <add>, %275, %cst_104 [1] : vector<8x32xf32> to vector<8xf32>
    %279 = vector.shape_cast %278 : vector<8xf32> to vector<8x1xf32>
    %cst_105 = arith.constant 3.200000e+01 : f32
    %280 = vector.broadcast %cst_105 : f32 to vector<8x1xf32>
    %281 = arith.divf %279, %280 : vector<8x1xf32>
    %282 = vector.broadcast %281 : vector<8x1xf32> to vector<8x32xf32>
    %283 = arith.subf %275, %282 : vector<8x32xf32>
    %284 = arith.mulf %283, %283 : vector<8x32xf32>
    %cst_106 = arith.constant dense<0.000000e+00> : vector<8xf32>
    %285 = vector.multi_reduction <add>, %284, %cst_106 [1] : vector<8x32xf32> to vector<8xf32>
    %286 = vector.shape_cast %285 : vector<8xf32> to vector<8x1xf32>
    %cst_107 = arith.constant 3.200000e+01 : f32
    %287 = vector.broadcast %cst_107 : f32 to vector<8x1xf32>
    %288 = arith.divf %286, %287 : vector<8x1xf32>
    %289 = vector.broadcast %281 : vector<8x1xf32> to vector<8x32xf32>
    %290 = arith.subf %275, %289 : vector<8x32xf32>
    %cst_108 = arith.constant 9.99999974E-6 : f32
    %291 = vector.broadcast %cst_108 : f32 to vector<8x1xf32>
    %292 = arith.addf %288, %291 : vector<8x1xf32>
    %293 = math.rsqrt %292 : vector<8x1xf32>
    %294 = vector.broadcast %293 : vector<8x1xf32> to vector<8x32xf32>
    %295 = arith.mulf %290, %294 : vector<8x32xf32>
    %296 = vector.broadcast %276 : vector<1x32xf32> to vector<8x32xf32>
    %297 = arith.mulf %295, %296 : vector<8x32xf32>
    %298 = vector.broadcast %277 : vector<1x32xf32> to vector<8x32xf32>
    %299 = arith.addf %297, %298 : vector<8x32xf32>
    %c0_109 = arith.constant 0 : index
    %c0_110 = arith.constant 0 : index
    %c0_111 = arith.constant 0 : index
    %300 = vector.load %arg24[%c0_109, %c0_110, %c0_111] : memref<1x8x32xf32, #tpu.memory_space<vmem>>, vector<1x8x32xf32>
    %301 = vector.shape_cast %300 : vector<1x8x32xf32> to vector<8x32xf32>
    %302 = vector.shape_cast %299 : vector<8x32xf32> to vector<1x8x32xf32>
    tpu.vector_store %arg24[%c0_109, %c0_110, %c0_111], %302 {strides = array<i32>} : memref<1x8x32xf32, #tpu.memory_space<vmem>>, vector<1x8x32xf32>,
    return
  }
  func.func @transform_0(%arg0: i32) -> (i32, i32, i32) {
    %c0_i32 = arith.constant 0 : i32
    %c0_i32_0 = arith.constant 0 : i32
    %c0_i32_1 = arith.constant 0 : i32
    return %arg0, %c0_i32, %c0_i32_0 : i32, i32, i32
  }
  func.func @transform_1(%arg0: i32) -> (i32, i32, i32) {
    %c0_i32 = arith.constant 0 : i32
    %c0_i32_0 = arith.constant 0 : i32
    %c0_i32_1 = arith.constant 0 : i32
    return %arg0, %c0_i32, %c0_i32_0 : i32, i32, i32
  }
  func.func @transform_2(%arg0: i32) -> (i32, i32) {
    %c0_i32 = arith.constant 0 : i32
    %c0_i32_0 = arith.constant 0 : i32
    %c0_i32_1 = arith.constant 0 : i32
    return %c0_i32, %c0_i32_0 : i32, i32
  }
  func.func @transform_3(%arg0: i32) -> (i32, i32) {
    %c0_i32 = arith.constant 0 : i32
    %c0_i32_0 = arith.constant 0 : i32
    %c0_i32_1 = arith.constant 0 : i32
    return %c0_i32, %c0_i32_0 : i32, i32
  }
  func.func @transform_4(%arg0: i32) -> (i32, i32) {
    %c0_i32 = arith.constant 0 : i32
    %c0_i32_0 = arith.constant 0 : i32
    %c0_i32_1 = arith.constant 0 : i32
    return %c0_i32, %c0_i32_0 : i32, i32
  }
  func.func @transform_5(%arg0: i32) -> (i32, i32) {
    %c0_i32 = arith.constant 0 : i32
    %c0_i32_0 = arith.constant 0 : i32
    %c0_i32_1 = arith.constant 0 : i32
    return %c0_i32, %c0_i32_0 : i32, i32
  }
  func.func @transform_6(%arg0: i32) -> (i32, i32) {
    %c0_i32 = arith.constant 0 : i32
    %c0_i32_0 = arith.constant 0 : i32
    %c0_i32_1 = arith.constant 0 : i32
    return %c0_i32, %c0_i32_0 : i32, i32
  }
  func.func @transform_7(%arg0: i32) -> (i32, i32) {
    %c0_i32 = arith.constant 0 : i32
    %c0_i32_0 = arith.constant 0 : i32
    %c0_i32_1 = arith.constant 0 : i32
    return %c0_i32, %c0_i32_0 : i32, i32
  }
  func.func @transform_8(%arg0: i32) -> (i32, i32) {
    %c0_i32 = arith.constant 0 : i32
    %c0_i32_0 = arith.constant 0 : i32
    %c0_i32_1 = arith.constant 0 : i32
    return %c0_i32, %c0_i32_0 : i32, i32
  }
  func.func @transform_9(%arg0: i32) -> (i32, i32) {
    %c0_i32 = arith.constant 0 : i32
    %c0_i32_0 = arith.constant 0 : i32
    %c0_i32_1 = arith.constant 0 : i32
    return %c0_i32, %c0_i32_0 : i32, i32
  }
  func.func @transform_10(%arg0: i32) -> (i32, i32) {
    %c0_i32 = arith.constant 0 : i32
    %c0_i32_0 = arith.constant 0 : i32
    %c0_i32_1 = arith.constant 0 : i32
    return %c0_i32, %c0_i32_0 : i32, i32
  }
  func.func @transform_11(%arg0: i32) -> (i32, i32) {
    %c0_i32 = arith.constant 0 : i32
    %c0_i32_0 = arith.constant 0 : i32
    %c0_i32_1 = arith.constant 0 : i32
    return %c0_i32, %c0_i32_0 : i32, i32
  }
  func.func @transform_12(%arg0: i32) -> (i32, i32) {
    %c0_i32 = arith.constant 0 : i32
    %c0_i32_0 = arith.constant 0 : i32
    %c0_i32_1 = arith.constant 0 : i32
    return %c0_i32, %c0_i32_0 : i32, i32
  }
  func.func @transform_13(%arg0: i32) -> (i32, i32) {
    %c0_i32 = arith.constant 0 : i32
    %c0_i32_0 = arith.constant 0 : i32
    %c0_i32_1 = arith.constant 0 : i32
    return %c0_i32, %c0_i32_0 : i32, i32
  }
  func.func @transform_14(%arg0: i32) -> (i32, i32) {
    %c0_i32 = arith.constant 0 : i32
    %c0_i32_0 = arith.constant 0 : i32
    %c0_i32_1 = arith.constant 0 : i32
    return %c0_i32, %c0_i32_0 : i32, i32
  }
  func.func @transform_15(%arg0: i32) -> (i32, i32) {
    %c0_i32 = arith.constant 0 : i32
    %c0_i32_0 = arith.constant 0 : i32
    %c0_i32_1 = arith.constant 0 : i32
    return %c0_i32, %c0_i32_0 : i32, i32
  }
  func.func @transform_16(%arg0: i32) -> (i32, i32) {
    %c0_i32 = arith.constant 0 : i32
    %c0_i32_0 = arith.constant 0 : i32
    %c0_i32_1 = arith.constant 0 : i32
    return %c0_i32, %c0_i32_0 : i32, i32
  }
  func.func @transform_17(%arg0: i32) -> (i32, i32) {
    %c0_i32 = arith.constant 0 : i32
    %c0_i32_0 = arith.constant 0 : i32
    %c0_i32_1 = arith.constant 0 : i32
    return %c0_i32, %c0_i32_0 : i32, i32
  }
  func.func @transform_18(%arg0: i32) -> (i32, i32) {
    %c0_i32 = arith.constant 0 : i32
    %c0_i32_0 = arith.constant 0 : i32
    %c0_i32_1 = arith.constant 0 : i32
    return %c0_i32, %c0_i32_0 : i32, i32
  }
  func.func @transform_19(%arg0: i32) -> (i32, i32) {
    %c0_i32 = arith.constant 0 : i32
    %c0_i32_0 = arith.constant 0 : i32
    %c0_i32_1 = arith.constant 0 : i32
    return %c0_i32, %c0_i32_0 : i32, i32
  }
  func.func @transform_20(%arg0: i32) -> (i32, i32) {
    %c0_i32 = arith.constant 0 : i32
    %c0_i32_0 = arith.constant 0 : i32
    %c0_i32_1 = arith.constant 0 : i32
    return %c0_i32, %c0_i32_0 : i32, i32
  }
  func.func @transform_21(%arg0: i32) -> (i32, i32) {
    %c0_i32 = arith.constant 0 : i32
    %c0_i32_0 = arith.constant 0 : i32
    %c0_i32_1 = arith.constant 0 : i32
    return %c0_i32, %c0_i32_0 : i32, i32
  }
  func.func @transform_22(%arg0: i32) -> (i32, i32) {
    %c0_i32 = arith.constant 0 : i32
    %c0_i32_0 = arith.constant 0 : i32
    %c0_i32_1 = arith.constant 0 : i32
    return %c0_i32, %c0_i32_0 : i32, i32
  }
  func.func @transform_23(%arg0: i32) -> (i32, i32, i32) {
    %c0_i32 = arith.constant 0 : i32
    %c0_i32_0 = arith.constant 0 : i32
    %c0_i32_1 = arith.constant 0 : i32
    return %arg0, %c0_i32, %c0_i32_0 : i32, i32, i32
  }
}

</mosaic_0001>

<bundles_post_ra>
// kernel: transformer_forward.9
= control target key start
LH: loop header
LB: loop body
LE: loop exit
PB: predicated region body
PF: predicated region fallthrough
CT: control target
= control target key end

     0   :  { %s511_s12 = smov 0   ;;  %s513_s13 = smov 0   ;;  %s563_s0 = inlined_call_operand.vmem [shape: f32[2,8,32], index: 0, kind: input, shape index: {}]   ;;  %s564_s1 = inlined_call_operand.vmem [shape: bf16[32,50], index: 1, kind: input, shape index: {}]   ;;  %s565_s2 = inlined_call_operand.vmem [shape: f32[1,50], index: 2, kind: input, shape index: {}]   ;;  %s566_s3 = inlined_call_operand.vmem [shape: f32[2,8,50], index: 3, kind: output, shape index: {}]  }
   0x1   :  { %s515_s14 = smov 0  }
   0x2 LB: > { %s25_s15 = sadd.s32 1, %s483_s13  ;;  %p413_p0 = scmp.ge.s32.totalorder %s487_s14, 1  ;;  %s487_s14 = sphi %s515_s14, %s13_s14   ;;  %s483_s13 = sphi %s513_s13, %s568_s13   ;;  %s479_s12 = sphi %s511_s12, %s567_s12  }
   0x3   : > { %p27_p1 = scmp.ge.s32.totalorder %s25_s15, 2  ;;  %p167_p2 = scmp.lt.s32.totalorder %s487_s14, 3 }
   0x5   : > { %s570_s15 = smov (%p27_p1, %s25_s15), 0  ;;  %p168_p3 = pnand %p413_p0, %p167_p2 }
   0x6   : > { %p199_p4 = scmp.lt.s32.totalorder (!%p168_p3), %s479_s12, 1 }
   0x7   : > { %171 = sbr.rel (%p168_p3) target bundleno = 277 (0x115), region = 32 }
   0xc   : > { %v459_v0 = vld [vmem:[%s564_s1 + $0x8] sm:$0xff]   ;;  %v489_v1 = vmov 0.0   ;;  %v460_v2 = vld [vmem:[%s564_s1] sm:$0xff]   ;;  %vm490_vm0 = vmmov 0   ;;  %s572_s12 = smov (!%p199_p4, %s479_s12), 1  ;;  %vm243_vm1 = vcmask 261120  }
   0xd   : > { %425 = vmatprep.subr.bf16.mxu0 %v489_v1  ;;  %429 = vmatprep.mubr.msk.bf16.mxu0 %vm490_vm0, %v489_v1  ;;  %s414_s20 = sshll.u32 %s572_s12, 3  ;;  %v416_v5 = vld [vmem:[%s565_s2] ss:$0 sm:$0xff]  ;;  %vm287_vm2 = vcmask 408576  }
   0xe   : > { %426 = vmatpush3.bf16.msra.mxu0 %v459_v0  ;;  %s202_s23 = scalar_lea.vmem %s563_s0, %s414_s20  ;;  %s216_s28 = scalar_lea.vmem %s566_s3, %s414_s20 }
   0xf   : > { %427 = vmatprep.subr.bf16.mxu0 %v489_v1  ;;  %v218_v3 = vld [vmem:[%s202_s23] sm:$0xff] }
  0x10   : > { %v219_v4 = vpack.c.bf16 %v218_v3, %v218_v3 }
  0x12   : > { %428 = vmatpush3.bf16.msra.mxu0 %v460_v2 }
  0x15   : > { %430 = vmatmul.mubr.msk.bf16.vlgmr.msra.gmra.mxu0 %vm243_vm1, %v219_v4 }
  0xd5   : > { %v281_v6 = vpop.f32.mrf.mxu0 }
  0xd6   : > { %v282_v7 = vadd.f32 %v416_v5, %v281_v6 }
  0xd7   : > { %v431_v8 = vpop.f32.mrf.mxu0 }
  0xd8   : > { %v288_v9 = vsel %vm287_vm2, %v282_v7, -inf }
  0xd9   : > { %v289_v10 = vrot.slane %v288_v9, 4  ;;  %v284_v11 = vpop.f32.mrf.mxu0 }
  0xdb   : > { %v290_v12 = vmax.f32 %v288_v9, %v289_v10  ;;  %v432_v13 = vpop.f32.mrf.mxu0 }
  0xdd   : > { %v291_v14 = vrot.slane %v290_v12, 2 }
  0xdf   : > { %v292_v15 = vmax.f32 %v290_v12, %v291_v14 }
  0xe1   : > { %v293_v16 = vrot.slane %v292_v15, 1 }
  0xe3   : > { %v294_v17 = vmax.f32 %v292_v15, %v293_v16 }
  0xe5   : > { %v295_v18 = vsub.f32 %v282_v7, %v294_v17 }
  0xe7   : > { %v296_v19 = vmul.f32 1.442695, %v295_v18 }
  0xe9   : > { %461 = vpow2.f32 %v296_v19 }
  0xf6   : > { %v462_v20 = vpop.eup %461 }
  0xf7   : > { %v298_v21 = vsel %vm287_vm2, %v462_v20, 0.0 }
  0xf8   : > { %v299_v22 = vrot.slane %v298_v21, 4 }
  0xfa   : > { %v300_v23 = vadd.f32 %v299_v22, %v298_v21 }
  0xfc   : > { %v301_v24 = vrot.slane %v300_v23, 2 }
  0xfe   : > { %v302_v25 = vadd.f32 %v301_v24, %v300_v23 }
 0x100   : > { %v303_v26 = vrot.slane %v302_v25, 1 }
 0x102   : > { %v304_v27 = vadd.f32 %v303_v26, %v302_v25 }
 0x104   : > { %463 = vrcp.f32 %v304_v27 }
 0x111   : > { %v464_v28 = vpop.eup %463 }
 0x112   : > { %v306_v29 = vmul.f32 %v464_v28, %v462_v20 }
 0x114   : > { %307 = vst.msk [vmem:[%s216_s28] sm:$0xff] %vm287_vm2, %v306_v29 }
 0x115 PF: > { %s13_s14 = sadd.s32 1, %s487_s14   ;;  %s567_s12 = smov %s483_s13 }
 0x116   : > { %p10_p5 = scmp.ge.s32.totalorder %s13_s14, 4   ;;  %s568_s13 = smov %s570_s15 }
 0x118   :  { %12 = sbr.rel (!%p10_p5) target bundleno = 2 (0x2), region = 68 }

// kernel: transformer_forward.5
= control target key start
LH: loop header
LB: loop body
LE: loop exit
PB: predicated region body
PF: predicated region fallthrough
CT: control target
= control target key end

     0   :  { %s1641_s29 = smov 0   ;;  %s1816_s0 = inlined_call_operand.vmem [shape: f32[2,8,32], index: 0, kind: input, shape index: {}]   ;;  %s1817_s1 = inlined_call_operand.vmem [shape: f32[8,8], index: 1, kind: input, shape index: {}]   ;;  %s1818_s2 = inlined_call_operand.vmem [shape: bf16[32,96], index: 2, kind: input, shape index: {}]   ;;  %s1819_s3 = inlined_call_operand.vmem [shape: f32[1,96], index: 3, kind: input, shape index: {}]   ;;  %s1820_s4 = inlined_call_operand.vmem [shape: bf16[32,32], index: 4, kind: input, shape index: {}]   ;;  %s1821_s5 = inlined_call_operand.vmem [shape: f32[1,32], index: 5, kind: input, shape index: {}]   ;;  %s1822_s6 = inlined_call_operand.vmem [shape: f32[1,32], index: 6, kind: input, shape index: {}]   ;;  %s1823_s7 = inlined_call_operand.vmem [shape: f32[1,32], index: 7, kind: input, shape index: {}]   ;;  %s1824_s8 = inlined_call_operand.vmem [shape: bf16[32,64], index: 8, kind: input, shape index: {}]   ;;  %s1825_s9 = inlined_call_operand.vmem [shape: f32[1,64], index: 9, kind: input, shape index: {}]   ;;  %s1826_s10 = inlined_call_operand.vmem [shape: bf16[64,32], index: 10, kind: input, shape index: {}]   ;;  %s1827_s11 = inlined_call_operand.vmem [shape: f32[1,32], index: 11, kind: input, shape index: {}]   ;;  %s1828_s12 = inlined_call_operand.vmem [shape: f32[1,32], index: 12, kind: input, shape index: {}]   ;;  %s1829_s13 = inlined_call_operand.vmem [shape: f32[1,32], index: 13, kind: input, shape index: {}]   ;;  %s1830_s14 = inlined_call_operand.vmem [shape: f32[2,8,32], index: 14, kind: output, shape index: {}]  }
   0x1 LB: > { %s1335_s30 = sadd.s32 4294967295, %s1548_s29   ;;  %p1339_p0 = scmp.ge.s32.totalorder %s1548_s29, 1  ;;  %s1548_s29 = sphi %s1641_s29, %s24_s29  }
   0x2   : > { %p411_p1 = scmp.lt.s32.totalorder %s1548_s29, 3 }
   0x4   : > { %p412_p2 = pnand %p1339_p0, %p411_p1 }
   0x5   : > { %p455_p3 = scmp.lt.s32.totalorder (!%p412_p2), %s1335_s30, 1  ;;  %s1552_s25 = smov (!%p412_p2), 120  }
   0x6   : > { %415 = sbr.rel (%p412_p2) target bundleno = 2435 (0x983), region = 76  ;;  %s1553_s26 = smov (!%p412_p2), 96  }
   0x7   : > { %s1554_s27 = smov (!%p412_p2), 80   ;;  %s1555_s28 = smov (!%p412_p2), 88  }
   0x8   : > { %s1556_s15 = smov (!%p412_p2), 72   ;;  %s1557_s16 = smov (!%p412_p2), 112  }
   0x9   : > { %s1558_s17 = smov (!%p412_p2), 104   ;;  %s1559_s21 = smov (!%p412_p2), 56  }
   0xa   : > { %s1561_s23 = smov (!%p412_p2), 40   ;;  %s1562_s24 = smov (!%p412_p2), 48  }
   0xb   : > { %v1512_v0 = vld [vmem:[%s1818_s2 + $0x8] sm:$0xff]   ;;  %v1550_v1 = vmov 0.0   ;;  %v1513_v2 = vld [vmem:[%s1818_s2] sm:$0xff]   ;;  %vm1551_vm0 = vmmov 0   ;;  %s1832_s30 = smov (!%p455_p3, %s1335_s30), 1  ;;  %vm489_vm1 = vcmask 261120  }
   0xc   : > { %1404 = vmatprep.subr.bf16.mxu0 %v1550_v1  ;;  %1412 = vmatprep.subr.bf16.mxu1 %v1550_v1  ;;  %s1340_s19 = sshll.u32 %s1832_s30, 3  ;;  %v1342_v5 = vld [vmem:[%s1819_s3] ss:$0 sm:$0xff]  ;;  %vm538_vm2 = vcmask 64512   ;;  %vm604_vm3 = vcmask 1043456   ;;  %vm997_vm4 = vcmask 130048  }
   0xd   : > { %1405 = vmatpush3.bf16.msra.mxu0 %v1512_v0  ;;  %1408 = vmatprep.mubr.msk.bf16.mxu0 %vm1551_vm0, %v1550_v1  ;;  %s458_s22 = scalar_lea.vmem %s1816_s0, %s1340_s19  ;;  %v533_v24 = vld [vmem:[%s1817_s1] sm:$0xff]  ;;  %vm999_vm5 = vcmask 195584   ;;  %vm1207_vm6 = vcmask 523264  }
   0xe   : > { %1406 = vmatprep.subr.bf16.mxu0 %v1550_v1  ;;  %1414 = vmatprep.mubr.msk.bf16.mxu1 %vm1551_vm0, %v1550_v1  ;;  %v1671_v3 = vld [vmem:[%s458_s22] sm:$0xff]  ;;  %s1560_s22 = smov 64  }
   0xf   : > { %v465_v4 = vpack.c.bf16 %v1671_v3, %v1671_v3 }
  0x11   : > { %1407 = vmatpush3.bf16.msra.mxu0 %v1513_v2 }
  0x12   : > { %1418 = vmatprep.subr.bf16.mxu0 %v1550_v1 }
  0x14   : > { %1409 = vmatmul.mubr.msk.bf16.vlgmr.msra.gmra.mxu0 %vm489_vm1, %v465_v4 }
  0x15   : > { %1420 = vmatprep.mubr.msk.bf16.mxu0 %vm1551_vm0, %v1550_v1 }
  0xd4   : > { %v527_v6 = vpop.f32.mrf.mxu0 }
  0xd5   : > { %v528_v7 = vadd.f32 %v1342_v5, %v527_v6 }
  0xd6   : > { %v1410_v8 = vpop.f32.mrf.mxu0 }
  0xd7   : > { %v1681_v9 = vpack.c.bf16 %v528_v7, %v528_v7 }
  0xd8   : > { %v530_v10 = vpop.f32.mrf.mxu0 }
  0xd9   : > { %648 = vrot.lane.b32.xlu1 %v1681_v9, %s1552_s25  ;;  %536 = vrot.lane.b32.xlu0 %v1681_v9, %s1553_s26  ;;  %s1563_s25 = smov 8  }
  0xda   : > { %v1411_v11 = vpop.f32.mrf.mxu0 }
  0xdd   : > { %762 = vrot.lane.b32.xlu1 %v1681_v9, %s1554_s27  ;;  %650 = vrot.lane.b32.xlu0 %v1681_v9, %s1555_s28 }
  0xe1   : > { %874 = vrot.lane.b32.xlu1 %v1681_v9, %s1556_s15  ;;  %760 = vrot.lane.b32.xlu0 %v1681_v9, %s1557_s16  ;;  %s1564_s16 = smov 16  }
  0xe5   : > { %872 = vrot.lane.b32.xlu0 %v1681_v9, %s1558_s17  ;;  %s1565_s17 = smov 24  }
 0x14b   : > { %v537_v12 = vpop.permute.xlu0 %536  ;;  %v649_v15 = vpop.permute.xlu1 %648 }
 0x14c   : > { %v543_v13 = vsel %vm538_vm2, %v537_v12, 0 }
 0x14d   : > { %1413 = vmatpush3.bf16.xpose.msra.mxu1 %v543_v13 }
 0x14e   : > { %1424 = vmatprep.subr.bf16.mxu1 %v1550_v1 }
 0x14f   : > { %v651_v14 = vpop.permute.xlu0 %650  ;;  %v763_v17 = vpop.permute.xlu1 %762 }
 0x150   : > { %v656_v16 = vsel %vm538_vm2, %v651_v14, 0  ;;  %v768_v18 = vsel %vm538_vm2, %v763_v17, 0 }
 0x153   : > { %v875_v19 = vpop.permute.xlu1 %874  ;;  %v761_v20 = vpop.permute.xlu0 %760 }
 0x154   : > { %1415 = vmatmul.mubr.msk.bf16.vlgmr.msra.gmra.mxu1 %vm538_vm2, %v1681_v9  ;;  %v880_v21 = vsel %vm538_vm2, %v875_v19, 0 }
 0x155   : > { %1425 = vmatpush3.bf16.xpose.msra.mxu1 %v656_v16  ;;  %1426 = vmatprep.mubr.msk.bf16.mxu1 %vm1551_vm0, %v1550_v1 }
 0x156   : > { %1436 = vmatprep.subr.bf16.mxu1 %v1550_v1 }
 0x157   : > { %v873_v22 = vpop.permute.xlu0 %872 }
 0x15c   : > { %1427 = vmatmul.mubr.msk.bf16.vlgmr.msra.gmra.mxu1 %vm538_vm2, %v649_v15 }
 0x15d   : > { %1437 = vmatpush3.bf16.xpose.msra.mxu1 %v768_v18  ;;  %1438 = vmatprep.mubr.msk.bf16.mxu1 %vm1551_vm0, %v1550_v1 }
 0x15e   : > { %1448 = vmatprep.subr.bf16.mxu1 %v1550_v1 }
 0x164   : > { %1439 = vmatmul.mubr.msk.bf16.vlgmr.msra.gmra.mxu1 %vm538_vm2, %v761_v20 }
 0x165   : > { %1449 = vmatpush3.bf16.xpose.msra.mxu1 %v880_v21  ;;  %1450 = vmatprep.mubr.msk.bf16.mxu1 %vm1551_vm0, %v1550_v1 }
 0x166   : > { %1460 = vmatprep.subr.bf16.mxu1 %v1550_v1 }
 0x16c   : > { %1451 = vmatmul.mubr.msk.bf16.vlgmr.msra.gmra.mxu1 %vm538_vm2, %v873_v22 }
 0x16d   : > { %1464 = vmatprep.mubr.msk.bf16.mxu1 %vm1551_vm0, %v1550_v1 }
 0x214   : > { %v579_v23 = vpop.f32.mrf.mxu1 }
 0x215   : > { %v585_v25 = vmul.f32 0.35355338, %v579_v23 }
 0x216   : > { %v1416_v26 = vpop.f32.mrf.mxu1 }
 0x217   : > { %v586_v27 = vadd.f32 %v585_v25, %v533_v24 }
 0x218   : > { %v582_v28 = vpop.f32.mrf.mxu1 }
 0x219   : > { %v587_v29 = vsel %vm538_vm2, %v586_v27, -inf }
 0x21a   : > { %588 = vmax.xlane.f32.xlu1 %v587_v29  ;;  %v1417_v30 = vpop.f32.mrf.mxu1 }
 0x21c   : > { %v692_v31 = vpop.f32.mrf.mxu1 }
 0x21d   : > { %v698_v32 = vmul.f32 0.35355338, %v692_v31 }
 0x21e   : > { %v1428_v33 = vpop.f32.mrf.mxu1 }
 0x21f   : > { %v699_v34 = vadd.f32 %v698_v32, %v533_v24 }
 0x220   : > { %v695_v35 = vpop.f32.mrf.mxu1 }
 0x221   : > { %v700_v36 = vsel %vm538_vm2, %v699_v34, -inf }
 0x222   : > { %701 = vmax.xlane.f32.xlu0 %v700_v36  ;;  %v1429_v37 = vpop.f32.mrf.mxu1 }
 0x224   : > { %v804_v38 = vpop.f32.mrf.mxu1 }
 0x225   : > { %v810_v39 = vmul.f32 0.35355338, %v804_v38 }
 0x226   : > { %v1440_v40 = vpop.f32.mrf.mxu1 }
 0x227   : > { %v811_v41 = vadd.f32 %v810_v39, %v533_v24 }
 0x228   : > { %v807_v42 = vpop.f32.mrf.mxu1 }
 0x229   : > { %v812_v43 = vsel %vm538_vm2, %v811_v41, -inf  ;;  %v1514_v42 = vld [vmem:[%s1820_s4 + $0x8] sm:$0xff]  }
 0x22a   : > { %813 = vmax.xlane.f32.xlu0 %v812_v43  ;;  %v1441_v44 = vpop.f32.mrf.mxu1  ;;  %1461 = vmatpush3.bf16.msra.mxu1 %v1514_v42  ;;  %v1515_v43 = vld [vmem:[%s1820_s4] sm:$0xff]  }
 0x22b   : > { %1462 = vmatprep.subr.bf16.mxu1 %v1550_v1 }
 0x22c   : > { %v916_v45 = vpop.f32.mrf.mxu1 }
 0x22d   : > { %v922_v46 = vmul.f32 0.35355338, %v916_v45 }
 0x22e   : > { %v1452_v47 = vpop.f32.mrf.mxu1  ;;  %1463 = vmatpush3.bf16.msra.mxu1 %v1515_v43 }
 0x22f   : > { %v923_v48 = vadd.f32 %v922_v46, %v533_v24  ;;  %1476 = vmatprep.subr.bf16.mxu1 %v1550_v1 }
 0x230   : > { %v919_v49 = vpop.f32.mrf.mxu1 }
 0x231   : > { %v924_v50 = vsel %vm538_vm2, %v923_v48, -inf }
 0x232   : > { %925 = vmax.xlane.f32.xlu1 %v924_v50  ;;  %v1453_v51 = vpop.f32.mrf.mxu1 }
 0x2a3   : > { %v589_v52 = vpop.xlane.xlu1 %588 }
 0x2a4   : > { %v590_v53 = vsub.f32 %v586_v27, %v589_v52 }
 0x2a6   : > { %v591_v54 = vmul.f32 1.442695, %v590_v53 }
 0x2a8   : > { %1522 = vpow2.f32 %v591_v54 }
 0x2ab   : > { %v702_v55 = vpop.xlane.xlu0 %701 }
 0x2ac   : > { %v703_v56 = vsub.f32 %v699_v34, %v702_v55 }
 0x2ae   : > { %v704_v57 = vmul.f32 1.442695, %v703_v56 }
 0x2b0   : > { %1524 = vpow2.f32 %v704_v57 }
 0x2b3   : > { %v814_v58 = vpop.xlane.xlu0 %813 }
 0x2b4   : > { %v815_v59 = vsub.f32 %v811_v41, %v814_v58 }
 0x2b5   : > { %v1523_v60 = vpop.eup %1522 }
 0x2b6   : > { %v816_v61 = vmul.f32 1.442695, %v815_v59  ;;  %v593_v62 = vsel %vm538_vm2, %v1523_v60, 0.0  ;;  %v1354_v59 = vld [vmem:[%s1821_s5] ss:$0 sm:$0xff] }
 0x2b7   : > { %594 = vadd.xlane.f32.xlu0 %v593_v62 }
 0x2b8   : > { %1526 = vpow2.f32 %v816_v61 }
 0x2bb   : > { %v926_v5 = vpop.xlane.xlu1 %925 }
 0x2bc   : > { %v927_v6 = vsub.f32 %v923_v48, %v926_v5 }
 0x2bd   : > { %v1525_v63 = vpop.eup %1524 }
 0x2be   : > { %v706_v0 = vsel %vm538_vm2, %v1525_v63, 0.0  ;;  %v928_v7 = vmul.f32 1.442695, %v927_v6 }
 0x2bf   : > { %707 = vadd.xlane.f32.xlu1 %v706_v0 }
 0x2c0   : > { %1528 = vpow2.f32 %v928_v7 }
 0x2c5   : > { %v1527_v2 = vpop.eup %1526 }
 0x2c6   : > { %v818_v4 = vsel %vm538_vm2, %v1527_v2, 0.0 }
 0x2c7   : > { %819 = vadd.xlane.f32.xlu0 %v818_v4 }
 0x2cd   : > { %v1529_v8 = vpop.eup %1528 }
 0x2ce   : > { %v930_v10 = vsel %vm538_vm2, %v1529_v8, 0.0 }
 0x2d0   : > { %712 = vrot.lane.b32.xlu1 %v1681_v9, %s1559_s21  ;;  %s462_s21 = scalar_lea.vmem %s1830_s14, %s1340_s19 }
 0x2dd   : > { %599 = vrot.lane.b32.xlu0 %v1681_v9, %s1560_s22 }
 0x2e1   : > { %936 = vrot.lane.b32.xlu0 %v1681_v9, %s1561_s23 }
 0x2f4   : > { %931 = vadd.xlane.f32.xlu1 %v930_v10 }
 0x305   : > { %824 = vrot.lane.b32.xlu1 %v1681_v9, %s1562_s24 }
 0x340   : > { %v595_v11 = vpop.xlane.xlu0 %594 }
 0x341   : > { %1530 = vrcp.f32 %v595_v11  ;;  %v1516_v11 = vld [vmem:[%s1824_s8 + $0x8] sm:$0xff]  }
 0x348   : > { %v708_v12 = vpop.xlane.xlu1 %707 }
 0x349   : > { %1532 = vrcp.f32 %v708_v12  ;;  %v1518_v12 = vld [vmem:[%s1826_s10 + $0x18] sm:$0xff]  }
 0x34c   : > { %v713_v18 = vpop.permute.xlu1 %712 }
 0x34d   : > { %v718_v21 = vsel %vm604_vm3, %v713_v18, 0  ;;  %v1358_v18 = vld [vmem:[%s1822_s6] ss:$0 sm:$0xff] }
 0x34e   : > { %v1531_v13 = vpop.eup %1530 }
 0x34f   : > { %v597_v15 = vmul.f32 %v1531_v13, %v1523_v60  ;;  %v1519_v13 = vld [vmem:[%s1826_s10 + $0x10] sm:$0xff]  }
 0x350   : > { %v820_v14 = vpop.xlane.xlu0 %819 }
 0x351   : > { %v598_v19 = vpack.c.bf16 %v597_v15, %v597_v15  ;;  %1534 = vrcp.f32 %v820_v14 }
 0x354   : > { %v600_v16 = vpop.permute.xlu0 %599 }
 0x355   : > { %v606_v17 = vsel %vm604_vm3, %v600_v16, 0 }
 0x356   : > { %1419 = vmatpush3.bf16.msra.mxu0 %v606_v17  ;;  %v1533_v20 = vpop.eup %1532 }
 0x357   : > { %1430 = vmatprep.subr.bf16.mxu0 %v1550_v1  ;;  %v710_v9 = vmul.f32 %v1533_v20, %v1525_v63  ;;  %v1359_v20 = vld [vmem:[%s1823_s7] ss:$0 sm:$0xff] }
 0x358   : > { %v937_v28 = vpop.permute.xlu0 %936 }
 0x359   : > { %1421 = vmatmul.mubr.msk.bf16.vlgmr.msra.gmra.mxu0 %vm538_vm2, %v598_v19  ;;  %v711_v22 = vpack.c.bf16 %v710_v9, %v710_v9  ;;  %v942_v30 = vsel %vm604_vm3, %v937_v28, 0 }
 0x35a   : > { %1431 = vmatpush3.bf16.msra.mxu0 %v718_v21  ;;  %1432 = vmatprep.mubr.msk.bf16.mxu0 %vm1551_vm0, %v1550_v1 }
 0x35b   : > { %1442 = vmatprep.subr.bf16.mxu0 %v1550_v1 }
 0x35e   : > { %v1535_v23 = vpop.eup %1534 }
 0x35f   : > { %v822_v25 = vmul.f32 %v1535_v23, %v1527_v2  ;;  %v1520_v23 = vld [vmem:[%s1826_s10 + $0x8] sm:$0xff]  }
 0x361   : > { %1433 = vmatmul.mubr.msk.bf16.vlgmr.msra.gmra.mxu0 %vm538_vm2, %v711_v22  ;;  %v823_v29 = vpack.c.bf16 %v822_v25, %v822_v25  ;;  %v1360_v25 = vld [vmem:[%s1825_s9] ss:$0 sm:$0xff] }
 0x362   : > { %1444 = vmatprep.mubr.msk.bf16.mxu0 %vm1551_vm0, %v1550_v1 }
 0x37d   : > { %v932_v24 = vpop.xlane.xlu1 %931 }
 0x37e   : > { %1536 = vrcp.f32 %v932_v24  ;;  %v1521_v24 = vld [vmem:[%s1826_s10] sm:$0xff]  }
 0x381   : > { %v825_v26 = vpop.permute.xlu1 %824 }
 0x382   : > { %v830_v27 = vsel %vm604_vm3, %v825_v26, 0 }
 0x383   : > { %1443 = vmatpush3.bf16.msra.mxu0 %v830_v27 }
 0x384   : > { %1454 = vmatprep.subr.bf16.mxu0 %v1550_v1 }
 0x386   : > { %1445 = vmatmul.mubr.msk.bf16.vlgmr.msra.gmra.mxu0 %vm538_vm2, %v823_v29 }
 0x387   : > { %1455 = vmatpush3.bf16.msra.mxu0 %v942_v30  ;;  %1456 = vmatprep.mubr.msk.bf16.mxu0 %vm1551_vm0, %v1550_v1 }
 0x388   : > { %1468 = vmatprep.subr.bf16.mxu0 %v1550_v1 }
 0x38b   : > { %v1537_v31 = vpop.eup %1536 }
 0x38c   : > { %v934_v32 = vmul.f32 %v1537_v31, %v1529_v8 }
 0x38e   : > { %v935_v33 = vpack.c.bf16 %v934_v32, %v934_v32 }
 0x390   : > { %1457 = vmatmul.mubr.msk.bf16.vlgmr.msra.gmra.mxu0 %vm538_vm2, %v935_v33 }
 0x391   : > { %1472 = vmatprep.mubr.msk.bf16.mxu0 %vm1551_vm0, %v1550_v1  ;;  %1469 = vmatpush3.bf16.msra.mxu0 %v1516_v11 }
 0x392   : > { %1470 = vmatprep.subr.bf16.mxu0 %v1550_v1 }
 0x419   : > { %v642_v34 = vpop.f32.mrf.mxu0 }
 0x41b   : > { %v1422_v35 = vpop.f32.mrf.mxu0 }
 0x41d   : > { %v645_v36 = vpop.f32.mrf.mxu0 }
 0x41f   : > { %v1423_v37 = vpop.f32.mrf.mxu0 }
 0x421   : > { %v754_v38 = vpop.f32.mrf.mxu0 }
 0x422   : > { %985 = vrot.lane.b32.xlu1 %v754_v38, %s1563_s25 }
 0x423   : > { %v1434_v39 = vpop.f32.mrf.mxu0 }
 0x425   : > { %v757_v40 = vpop.f32.mrf.mxu0 }
 0x427   : > { %v1435_v41 = vpop.f32.mrf.mxu0 }
 0x446   : > { %v866_v44 = vpop.f32.mrf.mxu0 }
 0x447   : > { %989 = vrot.lane.b32.xlu0 %v866_v44, %s1564_s16 }
 0x448   : > { %v1446_v45 = vpop.f32.mrf.mxu0 }
 0x44a   : > { %v869_v46 = vpop.f32.mrf.mxu0 }
 0x44c   : > { %v1447_v47 = vpop.f32.mrf.mxu0 }
 0x450   : > { %v978_v48 = vpop.f32.mrf.mxu0 }
 0x451   : > { %993 = vrot.lane.b32.xlu1 %v978_v48, %s1565_s17 }
 0x452   : > { %v1458_v49 = vpop.f32.mrf.mxu0 }
 0x453   : > { %v1370_v49 = vld [vmem:[%s1828_s12] ss:$0 sm:$0xff] }
 0x454   : > { %v981_v50 = vpop.f32.mrf.mxu0 }
 0x456   : > { %v1459_v51 = vpop.f32.mrf.mxu0 }
 0x457   : > { %v1371_v51 = vld [vmem:[%s1829_s13] ss:$0 sm:$0xff] }
 0x494   : > { %v986_v52 = vpop.permute.xlu1 %985 }
 0x495   : > { %v996_v54 = vsel %vm538_vm2, %v642_v34, %v986_v52 }
 0x4b9   : > { %v990_v53 = vpop.permute.xlu0 %989 }
 0x4ba   : > { %v998_v55 = vsel %vm997_vm4, %v996_v54, %v990_v53 }
 0x4c3   : > { %v994_v56 = vpop.permute.xlu1 %993 }
 0x4c4   : > { %v1000_v57 = vsel %vm999_vm5, %v998_v55, %v994_v56 }
 0x4c5   : > { %v1001_v58 = vpack.c.bf16 %v1000_v57, %v1000_v57 }
 0x4c7   : > { %1465 = vmatmul.mubr.msk.bf16.vlgmr.msra.gmra.mxu1 %vm489_vm1, %v1001_v58 }
 0x4c8   : > { %1484 = vmatprep.mubr.msk.bf16.mxu1 %vm1551_vm0, %v1550_v1  ;;  %1477 = vmatpush3.bf16.msra.mxu1 %v1518_v12 }
 0x4c9   : > { %1478 = vmatprep.subr.bf16.mxu1 %v1550_v1 }
 0x4cc   : > { %1479 = vmatpush3.bf16.msra.mxu1 %v1519_v13 }
 0x4cd   : > { %1480 = vmatprep.subr.bf16.mxu1 %v1550_v1 }
 0x4d0   : > { %1481 = vmatpush3.bf16.msra.mxu1 %v1520_v23 }
 0x4d1   : > { %1482 = vmatprep.subr.bf16.mxu1 %v1550_v1  ;;  %v1364_v1 = vld [vmem:[%s1827_s11] ss:$0 sm:$0xff] }
 0x4d4   : > { %1483 = vmatpush3.bf16.msra.mxu1 %v1521_v24 }
 0x587   : > { %v1062_v60 = vpop.f32.mrf.mxu1 }
 0x588   : > { %v1063_v61 = vadd.f32 %v1354_v59, %v1062_v60 }
 0x589   : > { %v1466_v62 = vpop.f32.mrf.mxu1 }
 0x58a   : > { %v1068_v63 = vadd.f32 %v1063_v61, %v1671_v3  ;;  %v1517_v3 = vld [vmem:[%s1824_s8] sm:$0xff]  }
 0x58b   : > { %v1065_v0 = vpop.f32.mrf.mxu1  ;;  %1471 = vmatpush3.bf16.msra.mxu0 %v1517_v3 }
 0x58c   : > { %v1071_v2 = vsel %vm489_vm1, %v1068_v63, 0.0 }
 0x58d   : > { %1072 = vadd.xlane.f32.xlu0 %v1071_v2  ;;  %v1467_v4 = vpop.f32.mrf.mxu1 }
 0x616   : > { %v1073_v5 = vpop.xlane.xlu0 %1072 }
 0x617   : > { %v1075_v6 = vmul.f32 0.03125, %v1073_v5 }
 0x619   : > { %v1076_v7 = vsub.f32 %v1068_v63, %v1075_v6 }
 0x61b   : > { %v1077_v8 = vmul.f32 %v1076_v7, %v1076_v7 }
 0x61d   : > { %v1078_v10 = vsel %vm489_vm1, %v1077_v8, 0.0 }
 0x61e   : > { %1079 = vadd.xlane.f32.xlu1 %v1078_v10 }
 0x6a7   : > { %v1080_v14 = vpop.xlane.xlu1 %1079 }
 0x6a8   : > { %v1081_v15 = vmul.f32 0.03125, %v1080_v14 }
 0x6aa   : > { %v1082_v16 = vadd.f32 1e-05, %v1081_v15 }
 0x6ac   : > { %1538 = vrsqrt.f32 %v1082_v16 }
 0x6b9   : > { %v1539_v17 = vpop.eup %1538 }
 0x6ba   : > { %v1084_v19 = vmul.f32 %v1539_v17, %v1076_v7 }
 0x6bc   : > { %v1091_v21 = vmul.f32 %v1358_v18, %v1084_v19 }
 0x6be   : > { %v1098_v9 = vadd.f32 %v1359_v20, %v1091_v21 }
 0x6c0   : > { %v1099_v22 = vpack.c.bf16 %v1098_v9, %v1098_v9 }
 0x6c2   : > { %1473 = vmatmul.mubr.msk.bf16.vlgmr.msra.gmra.mxu0 %vm489_vm1, %v1099_v22 }
 0x782   : > { %v1160_v26 = vpop.f32.mrf.mxu0 }
 0x783   : > { %v1161_v27 = vadd.f32 %v1360_v25, %v1160_v26 }
 0x784   : > { %v1474_v28 = vpop.f32.mrf.mxu0 }
 0x785   : > { %v1166_v29 = vmax.f32 %v1161_v27, 0.0 }
 0x786   : > { %v1163_v30 = vpop.f32.mrf.mxu0 }
 0x787   : > { %v1167_v31 = vpack.c.bf16 %v1166_v29, %v1166_v29 }
 0x788   : > { %v1475_v32 = vpop.f32.mrf.mxu0 }
 0x789   : > { %1485 = vmatmul.mubr.msk.bf16.vlgmr.msra.gmra.mxu1 %vm1207_vm6, %v1167_v31 }
 0x849   : > { %v1245_v33 = vpop.f32.mrf.mxu1 }
 0x84a   : > { %v1246_v34 = vadd.f32 %v1364_v1, %v1245_v33 }
 0x84b   : > { %v1486_v35 = vpop.f32.mrf.mxu1 }
 0x84c   : > { %v1251_v36 = vadd.f32 %v1246_v34, %v1098_v9 }
 0x84d   : > { %v1248_v37 = vpop.f32.mrf.mxu1 }
 0x84e   : > { %v1254_v38 = vsel %vm489_vm1, %v1251_v36, 0.0 }
 0x84f   : > { %1255 = vadd.xlane.f32.xlu0 %v1254_v38  ;;  %v1487_v39 = vpop.f32.mrf.mxu1 }
 0x8d8   : > { %v1256_v40 = vpop.xlane.xlu0 %1255 }
 0x8d9   : > { %v1257_v41 = vmul.f32 0.03125, %v1256_v40 }
 0x8db   : > { %v1258_v42 = vsub.f32 %v1251_v36, %v1257_v41 }
 0x8dd   : > { %v1259_v43 = vmul.f32 %v1258_v42, %v1258_v42 }
 0x8df   : > { %v1260_v44 = vsel %vm489_vm1, %v1259_v43, 0.0 }
 0x8e0   : > { %1261 = vadd.xlane.f32.xlu0 %v1260_v44 }
 0x969   : > { %v1262_v45 = vpop.xlane.xlu0 %1261 }
 0x96a   : > { %v1263_v46 = vmul.f32 0.03125, %v1262_v45 }
 0x96c   : > { %v1264_v47 = vadd.f32 1e-05, %v1263_v46 }
 0x96e   : > { %1540 = vrsqrt.f32 %v1264_v47 }
 0x97b   : > { %v1541_v48 = vpop.eup %1540 }
 0x97c   : > { %v1266_v50 = vmul.f32 %v1541_v48, %v1258_v42 }
 0x97e   : > { %v1273_v52 = vmul.f32 %v1370_v49, %v1266_v50 }
 0x980   : > { %v1280_v53 = vadd.f32 %v1371_v51, %v1273_v52 }
 0x982   : > { %1281 = vst.msk [vmem:[%s462_s21] sm:$0xff] %vm489_vm1, %v1280_v53 }
 0x983 PF: > { %s24_s29 = sadd.s32 1, %s1548_s29  }
 0x984   : > { %p21_p4 = scmp.ge.s32.totalorder %s24_s29, 4  }
 0x986   :  { %23 = sbr.rel (!%p21_p4) target bundleno = 1 (0x1), region = 106 }

// kernel: transformer_forward.7
= control target key start
LH: loop header
LB: loop body
LE: loop exit
PB: predicated region body
PF: predicated region fallthrough
CT: control target
= control target key end

     0   :  { %s3110_s0 = inlined_call_operand.vmem [shape: f32[2,8,32], index: 0, kind: input, shape index: {}]   ;;  %s3111_s1 = inlined_call_operand.vmem [shape: f32[2,8,32], index: 1, kind: input, shape index: {}]   ;;  %s3112_s2 = inlined_call_operand.vmem [shape: f32[8,8], index: 2, kind: input, shape index: {}]   ;;  %s3113_s3 = inlined_call_operand.vmem [shape: bf16[32,96], index: 3, kind: input, shape index: {}]   ;;  %s3114_s4 = inlined_call_operand.vmem [shape: f32[1,96], index: 4, kind: input, shape index: {}]   ;;  %s3115_s5 = inlined_call_operand.vmem [shape: bf16[32,32], index: 5, kind: input, shape index: {}]   ;;  %s3116_s6 = inlined_call_operand.vmem [shape: f32[1,32], index: 6, kind: input, shape index: {}]   ;;  %s3117_s7 = inlined_call_operand.vmem [shape: f32[1,32], index: 7, kind: input, shape index: {}]   ;;  %s3118_s8 = inlined_call_operand.vmem [shape: f32[1,32], index: 8, kind: input, shape index: {}]   ;;  %s3119_s9 = inlined_call_operand.vmem [shape: bf16[32,32], index: 9, kind: input, shape index: {}]   ;;  %s3120_s10 = inlined_call_operand.vmem [shape: f32[1,32], index: 10, kind: input, shape index: {}]   ;;  %s3121_s11 = inlined_call_operand.vmem [shape: bf16[32,64], index: 11, kind: input, shape index: {}]   ;;  %s3122_s12 = inlined_call_operand.vmem [shape: f32[1,64], index: 12, kind: input, shape index: {}]   ;;  %s3123_s13 = inlined_call_operand.vmem [shape: bf16[32,32], index: 13, kind: input, shape index: {}]   ;;  %s3124_s14 = inlined_call_operand.vmem [shape: f32[1,32], index: 14, kind: input, shape index: {}]   ;;  %s3125_s15 = inlined_call_operand.vmem [shape: f32[1,32], index: 15, kind: input, shape index: {}]   ;;  %s3126_s16 = inlined_call_operand.vmem [shape: f32[1,32], index: 16, kind: input, shape index: {}]   ;;  %s3127_s17 = inlined_call_operand.vmem [shape: bf16[32,64], index: 17, kind: input, shape index: {}]   ;;  %s3128_s18 = inlined_call_operand.vmem [shape: f32[1,64], index: 18, kind: input, shape index: {}]   ;;  %s3129_s19 = inlined_call_operand.vmem [shape: bf16[64,32], index: 19, kind: input, shape index: {}]   ;;  %s3130_s20 = inlined_call_operand.vmem [shape: f32[1,32], index: 20, kind: input, shape index: {}]   ;;  %s3131_s21 = inlined_call_operand.vmem [shape: f32[1,32], index: 21, kind: input, shape index: {}]   ;;  %s3132_s22 = inlined_call_operand.vmem [shape: f32[1,32], index: 22, kind: input, shape index: {}]   ;;  %s3133_s23 = inlined_call_operand.vmem [shape: f32[2,8,32], index: 23, kind: output, shape index: {}]  }
   0x1   :  { %3143 = sst [smem:[#allocation2_spill]] %s3110_s0 }
   0x2   :  { %3144 = sst [smem:[#allocation3_spill]] %s3111_s1 }
   0x3   :  { %3145 = sst [smem:[#allocation4_spill]] %s3112_s2 }
   0x4   :  { %3146 = sst [smem:[#allocation5_spill]] %s3113_s3 }
   0x5   :  { %3147 = sst [smem:[#allocation6_spill]] %s3114_s4  ;;  %s2793_s4 = smov 0  }
   0x6   :  { %3148 = sst [smem:[#allocation7_spill]] %s3115_s5 }
   0x7   :  { %3149 = sst [smem:[#allocation8_spill]] %s3116_s6 }
   0x8   :  { %3150 = sst [smem:[#allocation9_spill]] %s3117_s7 }
   0x9 LB: > { %s2298_s30 = sadd.s32 4294967295, %s2655_s4   ;;  %p2302_p0 = scmp.ge.s32.totalorder %s2655_s4, 1  ;;  %s2655_s4 = sphi %s2793_s4, %s33_s4  }
   0xa   : > { %p645_p1 = scmp.lt.s32.totalorder %s2655_s4, 3 }
   0xc   : > { %p646_p2 = pnand %p2302_p0, %p645_p1 }
   0xd   : > { %s3151_s5 = sld [smem:[#allocation5_spill]] (!%p646_p2)  ;;  %p711_p3 = scmp.lt.s32.totalorder (!%p646_p2), %s2298_s30, 1 }
   0xe   : > { %649 = sbr.rel (%p646_p2) target bundleno = 4104 (0x1008), region = 112  ;;  %s3152_s7 = sld [smem:[#allocation2_spill]] (!%p646_p2) }
   0xf   : > { %s3153_s0 = sld [smem:[#allocation6_spill]] (!%p646_p2)  ;;  %s3142_s24 = smov (!%p646_p2), 96  }
  0x10   : > { %s3141_s25 = smov (!%p646_p2), 80   ;;  %s3136_s1 = smov (!%p646_p2), 88  }
  0x11   : > { %s3137_s26 = smov (!%p646_p2), 72   ;;  %s2664_s6 = smov (!%p646_p2), 112  }
  0x12   : > { %s2665_s27 = smov (!%p646_p2), 104   ;;  %s3154_s29 = sld [smem:[#allocation4_spill]] (!%p646_p2) }
  0x13   : > { %v2595_v0 = vld [vmem:[%s3151_s5 + $0x8] sm:$0xff]   ;;  %v2657_v1 = vmov 0.0   ;;  %v2596_v2 = vld [vmem:[%s3151_s5] sm:$0xff]   ;;  %vm2658_vm0 = vmmov 0   ;;  %s3167_s30 = smov (!%p711_p3, %s2298_s30), 1  ;;  %vm750_vm1 = vcmask 261120  }
  0x14   : > { %2415 = vmatprep.subr.bf16.mxu1 %v2657_v1  ;;  %2429 = vmatprep.subr.bf16.mxu0 %v2657_v1  ;;  %s2814_s2 = sshll.u32 %s3167_s30, 3  ;;  %s2659_s30 = smov 120   ;;  %vm799_vm2 = vcmask 64512   ;;  %vm865_vm3 = vcmask 1043456   ;;  %vm1258_vm4 = vcmask 130048   ;;  %vm1260_vm5 = vcmask 195584  }
  0x15   : > { %2416 = vmatpush3.bf16.msra.mxu1 %v2595_v0  ;;  %2419 = vmatprep.mubr.msk.bf16.mxu1 %vm2658_vm0, %v2657_v1  ;;  %s714_s28 = scalar_lea.vmem %s3152_s7, %s2814_s2  ;;  %v2306_v5 = vld [vmem:[%s3153_s0] ss:$0 sm:$0xff]  ;;  %s2666_s3 = smov 56   ;;  %vm2158_vm6 = vcmask 523264  }
  0x16   : > { %2417 = vmatprep.subr.bf16.mxu1 %v2657_v1  ;;  %2431 = vmatprep.mubr.msk.bf16.mxu0 %vm2658_vm0, %v2657_v1  ;;  %v2821_v3 = vld [vmem:[%s714_s28] sm:$0xff]  ;;  %s2667_s0 = smov 64   ;;  %s2668_s7 = smov 40  }
  0x17   : > { %v726_v4 = vpack.c.bf16 %v2821_v3, %v2821_v3  ;;  %s2669_s28 = smov 48  }
  0x18   : > { %v794_v24 = vld [vmem:[%s3154_s29] sm:$0xff]  ;;  %s3140_s29 = smov 8  }
  0x19   : > { %2418 = vmatpush3.bf16.msra.mxu1 %v2596_v2 }
  0x1a   : > { %2423 = vmatprep.subr.bf16.mxu1 %v2657_v1 }
  0x1c   : > { %2420 = vmatmul.mubr.msk.bf16.vlgmr.msra.gmra.mxu1 %vm750_vm1, %v726_v4 }
  0x1d   : > { %2425 = vmatprep.mubr.msk.bf16.mxu1 %vm2658_vm0, %v2657_v1 }
  0xdc   : > { %v788_v6 = vpop.f32.mrf.mxu1 }
  0xdd   : > { %v789_v7 = vadd.f32 %v2306_v5, %v788_v6 }
  0xde   : > { %v2421_v8 = vpop.f32.mrf.mxu1 }
  0xdf   : > { %v2831_v9 = vpack.c.bf16 %v789_v7, %v789_v7 }
  0xe0   : > { %v791_v10 = vpop.f32.mrf.mxu1 }
  0xe1   : > { %909 = vrot.lane.b32.xlu1 %v2831_v9, %s2659_s30  ;;  %797 = vrot.lane.b32.xlu0 %v2831_v9, %s3142_s24 }
  0xe2   : > { %v2422_v11 = vpop.f32.mrf.mxu1 }
  0xe5   : > { %1023 = vrot.lane.b32.xlu1 %v2831_v9, %s3141_s25  ;;  %911 = vrot.lane.b32.xlu0 %v2831_v9, %s3136_s1  ;;  %s3157_s25 = sld [smem:[#allocation3_spill]]  ;;  %s3163_s1 = smov 8  }
  0xe9   : > { %1135 = vrot.lane.b32.xlu1 %v2831_v9, %s3137_s26  ;;  %1021 = vrot.lane.b32.xlu0 %v2831_v9, %s2664_s6  ;;  %s3139_s26 = smov 16  }
  0xeb   : > { %s718_s24 = scalar_lea.vmem %s3157_s25, %s2814_s2  ;;  %s3162_s25 = smov 88  }
  0xed   : > { %1133 = vrot.lane.b32.xlu0 %v2831_v9, %s2665_s27 }
 0x153   : > { %v798_v12 = vpop.permute.xlu0 %797  ;;  %v910_v15 = vpop.permute.xlu1 %909 }
 0x154   : > { %v804_v13 = vsel %vm799_vm2, %v798_v12, 0 }
 0x155   : > { %2424 = vmatpush3.bf16.xpose.msra.mxu1 %v804_v13 }
 0x156   : > { %2435 = vmatprep.subr.bf16.mxu1 %v2657_v1 }
 0x157   : > { %v912_v14 = vpop.permute.xlu0 %911  ;;  %v1024_v17 = vpop.permute.xlu1 %1023 }
 0x158   : > { %v917_v16 = vsel %vm799_vm2, %v912_v14, 0  ;;  %v1029_v18 = vsel %vm799_vm2, %v1024_v17, 0 }
 0x15b   : > { %v1136_v19 = vpop.permute.xlu1 %1135  ;;  %v1022_v20 = vpop.permute.xlu0 %1021 }
 0x15c   : > { %2426 = vmatmul.mubr.msk.bf16.vlgmr.msra.gmra.mxu1 %vm799_vm2, %v2831_v9  ;;  %v1141_v21 = vsel %vm799_vm2, %v1136_v19, 0 }
 0x15d   : > { %2436 = vmatpush3.bf16.xpose.msra.mxu1 %v917_v16  ;;  %2437 = vmatprep.mubr.msk.bf16.mxu1 %vm2658_vm0, %v2657_v1 }
 0x15e   : > { %2447 = vmatprep.subr.bf16.mxu1 %v2657_v1 }
 0x15f   : > { %v1134_v22 = vpop.permute.xlu0 %1133 }
 0x164   : > { %2438 = vmatmul.mubr.msk.bf16.vlgmr.msra.gmra.mxu1 %vm799_vm2, %v910_v15 }
 0x165   : > { %2448 = vmatpush3.bf16.xpose.msra.mxu1 %v1029_v18  ;;  %2449 = vmatprep.mubr.msk.bf16.mxu1 %vm2658_vm0, %v2657_v1 }
 0x166   : > { %2459 = vmatprep.subr.bf16.mxu1 %v2657_v1 }
 0x16c   : > { %2450 = vmatmul.mubr.msk.bf16.vlgmr.msra.gmra.mxu1 %vm799_vm2, %v1022_v20 }
 0x16d   : > { %2460 = vmatpush3.bf16.xpose.msra.mxu1 %v1141_v21  ;;  %2461 = vmatprep.mubr.msk.bf16.mxu1 %vm2658_vm0, %v2657_v1 }
 0x16e   : > { %2471 = vmatprep.subr.bf16.mxu1 %v2657_v1 }
 0x174   : > { %2462 = vmatmul.mubr.msk.bf16.vlgmr.msra.gmra.mxu1 %vm799_vm2, %v1134_v22 }
 0x175   : > { %2475 = vmatprep.mubr.msk.bf16.mxu1 %vm2658_vm0, %v2657_v1 }
 0x21c   : > { %v840_v23 = vpop.f32.mrf.mxu1 }
 0x21d   : > { %v846_v25 = vmul.f32 0.35355338, %v840_v23 }
 0x21e   : > { %v2427_v26 = vpop.f32.mrf.mxu1 }
 0x21f   : > { %v847_v27 = vadd.f32 %v846_v25, %v794_v24 }
 0x220   : > { %v843_v28 = vpop.f32.mrf.mxu1 }
 0x221   : > { %v848_v29 = vsel %vm799_vm2, %v847_v27, -inf }
 0x222   : > { %849 = vmax.xlane.f32.xlu1 %v848_v29  ;;  %v2428_v30 = vpop.f32.mrf.mxu1 }
 0x224   : > { %v953_v31 = vpop.f32.mrf.mxu1 }
 0x225   : > { %v959_v32 = vmul.f32 0.35355338, %v953_v31 }
 0x226   : > { %v2439_v33 = vpop.f32.mrf.mxu1 }
 0x227   : > { %v960_v34 = vadd.f32 %v959_v32, %v794_v24 }
 0x228   : > { %v956_v35 = vpop.f32.mrf.mxu1 }
 0x229   : > { %v961_v36 = vsel %vm799_vm2, %v960_v34, -inf }
 0x22a   : > { %962 = vmax.xlane.f32.xlu0 %v961_v36  ;;  %v2440_v37 = vpop.f32.mrf.mxu1 }
 0x22c   : > { %v1065_v38 = vpop.f32.mrf.mxu1 }
 0x22d   : > { %v1071_v39 = vmul.f32 0.35355338, %v1065_v38 }
 0x22e   : > { %v2451_v40 = vpop.f32.mrf.mxu1 }
 0x22f   : > { %v1072_v41 = vadd.f32 %v1071_v39, %v794_v24 }
 0x230   : > { %v1068_v42 = vpop.f32.mrf.mxu1 }
 0x231   : > { %v1073_v43 = vsel %vm799_vm2, %v1072_v41, -inf }
 0x232   : > { %1074 = vmax.xlane.f32.xlu0 %v1073_v43  ;;  %v2452_v44 = vpop.f32.mrf.mxu1 }
 0x234   : > { %v1177_v45 = vpop.f32.mrf.mxu1 }
 0x235   : > { %v1183_v46 = vmul.f32 0.35355338, %v1177_v45 }
 0x236   : > { %v2463_v47 = vpop.f32.mrf.mxu1 }
 0x237   : > { %v1184_v48 = vadd.f32 %v1183_v46, %v794_v24 }
 0x238   : > { %v1180_v49 = vpop.f32.mrf.mxu1 }
 0x239   : > { %v1185_v50 = vsel %vm799_vm2, %v1184_v48, -inf }
 0x23a   : > { %1186 = vmax.xlane.f32.xlu1 %v1185_v50  ;;  %v2464_v51 = vpop.f32.mrf.mxu1 }
 0x2ab   : > { %v850_v52 = vpop.xlane.xlu1 %849 }
 0x2ac   : > { %v851_v53 = vsub.f32 %v847_v27, %v850_v52 }
 0x2ae   : > { %v852_v54 = vmul.f32 1.442695, %v851_v53 }
 0x2b0   : > { %2611 = vpow2.f32 %v852_v54 }
 0x2b3   : > { %v963_v55 = vpop.xlane.xlu0 %962 }
 0x2b4   : > { %v964_v56 = vsub.f32 %v960_v34, %v963_v55 }
 0x2b6   : > { %v965_v57 = vmul.f32 1.442695, %v964_v56 }
 0x2b8   : > { %2613 = vpow2.f32 %v965_v57 }
 0x2bb   : > { %v1075_v58 = vpop.xlane.xlu0 %1074 }
 0x2bc   : > { %v1076_v59 = vsub.f32 %v1072_v41, %v1075_v58 }
 0x2bd   : > { %v2612_v60 = vpop.eup %2611 }
 0x2be   : > { %v1077_v61 = vmul.f32 1.442695, %v1076_v59  ;;  %v854_v62 = vsel %vm799_vm2, %v2612_v60, 0.0 }
 0x2bf   : > { %855 = vadd.xlane.f32.xlu0 %v854_v62 }
 0x2c0   : > { %2615 = vpow2.f32 %v1077_v61 }
 0x2c3   : > { %v1187_v5 = vpop.xlane.xlu1 %1186 }
 0x2c4   : > { %v1188_v6 = vsub.f32 %v1184_v48, %v1187_v5 }
 0x2c5   : > { %v2614_v63 = vpop.eup %2613 }
 0x2c6   : > { %v967_v0 = vsel %vm799_vm2, %v2614_v63, 0.0  ;;  %v1189_v7 = vmul.f32 1.442695, %v1188_v6 }
 0x2c7   : > { %968 = vadd.xlane.f32.xlu1 %v967_v0 }
 0x2c8   : > { %2617 = vpow2.f32 %v1189_v7 }
 0x2cd   : > { %v2616_v2 = vpop.eup %2615 }
 0x2ce   : > { %v1079_v4 = vsel %vm799_vm2, %v2616_v2, 0.0 }
 0x2cf   : > { %1080 = vadd.xlane.f32.xlu0 %v1079_v4 }
 0x2d5   : > { %v2618_v8 = vpop.eup %2617 }
 0x2d6   : > { %v1191_v10 = vsel %vm799_vm2, %v2618_v8, 0.0 }
 0x2d8   : > { %973 = vrot.lane.b32.xlu1 %v2831_v9, %s2666_s3  ;;  %s3138_s3 = smov 24  }
 0x2e5   : > { %860 = vrot.lane.b32.xlu0 %v2831_v9, %s2667_s0 }
 0x2e9   : > { %1197 = vrot.lane.b32.xlu0 %v2831_v9, %s2668_s7  ;;  %s3155_s7 = sld [smem:[#allocation7_spill]] }
 0x2ef   : > { %v2597_v42 = vld [vmem:[%s3155_s7 + $0x8] sm:$0xff]   ;;  %v2598_v43 = vld [vmem:[%s3155_s7] sm:$0xff]  }
 0x2f0   : > { %2472 = vmatpush3.bf16.msra.mxu1 %v2597_v42 }
 0x2f1   : > { %2473 = vmatprep.subr.bf16.mxu1 %v2657_v1 }
 0x2f4   : > { %2474 = vmatpush3.bf16.msra.mxu1 %v2598_v43 }
 0x2f5   : > { %2487 = vmatprep.subr.bf16.mxu1 %v2657_v1 }
 0x2fc   : > { %1192 = vadd.xlane.f32.xlu1 %v1191_v10 }
 0x30d   : > { %1085 = vrot.lane.b32.xlu1 %v2831_v9, %s2669_s28  ;;  %s3156_s28 = sld [smem:[#allocation8_spill]] }
 0x313   : > { %v2318_v59 = vld [vmem:[%s3156_s28] ss:$0 sm:$0xff]  ;;  %s3164_s28 = smov 16  }
 0x348   : > { %v856_v11 = vpop.xlane.xlu0 %855 }
 0x349   : > { %2619 = vrcp.f32 %v856_v11  ;;  %v2599_v11 = vld [vmem:[%s3121_s11 + $0x8] sm:$0xff]  }
 0x350   : > { %v969_v12 = vpop.xlane.xlu1 %968 }
 0x351   : > { %2621 = vrcp.f32 %v969_v12  ;;  %v725_v12 = vld [vmem:[%s718_s24] sm:$0xff]  ;;  %s3165_s24 = smov 24  }
 0x354   : > { %v974_v18 = vpop.permute.xlu1 %973 }
 0x355   : > { %v979_v21 = vsel %vm865_vm3, %v974_v18, 0 }
 0x356   : > { %v2620_v13 = vpop.eup %2619 }
 0x357   : > { %v858_v15 = vmul.f32 %v2620_v13, %v2612_v60  ;;  %v1427_v13 = vpack.c.bf16 %v725_v12, %v725_v12 }
 0x358   : > { %v1081_v14 = vpop.xlane.xlu0 %1080 }
 0x359   : > { %v859_v19 = vpack.c.bf16 %v858_v15, %v858_v15  ;;  %2623 = vrcp.f32 %v1081_v14  ;;  %v2601_v14 = vld [vmem:[%s3119_s9 + $0x8] sm:$0xff]   ;;  %v2602_v15 = vld [vmem:[%s3119_s9] sm:$0xff]  }
 0x35c   : > { %v861_v16 = vpop.permute.xlu0 %860 }
 0x35d   : > { %v867_v17 = vsel %vm865_vm3, %v861_v16, 0 }
 0x35e   : > { %2430 = vmatpush3.bf16.msra.mxu0 %v867_v17  ;;  %v2622_v20 = vpop.eup %2621 }
 0x35f   : > { %2441 = vmatprep.subr.bf16.mxu0 %v2657_v1  ;;  %v971_v9 = vmul.f32 %v2622_v20, %v2614_v63 }
 0x360   : > { %v1198_v28 = vpop.permute.xlu0 %1197 }
 0x361   : > { %2432 = vmatmul.mubr.msk.bf16.vlgmr.msra.gmra.mxu0 %vm799_vm2, %v859_v19  ;;  %v972_v22 = vpack.c.bf16 %v971_v9, %v971_v9  ;;  %v1203_v30 = vsel %vm865_vm3, %v1198_v28, 0  ;;  %v2323_v9 = vld [vmem:[%s3118_s8] ss:$0 sm:$0xff] }
 0x362   : > { %2442 = vmatpush3.bf16.msra.mxu0 %v979_v21  ;;  %2443 = vmatprep.mubr.msk.bf16.mxu0 %vm2658_vm0, %v2657_v1 }
 0x363   : > { %2453 = vmatprep.subr.bf16.mxu0 %v2657_v1 }
 0x366   : > { %v2624_v23 = vpop.eup %2623 }
 0x367   : > { %v1083_v25 = vmul.f32 %v2624_v23, %v2616_v2 }
 0x369   : > { %2444 = vmatmul.mubr.msk.bf16.vlgmr.msra.gmra.mxu0 %vm799_vm2, %v972_v22  ;;  %v1084_v29 = vpack.c.bf16 %v1083_v25, %v1083_v25  ;;  %v2328_v25 = vld [vmem:[%s3122_s12] ss:$0 sm:$0xff] }
 0x36a   : > { %2455 = vmatprep.mubr.msk.bf16.mxu0 %vm2658_vm0, %v2657_v1 }
 0x385   : > { %v1193_v24 = vpop.xlane.xlu1 %1192 }
 0x386   : > { %2625 = vrcp.f32 %v1193_v24 }
 0x389   : > { %v1086_v26 = vpop.permute.xlu1 %1085 }
 0x38a   : > { %v1091_v27 = vsel %vm865_vm3, %v1086_v26, 0 }
 0x38b   : > { %2454 = vmatpush3.bf16.msra.mxu0 %v1091_v27 }
 0x38c   : > { %2465 = vmatprep.subr.bf16.mxu0 %v2657_v1 }
 0x38e   : > { %2456 = vmatmul.mubr.msk.bf16.vlgmr.msra.gmra.mxu0 %vm799_vm2, %v1084_v29 }
 0x38f   : > { %2466 = vmatpush3.bf16.msra.mxu0 %v1203_v30  ;;  %2467 = vmatprep.mubr.msk.bf16.mxu0 %vm2658_vm0, %v2657_v1 }
 0x390   : > { %2479 = vmatprep.subr.bf16.mxu0 %v2657_v1 }
 0x393   : > { %v2626_v31 = vpop.eup %2625 }
 0x394   : > { %v1195_v32 = vmul.f32 %v2626_v31, %v2618_v8 }
 0x396   : > { %v1196_v33 = vpack.c.bf16 %v1195_v32, %v1195_v32 }
 0x398   : > { %2468 = vmatmul.mubr.msk.bf16.vlgmr.msra.gmra.mxu0 %vm799_vm2, %v1196_v33  ;;  %v2324_v33 = vld [vmem:[%s3120_s10] ss:$0 sm:$0xff] }
 0x399   : > { %2483 = vmatprep.mubr.msk.bf16.mxu0 %vm2658_vm0, %v2657_v1  ;;  %2480 = vmatpush3.bf16.msra.mxu0 %v2601_v14 }
 0x39a   : > { %2481 = vmatprep.subr.bf16.mxu0 %v2657_v1 }
 0x39d   : > { %2482 = vmatpush3.bf16.msra.mxu0 %v2602_v15 }
 0x39e   : > { %2495 = vmatprep.subr.bf16.mxu0 %v2657_v1 }
 0x421   : > { %v903_v34 = vpop.f32.mrf.mxu0 }
 0x423   : > { %v2433_v35 = vpop.f32.mrf.mxu0 }
 0x425   : > { %v906_v36 = vpop.f32.mrf.mxu0 }
 0x427   : > { %v2434_v37 = vpop.f32.mrf.mxu0 }
 0x429   : > { %v1015_v38 = vpop.f32.mrf.mxu0 }
 0x42a   : > { %1246 = vrot.lane.b32.xlu1 %v1015_v38, %s3140_s29 }
 0x42b   : > { %v2445_v39 = vpop.f32.mrf.mxu0 }
 0x42d   : > { %v1018_v40 = vpop.f32.mrf.mxu0 }
 0x42f   : > { %v2446_v41 = vpop.f32.mrf.mxu0 }
 0x44e   : > { %v1127_v44 = vpop.f32.mrf.mxu0 }
 0x44f   : > { %1250 = vrot.lane.b32.xlu0 %v1127_v44, %s3139_s26  ;;  %s3158_s26 = sld [smem:[#allocation9_spill]] }
 0x450   : > { %v2457_v45 = vpop.f32.mrf.mxu0 }
 0x452   : > { %v1130_v46 = vpop.f32.mrf.mxu0 }
 0x454   : > { %v2458_v47 = vpop.f32.mrf.mxu0 }
 0x455   : > { %v2322_v20 = vld [vmem:[%s3158_s26] ss:$0 sm:$0xff] }
 0x458   : > { %v1239_v48 = vpop.f32.mrf.mxu0 }
 0x459   : > { %1254 = vrot.lane.b32.xlu1 %v1239_v48, %s3138_s3 }
 0x45a   : > { %v2469_v49 = vpop.f32.mrf.mxu0 }
 0x45c   : > { %v1242_v50 = vpop.f32.mrf.mxu0 }
 0x45e   : > { %v2470_v51 = vpop.f32.mrf.mxu0 }
 0x49c   : > { %v1247_v52 = vpop.permute.xlu1 %1246 }
 0x49d   : > { %v1257_v54 = vsel %vm799_vm2, %v903_v34, %v1247_v52 }
 0x4c1   : > { %v1251_v53 = vpop.permute.xlu0 %1250 }
 0x4c2   : > { %v1259_v55 = vsel %vm1258_vm4, %v1257_v54, %v1251_v53 }
 0x4cb   : > { %v1255_v56 = vpop.permute.xlu1 %1254 }
 0x4cc   : > { %v1261_v57 = vsel %vm1260_vm5, %v1259_v55, %v1255_v56 }
 0x4cd   : > { %v1262_v58 = vpack.c.bf16 %v1261_v57, %v1261_v57 }
 0x4cf   : > { %2476 = vmatmul.mubr.msk.bf16.vlgmr.msra.gmra.mxu1 %vm750_vm1, %v1262_v58 }
 0x4d0   : > { %2491 = vmatprep.mubr.msk.bf16.mxu1 %vm2658_vm0, %v2657_v1  ;;  %2488 = vmatpush3.bf16.msra.mxu1 %v2599_v11 }
 0x4d1   : > { %2489 = vmatprep.subr.bf16.mxu1 %v2657_v1 }
 0x58f   : > { %v1323_v60 = vpop.f32.mrf.mxu1 }
 0x590   : > { %v1324_v61 = vadd.f32 %v2318_v59, %v1323_v60 }
 0x591   : > { %v2477_v62 = vpop.f32.mrf.mxu1 }
 0x592   : > { %v1329_v63 = vadd.f32 %v1324_v61, %v2821_v3  ;;  %v2600_v3 = vld [vmem:[%s3121_s11] sm:$0xff]  }
 0x593   : > { %v1326_v0 = vpop.f32.mrf.mxu1  ;;  %2490 = vmatpush3.bf16.msra.mxu1 %v2600_v3 }
 0x594   : > { %v1332_v2 = vsel %vm750_vm1, %v1329_v63, 0.0  ;;  %2501 = vmatprep.subr.bf16.mxu1 %v2657_v1 }
 0x595   : > { %1333 = vadd.xlane.f32.xlu0 %v1332_v2  ;;  %v2478_v4 = vpop.f32.mrf.mxu1 }
 0x596   : > { %2492 = vmatmul.mubr.msk.bf16.vlgmr.msra.gmra.mxu1 %vm750_vm1, %v1427_v13 }
 0x597   : > { %2503 = vmatprep.mubr.msk.bf16.mxu1 %vm2658_vm0, %v2657_v1 }
 0x61e   : > { %v1334_v5 = vpop.xlane.xlu0 %1333 }
 0x61f   : > { %v1336_v6 = vmul.f32 0.03125, %v1334_v5 }
 0x621   : > { %v1337_v7 = vsub.f32 %v1329_v63, %v1336_v6 }
 0x623   : > { %v1338_v8 = vmul.f32 %v1337_v7, %v1337_v7 }
 0x625   : > { %v1339_v10 = vsel %vm750_vm1, %v1338_v8, 0.0 }
 0x626   : > { %1340 = vadd.xlane.f32.xlu1 %v1339_v10 }
 0x656   : > { %v1488_v26 = vpop.f32.mrf.mxu1 }
 0x657   : > { %v1489_v27 = vadd.f32 %v2328_v25, %v1488_v26 }
 0x658   : > { %v2493_v28 = vpop.f32.mrf.mxu1 }
 0x659   : > { %v2965_v29 = vpack.c.bf16 %v1489_v27, %v1489_v27 }
 0x65a   : > { %v1491_v30 = vpop.f32.mrf.mxu1 }
 0x65b   : > { %1607 = vrot.lane.b32.xlu0 %v2965_v29, %s2659_s30  ;;  %v1500_v31 = vsel %vm799_vm2, %v2965_v29, 0 }
 0x65c   : > { %v2494_v32 = vpop.f32.mrf.mxu1 }
 0x65f   : > { %1718 = vrot.lane.b32.xlu0 %v2965_v29, %s2664_s6 }
 0x663   : > { %1829 = vrot.lane.b32.xlu0 %v2965_v29, %s2665_s27 }
 0x6af   : > { %v1341_v16 = vpop.xlane.xlu1 %1340 }
 0x6b0   : > { %v1342_v17 = vmul.f32 0.03125, %v1341_v16 }
 0x6b2   : > { %v1343_v18 = vadd.f32 1e-05, %v1342_v17 }
 0x6b4   : > { %2627 = vrsqrt.f32 %v1343_v18 }
 0x6c1   : > { %v2628_v19 = vpop.eup %2627 }
 0x6c2   : > { %v1345_v21 = vmul.f32 %v2628_v19, %v1337_v7 }
 0x6c4   : > { %v1352_v22 = vmul.f32 %v2322_v20, %v1345_v21 }
 0x6c6   : > { %v2955_v23 = vadd.f32 %v2323_v9, %v1352_v22 }
 0x6c8   : > { %v1360_v24 = vpack.c.bf16 %v2955_v23, %v2955_v23 }
 0x6ca   : > { %2484 = vmatmul.mubr.msk.bf16.vlgmr.msra.gmra.mxu0 %vm750_vm1, %v1360_v24 }
 0x6cb   : > { %2497 = vmatprep.mubr.msk.bf16.mxu0 %vm2658_vm0, %v2657_v1  ;;  %2496 = vmatpush3.bf16.xpose.msra.mxu0 %v1500_v31 }
 0x6cc   : > { %2507 = vmatprep.subr.bf16.mxu0 %v2657_v1 }
 0x6cd   : > { %v1608_v37 = vpop.permute.xlu0 %1607 }
 0x6ce   : > { %v1613_v39 = vsel %vm799_vm2, %v1608_v37, 0 }
 0x6d1   : > { %v1719_v42 = vpop.permute.xlu0 %1718 }
 0x6d2   : > { %v1724_v44 = vsel %vm799_vm2, %v1719_v42, 0 }
 0x6d5   : > { %v1830_v45 = vpop.permute.xlu0 %1829 }
 0x6d6   : > { %v1835_v47 = vsel %vm799_vm2, %v1830_v45, 0 }
 0x78a   : > { %v1421_v34 = vpop.f32.mrf.mxu0 }
 0x78b   : > { %v1422_v35 = vadd.f32 %v2324_v33, %v1421_v34 }
 0x78c   : > { %v2485_v36 = vpop.f32.mrf.mxu0 }
 0x78d   : > { %v1494_v38 = vpack.c.bf16 %v1422_v35, %v1422_v35 }
 0x78e   : > { %v1424_v40 = vpop.f32.mrf.mxu0 }
 0x78f   : > { %1605 = vrot.lane.b32.xlu1 %v1494_v38, %s2659_s30  ;;  %2498 = vmatmul.mubr.msk.bf16.vlgmr.msra.gmra.mxu0 %vm799_vm2, %v1494_v38  ;;  %s3159_s30 = smov 96  }
 0x790   : > { %v2486_v41 = vpop.f32.mrf.mxu0  ;;  %2508 = vmatpush3.bf16.xpose.msra.mxu0 %v1613_v39  ;;  %2509 = vmatprep.mubr.msk.bf16.mxu0 %vm2658_vm0, %v2657_v1 }
 0x791   : > { %2519 = vmatprep.subr.bf16.mxu0 %v2657_v1 }
 0x793   : > { %1716 = vrot.lane.b32.xlu1 %v1494_v38, %s2664_s6  ;;  %s3160_s6 = smov 80  }
 0x797   : > { %1827 = vrot.lane.b32.xlu1 %v1494_v38, %s2665_s27  ;;  %s3161_s27 = smov 72  }
 0x801   : > { %v1606_v43 = vpop.permute.xlu1 %1605 }
 0x802   : > { %2510 = vmatmul.mubr.msk.bf16.vlgmr.msra.gmra.mxu0 %vm799_vm2, %v1606_v43 }
 0x803   : > { %2520 = vmatpush3.bf16.xpose.msra.mxu0 %v1724_v44  ;;  %2521 = vmatprep.mubr.msk.bf16.mxu0 %vm2658_vm0, %v2657_v1 }
 0x804   : > { %2531 = vmatprep.subr.bf16.mxu0 %v2657_v1 }
 0x805   : > { %v1717_v46 = vpop.permute.xlu1 %1716 }
 0x809   : > { %v1828_v48 = vpop.permute.xlu1 %1827 }
 0x80a   : > { %2522 = vmatmul.mubr.msk.bf16.vlgmr.msra.gmra.mxu0 %vm799_vm2, %v1717_v46 }
 0x80b   : > { %2532 = vmatpush3.bf16.xpose.msra.mxu0 %v1835_v47  ;;  %2533 = vmatprep.mubr.msk.bf16.mxu0 %vm2658_vm0, %v2657_v1 }
 0x80c   : > { %2543 = vmatprep.subr.bf16.mxu0 %v2657_v1 }
 0x812   : > { %2534 = vmatmul.mubr.msk.bf16.vlgmr.msra.gmra.mxu0 %vm799_vm2, %v1828_v48 }
 0x813   : > { %2547 = vmatprep.mubr.msk.bf16.mxu0 %vm2658_vm0, %v2657_v1 }
 0x84f   : > { %v1536_v49 = vpop.f32.mrf.mxu0 }
 0x850   : > { %v1542_v50 = vmul.f32 0.35355338, %v1536_v49 }
 0x851   : > { %v2499_v51 = vpop.f32.mrf.mxu0 }
 0x852   : > { %v1543_v52 = vsel %vm799_vm2, %v1542_v50, -inf }
 0x853   : > { %1544 = vmax.xlane.f32.xlu0 %v1543_v52  ;;  %v1539_v53 = vpop.f32.mrf.mxu0 }
 0x855   : > { %v2500_v54 = vpop.f32.mrf.mxu0 }
 0x8c2   : > { %v1649_v55 = vpop.f32.mrf.mxu0 }
 0x8c3   : > { %v1655_v56 = vmul.f32 0.35355338, %v1649_v55 }
 0x8c4   : > { %v2511_v57 = vpop.f32.mrf.mxu0 }
 0x8c5   : > { %v1656_v58 = vsel %vm799_vm2, %v1655_v56, -inf }
 0x8c6   : > { %1657 = vmax.xlane.f32.xlu1 %v1656_v58  ;;  %v1652_v59 = vpop.f32.mrf.mxu0 }
 0x8c7   : > { %v2603_v59 = vld [vmem:[%s3123_s13 + $0x8] sm:$0xff]  }
 0x8c8   : > { %v2512_v60 = vpop.f32.mrf.mxu0  ;;  %2544 = vmatpush3.bf16.msra.mxu0 %v2603_v59 }
 0x8c9   : > { %2545 = vmatprep.subr.bf16.mxu0 %v2657_v1 }
 0x8ca   : > { %v1760_v61 = vpop.f32.mrf.mxu0 }
 0x8cb   : > { %v1766_v62 = vmul.f32 0.35355338, %v1760_v61 }
 0x8cc   : > { %v2523_v63 = vpop.f32.mrf.mxu0 }
 0x8cd   : > { %v1767_v0 = vsel %vm799_vm2, %v1766_v62, -inf }
 0x8ce   : > { %1768 = vmax.xlane.f32.xlu0 %v1767_v0  ;;  %v1763_v2 = vpop.f32.mrf.mxu0 }
 0x8d0   : > { %v2524_v4 = vpop.f32.mrf.mxu0 }
 0x8d2   : > { %v1871_v5 = vpop.f32.mrf.mxu0 }
 0x8d3   : > { %v1877_v6 = vmul.f32 0.35355338, %v1871_v5 }
 0x8d4   : > { %v2535_v7 = vpop.f32.mrf.mxu0 }
 0x8d5   : > { %v1878_v8 = vsel %vm799_vm2, %v1877_v6, -inf }
 0x8d6   : > { %1879 = vmax.xlane.f32.xlu0 %v1878_v8  ;;  %v1874_v10 = vpop.f32.mrf.mxu0 }
 0x8d8   : > { %v2536_v11 = vpop.f32.mrf.mxu0 }
 0x8dc   : > { %v1545_v3 = vpop.xlane.xlu0 %1544 }
 0x8dd   : > { %v1546_v12 = vsub.f32 %v1542_v50, %v1545_v3 }
 0x8df   : > { %v1547_v13 = vmul.f32 1.442695, %v1546_v12 }
 0x8e1   : > { %2629 = vpow2.f32 %v1547_v13 }
 0x8ee   : > { %v2630_v14 = vpop.eup %2629 }
 0x8ef   : > { %v1549_v15 = vsel %vm799_vm2, %v2630_v14, 0.0 }
 0x8f0   : > { %1550 = vadd.xlane.f32.xlu1 %v1549_v15 }
 0x901   : > { %1556 = vrot.lane.b32.xlu1 %v2965_v29, %s3159_s30 }
 0x94f   : > { %v1658_v16 = vpop.xlane.xlu1 %1657 }
 0x950   : > { %v1659_v17 = vsub.f32 %v1655_v56, %v1658_v16 }
 0x952   : > { %v1660_v18 = vmul.f32 1.442695, %v1659_v17 }
 0x954   : > { %2631 = vpow2.f32 %v1660_v18  ;;  %v2340_v18 = vld [vmem:[%s3124_s14] ss:$0 sm:$0xff] }
 0x957   : > { %v1769_v19 = vpop.xlane.xlu0 %1768 }
 0x958   : > { %v1770_v20 = vsub.f32 %v1766_v62, %v1769_v19  ;;  %v2604_v62 = vld [vmem:[%s3123_s13] sm:$0xff]  }
 0x959   : > { %2546 = vmatpush3.bf16.msra.mxu0 %v2604_v62 }
 0x95a   : > { %v1771_v21 = vmul.f32 1.442695, %v1770_v20  ;;  %2559 = vmatprep.subr.bf16.mxu0 %v2657_v1 }
 0x95c   : > { %2633 = vpow2.f32 %v1771_v21 }
 0x95f   : > { %v1880_v9 = vpop.xlane.xlu0 %1879 }
 0x960   : > { %v1881_v22 = vsub.f32 %v1877_v6, %v1880_v9 }
 0x961   : > { %v2632_v24 = vpop.eup %2631 }
 0x962   : > { %v1882_v25 = vmul.f32 1.442695, %v1881_v22  ;;  %v1662_v26 = vsel %vm799_vm2, %v2632_v24, 0.0 }
 0x963   : > { %1663 = vadd.xlane.f32.xlu0 %v1662_v26 }
 0x964   : > { %2635 = vpow2.f32 %v1882_v25 }
 0x969   : > { %v2634_v27 = vpop.eup %2633 }
 0x96a   : > { %v1773_v28 = vsel %vm799_vm2, %v2634_v27, 0.0 }
 0x96b   : > { %1774 = vadd.xlane.f32.xlu1 %v1773_v28 }
 0x971   : > { %v2636_v30 = vpop.eup %2635 }
 0x972   : > { %v1884_v31 = vsel %vm799_vm2, %v2636_v30, 0.0 }
 0x973   : > { %1885 = vadd.xlane.f32.xlu0 %v1884_v31 }
 0x979   : > { %v1551_v32 = vpop.xlane.xlu1 %1550 }
 0x97a   : > { %2637 = vrcp.f32 %v1551_v32  ;;  %v2605_v32 = vld [vmem:[%s3127_s17 + $0x8] sm:$0xff]  }
 0x97c   : > { %1779 = vrot.lane.b32.xlu1 %v2965_v29, %s3160_s6 }
 0x97d   : > { %v1557_v33 = vpop.permute.xlu1 %1556 }
 0x97e   : > { %v1562_v34 = vsel %vm865_vm3, %v1557_v33, 0  ;;  %v2607_v33 = vld [vmem:[%s3129_s19 + $0x18] sm:$0xff]  }
 0x97f   : > { %2502 = vmatpush3.bf16.msra.mxu1 %v1562_v34  ;;  %v2608_v34 = vld [vmem:[%s3129_s19 + $0x10] sm:$0xff]  }
 0x980   : > { %1890 = vrot.lane.b32.xlu1 %v2965_v29, %s3161_s27  ;;  %2513 = vmatprep.subr.bf16.mxu1 %v2657_v1 }
 0x987   : > { %v2638_v35 = vpop.eup %2637 }
 0x988   : > { %v1553_v36 = vmul.f32 %v2638_v35, %v2630_v14 }
 0x989   : > { %1668 = vrot.lane.b32.xlu0 %v2965_v29, %s3162_s25 }
 0x98a   : > { %v1554_v37 = vpack.c.bf16 %v1553_v36, %v1553_v36 }
 0x98c   : > { %2504 = vmatmul.mubr.msk.bf16.vlgmr.msra.gmra.mxu1 %vm799_vm2, %v1554_v37 }
 0x98d   : > { %2515 = vmatprep.mubr.msk.bf16.mxu1 %vm2658_vm0, %v2657_v1 }
 0x9ec   : > { %v1664_v38 = vpop.xlane.xlu0 %1663 }
 0x9ed   : > { %2639 = vrcp.f32 %v1664_v38 }
 0x9f4   : > { %v1775_v39 = vpop.xlane.xlu1 %1774 }
 0x9f5   : > { %2641 = vrcp.f32 %v1775_v39  ;;  %v2344_v39 = vld [vmem:[%s3125_s15] ss:$0 sm:$0xff] }
 0x9f8   : > { %v1780_v45 = vpop.permute.xlu1 %1779 }
 0x9f9   : > { %v1785_v47 = vsel %vm865_vm3, %v1780_v45, 0  ;;  %v2609_v45 = vld [vmem:[%s3129_s19 + $0x8] sm:$0xff]  }
 0x9fa   : > { %v2640_v40 = vpop.eup %2639 }
 0x9fb   : > { %v1666_v42 = vmul.f32 %v2640_v40, %v2632_v24 }
 0x9fc   : > { %v1886_v41 = vpop.xlane.xlu0 %1885  ;;  %v1891_v49 = vpop.permute.xlu1 %1890 }
 0x9fd   : > { %2643 = vrcp.f32 %v1886_v41  ;;  %v1667_v29 = vpack.c.bf16 %v1666_v42, %v1666_v42  ;;  %v1896_v52 = vsel %vm865_vm3, %v1891_v49, 0  ;;  %v2345_v41 = vld [vmem:[%s3126_s16] ss:$0 sm:$0xff] }
 0xa00   : > { %v1669_v43 = vpop.permute.xlu0 %1668 }
 0xa01   : > { %v1674_v44 = vsel %vm865_vm3, %v1669_v43, 0 }
 0xa02   : > { %2514 = vmatpush3.bf16.msra.mxu1 %v1674_v44  ;;  %v2642_v46 = vpop.eup %2641 }
 0xa03   : > { %2525 = vmatprep.subr.bf16.mxu1 %v2657_v1  ;;  %v1777_v48 = vmul.f32 %v2642_v46, %v2634_v27  ;;  %v2346_v46 = vld [vmem:[%s3128_s18] ss:$0 sm:$0xff] }
 0xa05   : > { %2516 = vmatmul.mubr.msk.bf16.vlgmr.msra.gmra.mxu1 %vm799_vm2, %v1667_v29  ;;  %v1778_v50 = vpack.c.bf16 %v1777_v48, %v1777_v48  ;;  %v2610_v29 = vld [vmem:[%s3129_s19] sm:$0xff]  }
 0xa06   : > { %2526 = vmatpush3.bf16.msra.mxu1 %v1785_v47  ;;  %2527 = vmatprep.mubr.msk.bf16.mxu1 %vm2658_vm0, %v2657_v1 }
 0xa07   : > { %2537 = vmatprep.subr.bf16.mxu1 %v2657_v1 }
 0xa0a   : > { %v2644_v51 = vpop.eup %2643 }
 0xa0b   : > { %v1888_v53 = vmul.f32 %v2644_v51, %v2636_v30 }
 0xa0d   : > { %2528 = vmatmul.mubr.msk.bf16.vlgmr.msra.gmra.mxu1 %vm799_vm2, %v1778_v50  ;;  %v1889_v54 = vpack.c.bf16 %v1888_v53, %v1888_v53 }
 0xa0e   : > { %2538 = vmatpush3.bf16.msra.mxu1 %v1896_v52  ;;  %2539 = vmatprep.mubr.msk.bf16.mxu1 %vm2658_vm0, %v2657_v1 }
 0xa0f   : > { %2551 = vmatprep.subr.bf16.mxu1 %v2657_v1 }
 0xa15   : > { %2540 = vmatmul.mubr.msk.bf16.vlgmr.msra.gmra.mxu1 %vm799_vm2, %v1889_v54 }
 0xa16   : > { %2555 = vmatprep.mubr.msk.bf16.mxu1 %vm2658_vm0, %v2657_v1  ;;  %2552 = vmatpush3.bf16.msra.mxu1 %v2605_v32 }
 0xa17   : > { %2553 = vmatprep.subr.bf16.mxu1 %v2657_v1 }
 0xa4c   : > { %v1598_v55 = vpop.f32.mrf.mxu1 }
 0xa4e   : > { %v2505_v56 = vpop.f32.mrf.mxu1 }
 0xa50   : > { %v1601_v57 = vpop.f32.mrf.mxu1 }
 0xa52   : > { %v2506_v58 = vpop.f32.mrf.mxu1 }
 0xac5   : > { %v1710_v60 = vpop.f32.mrf.mxu1 }
 0xac6   : > { %1939 = vrot.lane.b32.xlu0 %v1710_v60, %s3163_s1  ;;  %s722_s1 = scalar_lea.vmem %s3133_s23, %s2814_s2 }
 0xac7   : > { %v2517_v61 = vpop.f32.mrf.mxu1 }
 0xac9   : > { %v1713_v63 = vpop.f32.mrf.mxu1 }
 0xacb   : > { %v2518_v0 = vpop.f32.mrf.mxu1 }
 0xacd   : > { %v1821_v2 = vpop.f32.mrf.mxu1 }
 0xace   : > { %1943 = vrot.lane.b32.xlu1 %v1821_v2, %s3164_s28 }
 0xacf   : > { %v2529_v4 = vpop.f32.mrf.mxu1 }
 0xad1   : > { %v1824_v5 = vpop.f32.mrf.mxu1 }
 0xad3   : > { %v2530_v6 = vpop.f32.mrf.mxu1 }
 0xad5   : > { %v1932_v7 = vpop.f32.mrf.mxu1 }
 0xad6   : > { %1947 = vrot.lane.b32.xlu0 %v1932_v7, %s3165_s24 }
 0xad7   : > { %v2541_v8 = vpop.f32.mrf.mxu1 }
 0xad8   : > { %v2356_v8 = vld [vmem:[%s3131_s21] ss:$0 sm:$0xff] }
 0xad9   : > { %v1935_v10 = vpop.f32.mrf.mxu1 }
 0xadb   : > { %v2542_v11 = vpop.f32.mrf.mxu1 }
 0xadc   : > { %v2357_v11 = vld [vmem:[%s3132_s22] ss:$0 sm:$0xff] }
 0xb38   : > { %v1940_v3 = vpop.permute.xlu0 %1939 }
 0xb39   : > { %v1950_v13 = vsel %vm799_vm2, %v1598_v55, %v1940_v3 }
 0xb40   : > { %v1944_v12 = vpop.permute.xlu1 %1943 }
 0xb41   : > { %v1951_v14 = vsel %vm1258_vm4, %v1950_v13, %v1944_v12 }
 0xb48   : > { %v1948_v15 = vpop.permute.xlu0 %1947 }
 0xb49   : > { %v1952_v16 = vsel %vm1260_vm5, %v1951_v14, %v1948_v15 }
 0xb4a   : > { %v1953_v17 = vpack.c.bf16 %v1952_v16, %v1952_v16 }
 0xb4c   : > { %2548 = vmatmul.mubr.msk.bf16.vlgmr.msra.gmra.mxu0 %vm750_vm1, %v1953_v17 }
 0xb4d   : > { %2567 = vmatprep.mubr.msk.bf16.mxu0 %vm2658_vm0, %v2657_v1  ;;  %2560 = vmatpush3.bf16.msra.mxu0 %v2607_v33 }
 0xb4e   : > { %2561 = vmatprep.subr.bf16.mxu0 %v2657_v1 }
 0xb51   : > { %2562 = vmatpush3.bf16.msra.mxu0 %v2608_v34 }
 0xb52   : > { %2563 = vmatprep.subr.bf16.mxu0 %v2657_v1 }
 0xb55   : > { %2564 = vmatpush3.bf16.msra.mxu0 %v2609_v45 }
 0xb56   : > { %2565 = vmatprep.subr.bf16.mxu0 %v2657_v1  ;;  %v2350_v1 = vld [vmem:[%s3130_s20] ss:$0 sm:$0xff] }
 0xb59   : > { %2566 = vmatpush3.bf16.msra.mxu0 %v2610_v29 }
 0xc0c   : > { %v2014_v19 = vpop.f32.mrf.mxu0 }
 0xc0d   : > { %v2015_v20 = vadd.f32 %v2340_v18, %v2014_v19 }
 0xc0e   : > { %v2549_v21 = vpop.f32.mrf.mxu0 }
 0xc0f   : > { %v2020_v9 = vadd.f32 %v2015_v20, %v2955_v23  ;;  %v2606_v23 = vld [vmem:[%s3127_s17] sm:$0xff]  }
 0xc10   : > { %v2017_v22 = vpop.f32.mrf.mxu0  ;;  %2554 = vmatpush3.bf16.msra.mxu1 %v2606_v23 }
 0xc11   : > { %v2023_v24 = vsel %vm750_vm1, %v2020_v9, 0.0 }
 0xc12   : > { %2024 = vadd.xlane.f32.xlu1 %v2023_v24  ;;  %v2550_v25 = vpop.f32.mrf.mxu0 }
 0xc9b   : > { %v2025_v26 = vpop.xlane.xlu1 %2024 }
 0xc9c   : > { %v2026_v27 = vmul.f32 0.03125, %v2025_v26 }
 0xc9e   : > { %v2027_v28 = vsub.f32 %v2020_v9, %v2026_v27 }
 0xca0   : > { %v2028_v30 = vmul.f32 %v2027_v28, %v2027_v28 }
 0xca2   : > { %v2029_v31 = vsel %vm750_vm1, %v2028_v30, 0.0 }
 0xca3   : > { %2030 = vadd.xlane.f32.xlu0 %v2029_v31 }
 0xd2c   : > { %v2031_v35 = vpop.xlane.xlu0 %2030 }
 0xd2d   : > { %v2032_v36 = vmul.f32 0.03125, %v2031_v35 }
 0xd2f   : > { %v2033_v37 = vadd.f32 1e-05, %v2032_v36 }
 0xd31   : > { %2645 = vrsqrt.f32 %v2033_v37 }
 0xd3e   : > { %v2646_v38 = vpop.eup %2645 }
 0xd3f   : > { %v2035_v40 = vmul.f32 %v2646_v38, %v2027_v28 }
 0xd41   : > { %v2042_v42 = vmul.f32 %v2344_v39, %v2035_v40 }
 0xd43   : > { %v2049_v43 = vadd.f32 %v2345_v41, %v2042_v42 }
 0xd45   : > { %v2050_v44 = vpack.c.bf16 %v2049_v43, %v2049_v43 }
 0xd47   : > { %2556 = vmatmul.mubr.msk.bf16.vlgmr.msra.gmra.mxu1 %vm750_vm1, %v2050_v44 }
 0xe07   : > { %v2111_v47 = vpop.f32.mrf.mxu1 }
 0xe08   : > { %v2112_v48 = vadd.f32 %v2346_v46, %v2111_v47 }
 0xe09   : > { %v2557_v49 = vpop.f32.mrf.mxu1 }
 0xe0a   : > { %v2117_v50 = vmax.f32 %v2112_v48, 0.0 }
 0xe0b   : > { %v2114_v51 = vpop.f32.mrf.mxu1 }
 0xe0c   : > { %v2118_v52 = vpack.c.bf16 %v2117_v50, %v2117_v50 }
 0xe0d   : > { %v2558_v53 = vpop.f32.mrf.mxu1 }
 0xe0e   : > { %2568 = vmatmul.mubr.msk.bf16.vlgmr.msra.gmra.mxu0 %vm2158_vm6, %v2118_v52 }
 0xece   : > { %v2196_v54 = vpop.f32.mrf.mxu0 }
 0xecf   : > { %v2197_v55 = vadd.f32 %v2350_v1, %v2196_v54 }
 0xed0   : > { %v2569_v56 = vpop.f32.mrf.mxu0 }
 0xed1   : > { %v2202_v57 = vadd.f32 %v2197_v55, %v2049_v43 }
 0xed2   : > { %v2199_v58 = vpop.f32.mrf.mxu0 }
 0xed3   : > { %v2205_v59 = vsel %vm750_vm1, %v2202_v57, 0.0 }
 0xed4   : > { %2206 = vadd.xlane.f32.xlu0 %v2205_v59  ;;  %v2570_v60 = vpop.f32.mrf.mxu0 }
 0xf5d   : > { %v2207_v61 = vpop.xlane.xlu0 %2206 }
 0xf5e   : > { %v2208_v62 = vmul.f32 0.03125, %v2207_v61 }
 0xf60   : > { %v2209_v63 = vsub.f32 %v2202_v57, %v2208_v62 }
 0xf62   : > { %v2210_v0 = vmul.f32 %v2209_v63, %v2209_v63 }
 0xf64   : > { %v2211_v2 = vsel %vm750_vm1, %v2210_v0, 0.0 }
 0xf65   : > { %2212 = vadd.xlane.f32.xlu1 %v2211_v2 }
 0xfee   : > { %v2213_v4 = vpop.xlane.xlu1 %2212 }
 0xfef   : > { %v2214_v5 = vmul.f32 0.03125, %v2213_v4 }
 0xff1   : > { %v2215_v6 = vadd.f32 1e-05, %v2214_v5 }
 0xff3   : > { %2647 = vrsqrt.f32 %v2215_v6 }
0x1000   : > { %v2648_v7 = vpop.eup %2647 }
0x1001   : > { %v2217_v10 = vmul.f32 %v2648_v7, %v2209_v63 }
0x1003   : > { %v2224_v3 = vmul.f32 %v2356_v8, %v2217_v10 }
0x1005   : > { %v2231_v12 = vadd.f32 %v2357_v11, %v2224_v3 }
0x1007   : > { %2232 = vst.msk [vmem:[%s722_s1] sm:$0xff] %vm750_vm1, %v2231_v12 }
0x1008 PF: > { %s33_s4 = sadd.s32 1, %s2655_s4  }
0x1009   : > { %p30_p4 = scmp.ge.s32.totalorder %s33_s4, 4  }
0x100b   :  { %32 = sbr.rel (!%p30_p4) target bundleno = 9 (0x9), region = 145 }

</bundles_post_ra>
